<compile_context>
chip_gen: v5e
topology: v5e:2x2
jax: 0.10.0
libtpu: 0.0.40
codegen_flags: <defaults>
</compile_context>

<pallas_src>
import functools
import numpy as np
import jax
import jax.numpy as jnp
from jax.experimental import pallas as pl
from jax.experimental.pallas import tpu as pltpu

# ----------------------------------------------------------------------------
# Fixed network configuration (CNN(layer_config=[conv 4->8 k3 s1 p1 relu,
# maxpool k2 s2, conv 8->16 k3 s1 p1 relu, maxpool k2 s2], input_channels=4,
# input_size=(16,16), num_classes=10))
# ----------------------------------------------------------------------------
CIN, H, W = 4, 16, 16          # input channels / spatial size
C1, C2 = 8, 16                 # conv1 / conv2 output channels
HID, NCLS = 256, 10            # fc1 hidden units / classes
HP, WP = H + 2, W + 2          # conv1 padded spatial size (18, 18)
HP1, WP1 = H // 2, W // 2      # after pool1 (8, 8)
HP2, WP2 = H // 4, W // 4      # after pool2 (4, 4)
FLAT = C2 * HP2 * WP2          # torch.flatten size (256)
OUTP = 128                     # lane-dense padded logits width
TB_DEFAULT = 16                # samples per grid step -> conv1 M = 256


# ----------------------------------------------------------------------------
# Fused kernel: TB samples per grid step, everything stays in VMEM/vregs
# ----------------------------------------------------------------------------
def _cnn_fused_kernel(x_ref, r1_ref, g1_ref, b1r_ref, hs1_ref, ws1_ref,
                      r2_ref, g2_ref, b2r_ref, hs2_ref, ws2_ref,
                      eh_ref, gf_ref, bf1_ref, wf2_ref, bf2_ref, out_ref):
    f32, bf16 = jnp.float32, jnp.bfloat16
    dot = functools.partial(jnp.dot, preferred_element_type=f32)

    x = x_ref[...]                                           # (TB*18, 72) bf16

    # ---- conv1 + bias + ReLU: block-diag row shift + banded weight matmuls --
    acc1 = None
    for i in range(3):
        slab = dot(r1_ref[i], x).astype(bf16)                # (TB*16, 72)
        d = dot(slab, g1_ref[i])                             # (TB*16, 128)
        acc1 = d if acc1 is None else acc1 + d
    a1 = jnp.maximum(acc1 + b1r_ref[...], 0.0).astype(bf16)  # (TB*16, 128)

    # ---- maxpool 2x2 stride 2 (rows via block-diag, cols via lane selectors)
    u1 = jnp.maximum(dot(hs1_ref[0], a1), dot(hs1_ref[1], a1)).astype(bf16)  # (TB*8, 128)
    p1 = jnp.maximum(dot(u1, ws1_ref[0]), dot(u1, ws1_ref[1])).astype(bf16)  # (TB*8, 64)

    # ---- conv2 + bias + ReLU (h/w zero-padding folded into r2 / g2) ---------
    acc2 = None
    for i in range(3):
        s = dot(r2_ref[i], p1).astype(bf16)                  # (TB*8, 64)
        d = dot(s, g2_ref[i])                                # (TB*8, 128)
        acc2 = d if acc2 is None else acc2 + d
    a2 = jnp.maximum(acc2 + b2r_ref[...], 0.0).astype(bf16)  # (TB*8, 128)

    # ---- maxpool 2x2 stride 2 -----------------------------------------------
    u2 = jnp.maximum(dot(hs2_ref[0], a2), dot(hs2_ref[1], a2)).astype(bf16)  # (TB*4, 128)
    p2 = jnp.maximum(dot(u2, ws2_ref[0]), dot(u2, ws2_ref[1])).astype(bf16)  # (TB*4, 64)

    # ---- fc1 + ReLU (torch NCHW flatten folded into permuted gf blocks) -----
    acc3 = None
    for h in range(HP2):
        q = dot(eh_ref[h], p2).astype(bf16)                  # (TB, 64): per-sample row h
        d = dot(q, gf_ref[h])                                # (TB, 256)
        acc3 = d if acc3 is None else acc3 + d
    hid = jnp.maximum(acc3 + bf1_ref[...], 0.0).astype(bf16)  # (TB, 256)

    # ---- fc2: lane-dense (128-wide) padded logits ---------------------------
    out_ref[...] = dot(hid, wf2_ref[...]) + bf2_ref[...]     # (TB, 128) f32


# ----------------------------------------------------------------------------
# One-time host-side packing of raw parameters into kernel-ready operands
# ----------------------------------------------------------------------------
def pack_params(p, tb=TB_DEFAULT):
    w1 = np.asarray(p["w1"], np.float32)       # (3,3,CIN,C1)  HWIO
    w2 = np.asarray(p["w2"], np.float32)       # (3,3,C1,C2)
    wfc1 = np.asarray(p["wfc1"], np.float32)   # (FLAT, HID)  torch (c,h,w) flatten order
    wfc2 = np.asarray(p["wfc2"], np.float32)   # (HID, NCLS)
    b1 = np.asarray(p["b1"], np.float32)
    b2 = np.asarray(p["b2"], np.float32)
    bfc1 = np.asarray(p["bfc1"], np.float32)
    bfc2 = np.asarray(p["bfc2"], np.float32)

    # conv1 banded weights: g1[i][(w+j)*CIN+c, w*C1+f] = w1[i,j,c,f]
    g1 = np.zeros((3, WP * CIN, W * C1), np.float32)
    for i in range(3):
        for j in range(3):
            for w in range(W):
                g1[i, (w + j) * CIN:(w + j + 1) * CIN, w * C1:(w + 1) * C1] = w1[i, j]

    # conv1 row-shift selectors (block-diagonal over the batch tile)
    r1 = np.zeros((3, tb * H, tb * HP), np.float32)
    for i in range(3):
        for b in range(tb):
            for h in range(H):
                r1[i, b * H + h, b * HP + h + i] = 1.0

    # pool1 row selectors (block-diagonal): rows 2r / 2r+1 per sample
    hs1 = np.zeros((2, tb * HP1, tb * H), np.float32)
    for a in range(2):
        for b in range(tb):
            for r in range(HP1):
                hs1[a, b * HP1 + r, b * H + 2 * r + a] = 1.0

    # pool1 column-block selectors (channel-preserving)
    ws1 = np.zeros((2, W * C1, WP1 * C1), np.float32)
    for a in range(2):
        for q in range(WP1):
            for f in range(C1):
                ws1[a, (2 * q + a) * C1 + f, q * C1 + f] = 1.0

    # conv2 row-shift selectors with h-padding folded (block-diagonal)
    r2 = np.zeros((3, tb * HP1, tb * HP1), np.float32)
    for i in range(3):
        for b in range(tb):
            for h in range(HP1):
                hq = h + i - 1
                if 0 <= hq < HP1:
                    r2[i, b * HP1 + h, b * HP1 + hq] = 1.0

    # conv2 banded weights with w-padding folded
    g2 = np.zeros((3, WP1 * C1, WP1 * C2), np.float32)
    for i in range(3):
        for j in range(3):
            for w in range(WP1):
                wq = w + j - 1
                if 0 <= wq < WP1:
                    g2[i, wq * C1:(wq + 1) * C1, w * C2:(w + 1) * C2] = w2[i, j]

    # pool2 row selectors (block-diagonal)
    hs2 = np.zeros((2, tb * HP2, tb * HP1), np.float32)
    for a in range(2):
        for b in range(tb):
            for r in range(HP2):
                hs2[a, b * HP2 + r, b * HP1 + 2 * r + a] = 1.0

    # pool2 column-block selectors
    ws2 = np.zeros((2, WP1 * C2, WP2 * C2), np.float32)
    for a in range(2):
        for q in range(WP2):
            for f in range(C2):
                ws2[a, (2 * q + a) * C2 + f, q * C2 + f] = 1.0

    # fc1: per-h row extraction (block-diagonal) + NCHW-flatten-permuted weights
    eh = np.zeros((HP2, tb, tb * HP2), np.float32)
    for h in range(HP2):
        for b in range(tb):
            eh[h, b, b * HP2 + h] = 1.0
    gf = np.zeros((HP2, WP2 * C2, HID), np.float32)
    for h in range(HP2):
        for w in range(WP2):
            for c in range(C2):
                gf[h, w * C2 + c, :] = wfc1[c * (HP2 * WP2) + h * WP2 + w, :]

    # fc2 padded to 128 lanes (lane-dense output)
    wf2 = np.zeros((HID, OUTP), np.float32)
    wf2[:, :NCLS] = wfc2
    bf2 = np.zeros((1, OUTP), np.float32)
    bf2[0, :NCLS] = bfc2

    bf16 = jnp.bfloat16
    return {
        "r1": jnp.asarray(r1, bf16), "g1": jnp.asarray(g1, bf16),
        "b1r": jnp.asarray(np.tile(b1, W)[None, :], jnp.float32),       # (1, 128)
        "hs1": jnp.asarray(hs1, bf16), "ws1": jnp.asarray(ws1, bf16),
        "r2": jnp.asarray(r2, bf16), "g2": jnp.asarray(g2, bf16),
        "b2r": jnp.asarray(np.tile(b2, WP1)[None, :], jnp.float32),     # (1, 128)
        "hs2": jnp.asarray(hs2, bf16), "ws2": jnp.asarray(ws2, bf16),
        "eh": jnp.asarray(eh, bf16), "gf": jnp.asarray(gf, bf16),
        "bf1": jnp.asarray(bfc1[None, :], jnp.float32),                 # (1, 256)
        "wf2": jnp.asarray(wf2, bf16),
        "bf2": jnp.asarray(bf2, jnp.float32),                           # (1, 128)
    }


# ----------------------------------------------------------------------------
# Forward pass: tiny XLA glue + one batched fused pallas_call
# ----------------------------------------------------------------------------
def cnn_forward(x_nchw, kp):
    tb = kp["eh"].shape[1]                      # batch tile (static under jit)
    n = x_nchw.shape[0]
    nt = -(-n // tb)                            # grid length
    n_pad = nt * tb

    x = jnp.transpose(x_nchw, (0, 2, 3, 1)).astype(jnp.bfloat16)   # NCHW -> NHWC, bf16
    x = jnp.pad(x, ((0, n_pad - n), (1, 1), (1, 1), (0, 0)))       # batch + spatial pad
    x = x.reshape(n_pad * HP, WP * CIN)                            # flat lane-dense rows

    c3 = lambda i: (0, 0, 0)
    c2 = lambda i: (0, 0)

    flops = 2 * n_pad * (H * W * C1 * 9 * CIN + HP1 * WP1 * C2 * 9 * C1
                         + FLAT * HID + HID * NCLS)
    w_bytes = sum(int(np.prod(v.shape)) * v.dtype.itemsize for v in kp.values())
    bytes_accessed = int(x.size * x.dtype.itemsize + n_pad * OUTP * 4 + w_bytes)

    out = pl.pallas_call(
        _cnn_fused_kernel,
        out_shape=jax.ShapeDtypeStruct((n_pad, OUTP), jnp.float32),
        grid=(nt,),
        in_specs=[
            pl.BlockSpec((tb * HP, WP * CIN), lambda i: (i, 0)),        # x
            pl.BlockSpec((3, tb * H, tb * HP), c3),                     # r1
            pl.BlockSpec((3, WP * CIN, W * C1), c3),                    # g1
            pl.BlockSpec((1, W * C1), c2),                              # b1r
            pl.BlockSpec((2, tb * HP1, tb * H), c3),                    # hs1
            pl.BlockSpec((2, W * C1, WP1 * C1), c3),                    # ws1
            pl.BlockSpec((3, tb * HP1, tb * HP1), c3),                  # r2
            pl.BlockSpec((3, WP1 * C1, WP1 * C2), c3),                  # g2
            pl.BlockSpec((1, WP1 * C2), c2),                            # b2r
            pl.BlockSpec((2, tb * HP2, tb * HP1), c3),                  # hs2
            pl.BlockSpec((2, WP1 * C2, WP2 * C2), c3),                  # ws2
            pl.BlockSpec((HP2, tb, tb * HP2), c3),                      # eh
            pl.BlockSpec((HP2, WP2 * C2, HID), c3),                     # gf
            pl.BlockSpec((1, HID), c2),                                 # bf1
            pl.BlockSpec((HID, OUTP), c2),                              # wf2
            pl.BlockSpec((1, OUTP), c2),                                # bf2
        ],
        out_specs=pl.BlockSpec((tb, OUTP), lambda i: (i, 0)),
        compiler_params=pltpu.CompilerParams(
            dimension_semantics=("parallel",)),
        cost_estimate=pl.CostEstimate(flops=int(flops), transcendentals=0,
                                      bytes_accessed=bytes_accessed),
    )(x, kp["r1"], kp["g1"], kp["b1r"], kp["hs1"], kp["ws1"], kp["r2"],
      kp["g2"], kp["b2r"], kp["hs2"], kp["ws2"], kp["eh"], kp["gf"],
      kp["bf1"], kp["wf2"], kp["bf2"])

    return out[:n, :NCLS]


# ----------------------------------------------------------------------------
# Pure-JAX reference (HIGHEST precision) for validation
# ----------------------------------------------------------------------------
def reference_forward(x_nchw, p):
    dn = ("NHWC", "HWIO", "NHWC")
    hp = jax.lax.Precision.HIGHEST
    x = jnp.transpose(x_nchw, (0, 2, 3, 1))
    x = jax.lax.conv_general_dilated(x, p["w1"], (1, 1), ((1, 1), (1, 1)),
                                     dimension_numbers=dn, precision=hp)
    x = jnp.maximum(x + p["b1"], 0.0)
    x = jax.lax.reduce_window(x, -jnp.inf, jax.lax.max,
                              (1, 2, 2, 1), (1, 2, 2, 1), "VALID")
    x = jax.lax.conv_general_dilated(x, p["w2"], (1, 1), ((1, 1), (1, 1)),
                                     dimension_numbers=dn, precision=hp)
    x = jnp.maximum(x + p["b2"], 0.0)
    x = jax.lax.reduce_window(x, -jnp.inf, jax.lax.max,
                              (1, 2, 2, 1), (1, 2, 2, 1), "VALID")
    x = jnp.transpose(x, (0, 3, 1, 2)).reshape(x.shape[0], -1)   # torch.flatten(NCHW)
    x = jnp.maximum(jnp.dot(x, p["wfc1"], precision=hp) + p["bfc1"], 0.0)
    x = jnp.dot(x, p["wfc2"], precision=hp) + p["bfc2"]
    return x


# ----------------------------------------------------------------------------
# Deterministic parameter init + run
# ----------------------------------------------------------------------------
if __name__ == "__main__":
    B = 2
    key = jax.random.PRNGKey(0)
    ks = jax.random.split(key, 9)
    params = {
        "w1": jax.random.normal(ks[0], (3, 3, CIN, C1), jnp.float32) * 0.1,
        "b1": jax.random.normal(ks[1], (C1,), jnp.float32) * 0.1,
        "w2": jax.random.normal(ks[2], (3, 3, C1, C2), jnp.float32) * 0.1,
        "b2": jax.random.normal(ks[3], (C2,), jnp.float32) * 0.1,
        "wfc1": jax.random.normal(ks[4], (FLAT, HID), jnp.float32) * 0.05,
        "bfc1": jax.random.normal(ks[5], (HID,), jnp.float32) * 0.05,
        "wfc2": jax.random.normal(ks[6], (HID, NCLS), jnp.float32) * 0.05,
        "bfc2": jax.random.normal(ks[7], (NCLS,), jnp.float32) * 0.05,
    }
    x = jax.random.normal(ks[8], (B, CIN, H, W), jnp.float32)

    packed = pack_params(params, tb=TB_DEFAULT)   # one-time host-side packing

    out = jax.jit(cnn_forward)(x, packed)
    out = jax.block_until_ready(out)
    assert out.shape == (B, NCLS), out.shape

    ref = jax.block_until_ready(reference_forward(x, params))
    # bf16 MXU operands vs f32 HIGHEST-precision reference: ~2% tolerance.
    # (0/1 selector matmuls are exact in bf16; max over bf16-rounded values equals
    #  the rounded f32 max, so pooling introduces no extra error.)
    np.testing.assert_allclose(np.asarray(out), np.asarray(ref),
                               rtol=2e-2, atol=2e-2)

    print("KERNEL_OK")
</pallas_src>

<mosaic_0001>
module attributes {stable_mosaic.version = 11 : i64} {
  func.func @_cnn_fused_kernel(%arg0: i32, %arg1: memref<288x72xbf16, #tpu.memory_space<vmem>>, %arg2: memref<3x256x288xbf16, #tpu.memory_space<vmem>>, %arg3: memref<3x72x128xbf16, #tpu.memory_space<vmem>>, %arg4: memref<1x128xf32, #tpu.memory_space<vmem>>, %arg5: memref<2x128x256xbf16, #tpu.memory_space<vmem>>, %arg6: memref<2x128x64xbf16, #tpu.memory_space<vmem>>, %arg7: memref<3x128x128xbf16, #tpu.memory_space<vmem>>, %arg8: memref<3x64x128xbf16, #tpu.memory_space<vmem>>, %arg9: memref<1x128xf32, #tpu.memory_space<vmem>>, %arg10: memref<2x64x128xbf16, #tpu.memory_space<vmem>>, %arg11: memref<2x128x64xbf16, #tpu.memory_space<vmem>>, %arg12: memref<4x16x64xbf16, #tpu.memory_space<vmem>>, %arg13: memref<4x64x256xbf16, #tpu.memory_space<vmem>>, %arg14: memref<1x256xf32, #tpu.memory_space<vmem>>, %arg15: memref<256x128xbf16, #tpu.memory_space<vmem>>, %arg16: memref<1x128xf32, #tpu.memory_space<vmem>>, %arg17: memref<16x128xf32, #tpu.memory_space<vmem>>) attributes {dimension_semantics = [#tpu.dimension_semantics<parallel>], iteration_bounds = array<i64: 1>, scalar_prefetch = 0 : i64, scratch_operands = 0 : i64, tpu.core_type = #tpu.core_type<tc>, window_params = [{transform_indices = @transform_0, window_bounds = array<i64: 288, 72>}, {pipeline_mode = #tpu.pipeline_mode<synchronous>, transform_indices = @transform_1, window_bounds = array<i64: 3, 256, 288>}, {pipeline_mode = #tpu.pipeline_mode<synchronous>, transform_indices = @transform_2, window_bounds = array<i64: 3, 72, 128>}, {pipeline_mode = #tpu.pipeline_mode<synchronous>, transform_indices = @transform_3, window_bounds = array<i64: 1, 128>}, {pipeline_mode = #tpu.pipeline_mode<synchronous>, transform_indices = @transform_4, window_bounds = array<i64: 2, 128, 256>}, {pipeline_mode = #tpu.pipeline_mode<synchronous>, transform_indices = @transform_5, window_bounds = array<i64: 2, 128, 64>}, {pipeline_mode = #tpu.pipeline_mode<synchronous>, transform_indices = @transform_6, window_bounds = array<i64: 3, 128, 128>}, {pipeline_mode = #tpu.pipeline_mode<synchronous>, transform_indices = @transform_7, window_bounds = array<i64: 3, 64, 128>}, {pipeline_mode = #tpu.pipeline_mode<synchronous>, transform_indices = @transform_8, window_bounds = array<i64: 1, 128>}, {pipeline_mode = #tpu.pipeline_mode<synchronous>, transform_indices = @transform_9, window_bounds = array<i64: 2, 64, 128>}, {pipeline_mode = #tpu.pipeline_mode<synchronous>, transform_indices = @transform_10, window_bounds = array<i64: 2, 128, 64>}, {pipeline_mode = #tpu.pipeline_mode<synchronous>, transform_indices = @transform_11, window_bounds = array<i64: 4, 16, 64>}, {pipeline_mode = #tpu.pipeline_mode<synchronous>, transform_indices = @transform_12, window_bounds = array<i64: 4, 64, 256>}, {pipeline_mode = #tpu.pipeline_mode<synchronous>, transform_indices = @transform_13, window_bounds = array<i64: 1, 256>}, {pipeline_mode = #tpu.pipeline_mode<synchronous>, transform_indices = @transform_14, window_bounds = array<i64: 256, 128>}, {pipeline_mode = #tpu.pipeline_mode<synchronous>, transform_indices = @transform_15, window_bounds = array<i64: 1, 128>}, {transform_indices = @transform_16, window_bounds = array<i64: 16, 128>}]} {
    %c0 = arith.constant 0 : index
    %c0_0 = arith.constant 0 : index
    %0 = vector.load %arg1[%c0, %c0_0] : memref<288x72xbf16, #tpu.memory_space<vmem>>, vector<288x72xbf16>
    %c0_1 = arith.constant 0 : index
    %c0_2 = arith.constant 0 : index
    %c0_3 = arith.constant 0 : index
    %1 = vector.load %arg2[%c0_1, %c0_2, %c0_3] : memref<3x256x288xbf16, #tpu.memory_space<vmem>>, vector<1x256x288xbf16>
    %2 = vector.shape_cast %1 : vector<1x256x288xbf16> to vector<256x288xbf16>
    %cst = arith.constant dense<0.000000e+00> : vector<256x72xf32>
    %3 = tpu.matmul %2, %0, %cst {dimension_numbers = #tpu.dot_dimension_numbers<[1], [0], [0], [1], [0, 0, 1, 1], [], []>} : vector<256x288xbf16>, vector<288x72xbf16>, vector<256x72xf32> -> vector<256x72xf32>
    %4 = arith.truncf %3 : vector<256x72xf32> to vector<256x72xbf16>
    %c0_4 = arith.constant 0 : index
    %c0_5 = arith.constant 0 : index
    %c0_6 = arith.constant 0 : index
    %5 = vector.load %arg3[%c0_4, %c0_5, %c0_6] : memref<3x72x128xbf16, #tpu.memory_space<vmem>>, vector<1x72x128xbf16>
    %6 = vector.shape_cast %5 : vector<1x72x128xbf16> to vector<72x128xbf16>
    %cst_7 = arith.constant dense<0.000000e+00> : vector<256x128xf32>
    %7 = tpu.matmul %4, %6, %cst_7 {dimension_numbers = #tpu.dot_dimension_numbers<[1], [0], [0], [1], [0, 0, 1, 1], [], []>} : vector<256x72xbf16>, vector<72x128xbf16>, vector<256x128xf32> -> vector<256x128xf32>
    %c1 = arith.constant 1 : index
    %c0_8 = arith.constant 0 : index
    %c0_9 = arith.constant 0 : index
    %8 = vector.load %arg2[%c1, %c0_8, %c0_9] : memref<3x256x288xbf16, #tpu.memory_space<vmem>>, vector<1x256x288xbf16>
    %9 = vector.shape_cast %8 : vector<1x256x288xbf16> to vector<256x288xbf16>
    %cst_10 = arith.constant dense<0.000000e+00> : vector<256x72xf32>
    %10 = tpu.matmul %9, %0, %cst_10 {dimension_numbers = #tpu.dot_dimension_numbers<[1], [0], [0], [1], [0, 0, 1, 1], [], []>} : vector<256x288xbf16>, vector<288x72xbf16>, vector<256x72xf32> -> vector<256x72xf32>
    %11 = arith.truncf %10 : vector<256x72xf32> to vector<256x72xbf16>
    %c1_11 = arith.constant 1 : index
    %c0_12 = arith.constant 0 : index
    %c0_13 = arith.constant 0 : index
    %12 = vector.load %arg3[%c1_11, %c0_12, %c0_13] : memref<3x72x128xbf16, #tpu.memory_space<vmem>>, vector<1x72x128xbf16>
    %13 = vector.shape_cast %12 : vector<1x72x128xbf16> to vector<72x128xbf16>
    %cst_14 = arith.constant dense<0.000000e+00> : vector<256x128xf32>
    %14 = tpu.matmul %11, %13, %cst_14 {dimension_numbers = #tpu.dot_dimension_numbers<[1], [0], [0], [1], [0, 0, 1, 1], [], []>} : vector<256x72xbf16>, vector<72x128xbf16>, vector<256x128xf32> -> vector<256x128xf32>
    %15 = arith.addf %7, %14 : vector<256x128xf32>
    %c2 = arith.constant 2 : index
    %c0_15 = arith.constant 0 : index
    %c0_16 = arith.constant 0 : index
    %16 = vector.load %arg2[%c2, %c0_15, %c0_16] : memref<3x256x288xbf16, #tpu.memory_space<vmem>>, vector<1x256x288xbf16>
    %17 = vector.shape_cast %16 : vector<1x256x288xbf16> to vector<256x288xbf16>
    %cst_17 = arith.constant dense<0.000000e+00> : vector<256x72xf32>
    %18 = tpu.matmul %17, %0, %cst_17 {dimension_numbers = #tpu.dot_dimension_numbers<[1], [0], [0], [1], [0, 0, 1, 1], [], []>} : vector<256x288xbf16>, vector<288x72xbf16>, vector<256x72xf32> -> vector<256x72xf32>
    %19 = arith.truncf %18 : vector<256x72xf32> to vector<256x72xbf16>
    %c2_18 = arith.constant 2 : index
    %c0_19 = arith.constant 0 : index
    %c0_20 = arith.constant 0 : index
    %20 = vector.load %arg3[%c2_18, %c0_19, %c0_20] : memref<3x72x128xbf16, #tpu.memory_space<vmem>>, vector<1x72x128xbf16>
    %21 = vector.shape_cast %20 : vector<1x72x128xbf16> to vector<72x128xbf16>
    %cst_21 = arith.constant dense<0.000000e+00> : vector<256x128xf32>
    %22 = tpu.matmul %19, %21, %cst_21 {dimension_numbers = #tpu.dot_dimension_numbers<[1], [0], [0], [1], [0, 0, 1, 1], [], []>} : vector<256x72xbf16>, vector<72x128xbf16>, vector<256x128xf32> -> vector<256x128xf32>
    %23 = arith.addf %15, %22 : vector<256x128xf32>
    %c0_22 = arith.constant 0 : index
    %c0_23 = arith.constant 0 : index
    %24 = vector.load %arg4[%c0_22, %c0_23] : memref<1x128xf32, #tpu.memory_space<vmem>>, vector<1x128xf32>
    %25 = vector.broadcast %24 : vector<1x128xf32> to vector<256x128xf32>
    %26 = arith.addf %23, %25 : vector<256x128xf32>
    %cst_24 = arith.constant 0.000000e+00 : f32
    %27 = vector.broadcast %cst_24 : f32 to vector<256x128xf32>
    %28 = arith.maximumf %26, %27 : vector<256x128xf32>
    %29 = arith.truncf %28 : vector<256x128xf32> to vector<256x128xbf16>
    %c0_25 = arith.constant 0 : index
    %c0_26 = arith.constant 0 : index
    %c0_27 = arith.constant 0 : index
    %30 = vector.load %arg5[%c0_25, %c0_26, %c0_27] : memref<2x128x256xbf16, #tpu.memory_space<vmem>>, vector<1x128x256xbf16>
    %31 = vector.shape_cast %30 : vector<1x128x256xbf16> to vector<128x256xbf16>
    %cst_28 = arith.constant dense<0.000000e+00> : vector<128x128xf32>
    %32 = tpu.matmul %31, %29, %cst_28 {dimension_numbers = #tpu.dot_dimension_numbers<[1], [0], [0], [1], [0, 0, 1, 1], [], []>} : vector<128x256xbf16>, vector<256x128xbf16>, vector<128x128xf32> -> vector<128x128xf32>
    %c1_29 = arith.constant 1 : index
    %c0_30 = arith.constant 0 : index
    %c0_31 = arith.constant 0 : index
    %33 = vector.load %arg5[%c1_29, %c0_30, %c0_31] : memref<2x128x256xbf16, #tpu.memory_space<vmem>>, vector<1x128x256xbf16>
    %34 = vector.shape_cast %33 : vector<1x128x256xbf16> to vector<128x256xbf16>
    %cst_32 = arith.constant dense<0.000000e+00> : vector<128x128xf32>
    %35 = tpu.matmul %34, %29, %cst_32 {dimension_numbers = #tpu.dot_dimension_numbers<[1], [0], [0], [1], [0, 0, 1, 1], [], []>} : vector<128x256xbf16>, vector<256x128xbf16>, vector<128x128xf32> -> vector<128x128xf32>
    %36 = arith.maximumf %32, %35 : vector<128x128xf32>
    %37 = arith.truncf %36 : vector<128x128xf32> to vector<128x128xbf16>
    %c0_33 = arith.constant 0 : index
    %c0_34 = arith.constant 0 : index
    %c0_35 = arith.constant 0 : index
    %38 = vector.load %arg6[%c0_33, %c0_34, %c0_35] : memref<2x128x64xbf16, #tpu.memory_space<vmem>>, vector<1x128x64xbf16>
    %39 = vector.shape_cast %38 : vector<1x128x64xbf16> to vector<128x64xbf16>
    %cst_36 = arith.constant dense<0.000000e+00> : vector<128x64xf32>
    %40 = tpu.matmul %37, %39, %cst_36 {dimension_numbers = #tpu.dot_dimension_numbers<[1], [0], [0], [1], [0, 0, 1, 1], [], []>} : vector<128x128xbf16>, vector<128x64xbf16>, vector<128x64xf32> -> vector<128x64xf32>
    %c1_37 = arith.constant 1 : index
    %c0_38 = arith.constant 0 : index
    %c0_39 = arith.constant 0 : index
    %41 = vector.load %arg6[%c1_37, %c0_38, %c0_39] : memref<2x128x64xbf16, #tpu.memory_space<vmem>>, vector<1x128x64xbf16>
    %42 = vector.shape_cast %41 : vector<1x128x64xbf16> to vector<128x64xbf16>
    %cst_40 = arith.constant dense<0.000000e+00> : vector<128x64xf32>
    %43 = tpu.matmul %37, %42, %cst_40 {dimension_numbers = #tpu.dot_dimension_numbers<[1], [0], [0], [1], [0, 0, 1, 1], [], []>} : vector<128x128xbf16>, vector<128x64xbf16>, vector<128x64xf32> -> vector<128x64xf32>
    %44 = arith.maximumf %40, %43 : vector<128x64xf32>
    %45 = arith.truncf %44 : vector<128x64xf32> to vector<128x64xbf16>
    %c0_41 = arith.constant 0 : index
    %c0_42 = arith.constant 0 : index
    %c0_43 = arith.constant 0 : index
    %46 = vector.load %arg7[%c0_41, %c0_42, %c0_43] : memref<3x128x128xbf16, #tpu.memory_space<vmem>>, vector<1x128x128xbf16>
    %47 = vector.shape_cast %46 : vector<1x128x128xbf16> to vector<128x128xbf16>
    %cst_44 = arith.constant dense<0.000000e+00> : vector<128x64xf32>
    %48 = tpu.matmul %47, %45, %cst_44 {dimension_numbers = #tpu.dot_dimension_numbers<[1], [0], [0], [1], [0, 0, 1, 1], [], []>} : vector<128x128xbf16>, vector<128x64xbf16>, vector<128x64xf32> -> vector<128x64xf32>
    %49 = arith.truncf %48 : vector<128x64xf32> to vector<128x64xbf16>
    %c0_45 = arith.constant 0 : index
    %c0_46 = arith.constant 0 : index
    %c0_47 = arith.constant 0 : index
    %50 = vector.load %arg8[%c0_45, %c0_46, %c0_47] : memref<3x64x128xbf16, #tpu.memory_space<vmem>>, vector<1x64x128xbf16>
    %51 = vector.shape_cast %50 : vector<1x64x128xbf16> to vector<64x128xbf16>
    %cst_48 = arith.constant dense<0.000000e+00> : vector<128x128xf32>
    %52 = tpu.matmul %49, %51, %cst_48 {dimension_numbers = #tpu.dot_dimension_numbers<[1], [0], [0], [1], [0, 0, 1, 1], [], []>} : vector<128x64xbf16>, vector<64x128xbf16>, vector<128x128xf32> -> vector<128x128xf32>
    %c1_49 = arith.constant 1 : index
    %c0_50 = arith.constant 0 : index
    %c0_51 = arith.constant 0 : index
    %53 = vector.load %arg7[%c1_49, %c0_50, %c0_51] : memref<3x128x128xbf16, #tpu.memory_space<vmem>>, vector<1x128x128xbf16>
    %54 = vector.shape_cast %53 : vector<1x128x128xbf16> to vector<128x128xbf16>
    %cst_52 = arith.constant dense<0.000000e+00> : vector<128x64xf32>
    %55 = tpu.matmul %54, %45, %cst_52 {dimension_numbers = #tpu.dot_dimension_numbers<[1], [0], [0], [1], [0, 0, 1, 1], [], []>} : vector<128x128xbf16>, vector<128x64xbf16>, vector<128x64xf32> -> vector<128x64xf32>
    %56 = arith.truncf %55 : vector<128x64xf32> to vector<128x64xbf16>
    %c1_53 = arith.constant 1 : index
    %c0_54 = arith.constant 0 : index
    %c0_55 = arith.constant 0 : index
    %57 = vector.load %arg8[%c1_53, %c0_54, %c0_55] : memref<3x64x128xbf16, #tpu.memory_space<vmem>>, vector<1x64x128xbf16>
    %58 = vector.shape_cast %57 : vector<1x64x128xbf16> to vector<64x128xbf16>
    %cst_56 = arith.constant dense<0.000000e+00> : vector<128x128xf32>
    %59 = tpu.matmul %56, %58, %cst_56 {dimension_numbers = #tpu.dot_dimension_numbers<[1], [0], [0], [1], [0, 0, 1, 1], [], []>} : vector<128x64xbf16>, vector<64x128xbf16>, vector<128x128xf32> -> vector<128x128xf32>
    %60 = arith.addf %52, %59 : vector<128x128xf32>
    %c2_57 = arith.constant 2 : index
    %c0_58 = arith.constant 0 : index
    %c0_59 = arith.constant 0 : index
    %61 = vector.load %arg7[%c2_57, %c0_58, %c0_59] : memref<3x128x128xbf16, #tpu.memory_space<vmem>>, vector<1x128x128xbf16>
    %62 = vector.shape_cast %61 : vector<1x128x128xbf16> to vector<128x128xbf16>
    %cst_60 = arith.constant dense<0.000000e+00> : vector<128x64xf32>
    %63 = tpu.matmul %62, %45, %cst_60 {dimension_numbers = #tpu.dot_dimension_numbers<[1], [0], [0], [1], [0, 0, 1, 1], [], []>} : vector<128x128xbf16>, vector<128x64xbf16>, vector<128x64xf32> -> vector<128x64xf32>
    %64 = arith.truncf %63 : vector<128x64xf32> to vector<128x64xbf16>
    %c2_61 = arith.constant 2 : index
    %c0_62 = arith.constant 0 : index
    %c0_63 = arith.constant 0 : index
    %65 = vector.load %arg8[%c2_61, %c0_62, %c0_63] : memref<3x64x128xbf16, #tpu.memory_space<vmem>>, vector<1x64x128xbf16>
    %66 = vector.shape_cast %65 : vector<1x64x128xbf16> to vector<64x128xbf16>
    %cst_64 = arith.constant dense<0.000000e+00> : vector<128x128xf32>
    %67 = tpu.matmul %64, %66, %cst_64 {dimension_numbers = #tpu.dot_dimension_numbers<[1], [0], [0], [1], [0, 0, 1, 1], [], []>} : vector<128x64xbf16>, vector<64x128xbf16>, vector<128x128xf32> -> vector<128x128xf32>
    %68 = arith.addf %60, %67 : vector<128x128xf32>
    %c0_65 = arith.constant 0 : index
    %c0_66 = arith.constant 0 : index
    %69 = vector.load %arg9[%c0_65, %c0_66] : memref<1x128xf32, #tpu.memory_space<vmem>>, vector<1x128xf32>
    %70 = vector.broadcast %69 : vector<1x128xf32> to vector<128x128xf32>
    %71 = arith.addf %68, %70 : vector<128x128xf32>
    %cst_67 = arith.constant 0.000000e+00 : f32
    %72 = vector.broadcast %cst_67 : f32 to vector<128x128xf32>
    %73 = arith.maximumf %71, %72 : vector<128x128xf32>
    %74 = arith.truncf %73 : vector<128x128xf32> to vector<128x128xbf16>
    %c0_68 = arith.constant 0 : index
    %c0_69 = arith.constant 0 : index
    %c0_70 = arith.constant 0 : index
    %75 = vector.load %arg10[%c0_68, %c0_69, %c0_70] : memref<2x64x128xbf16, #tpu.memory_space<vmem>>, vector<1x64x128xbf16>
    %76 = vector.shape_cast %75 : vector<1x64x128xbf16> to vector<64x128xbf16>
    %cst_71 = arith.constant dense<0.000000e+00> : vector<64x128xf32>
    %77 = tpu.matmul %76, %74, %cst_71 {dimension_numbers = #tpu.dot_dimension_numbers<[1], [0], [0], [1], [0, 0, 1, 1], [], []>} : vector<64x128xbf16>, vector<128x128xbf16>, vector<64x128xf32> -> vector<64x128xf32>
    %c1_72 = arith.constant 1 : index
    %c0_73 = arith.constant 0 : index
    %c0_74 = arith.constant 0 : index
    %78 = vector.load %arg10[%c1_72, %c0_73, %c0_74] : memref<2x64x128xbf16, #tpu.memory_space<vmem>>, vector<1x64x128xbf16>
    %79 = vector.shape_cast %78 : vector<1x64x128xbf16> to vector<64x128xbf16>
    %cst_75 = arith.constant dense<0.000000e+00> : vector<64x128xf32>
    %80 = tpu.matmul %79, %74, %cst_75 {dimension_numbers = #tpu.dot_dimension_numbers<[1], [0], [0], [1], [0, 0, 1, 1], [], []>} : vector<64x128xbf16>, vector<128x128xbf16>, vector<64x128xf32> -> vector<64x128xf32>
    %81 = arith.maximumf %77, %80 : vector<64x128xf32>
    %82 = arith.truncf %81 : vector<64x128xf32> to vector<64x128xbf16>
    %c0_76 = arith.constant 0 : index
    %c0_77 = arith.constant 0 : index
    %c0_78 = arith.constant 0 : index
    %83 = vector.load %arg11[%c0_76, %c0_77, %c0_78] : memref<2x128x64xbf16, #tpu.memory_space<vmem>>, vector<1x128x64xbf16>
    %84 = vector.shape_cast %83 : vector<1x128x64xbf16> to vector<128x64xbf16>
    %cst_79 = arith.constant dense<0.000000e+00> : vector<64x64xf32>
    %85 = tpu.matmul %82, %84, %cst_79 {dimension_numbers = #tpu.dot_dimension_numbers<[1], [0], [0], [1], [0, 0, 1, 1], [], []>} : vector<64x128xbf16>, vector<128x64xbf16>, vector<64x64xf32> -> vector<64x64xf32>
    %c1_80 = arith.constant 1 : index
    %c0_81 = arith.constant 0 : index
    %c0_82 = arith.constant 0 : index
    %86 = vector.load %arg11[%c1_80, %c0_81, %c0_82] : memref<2x128x64xbf16, #tpu.memory_space<vmem>>, vector<1x128x64xbf16>
    %87 = vector.shape_cast %86 : vector<1x128x64xbf16> to vector<128x64xbf16>
    %cst_83 = arith.constant dense<0.000000e+00> : vector<64x64xf32>
    %88 = tpu.matmul %82, %87, %cst_83 {dimension_numbers = #tpu.dot_dimension_numbers<[1], [0], [0], [1], [0, 0, 1, 1], [], []>} : vector<64x128xbf16>, vector<128x64xbf16>, vector<64x64xf32> -> vector<64x64xf32>
    %89 = arith.maximumf %85, %88 : vector<64x64xf32>
    %90 = arith.truncf %89 : vector<64x64xf32> to vector<64x64xbf16>
    %c0_84 = arith.constant 0 : index
    %c0_85 = arith.constant 0 : index
    %c0_86 = arith.constant 0 : index
    %91 = vector.load %arg12[%c0_84, %c0_85, %c0_86] : memref<4x16x64xbf16, #tpu.memory_space<vmem>>, vector<1x16x64xbf16>
    %92 = vector.shape_cast %91 : vector<1x16x64xbf16> to vector<16x64xbf16>
    %cst_87 = arith.constant dense<0.000000e+00> : vector<16x64xf32>
    %93 = tpu.matmul %92, %90, %cst_87 {dimension_numbers = #tpu.dot_dimension_numbers<[1], [0], [0], [1], [0, 0, 1, 1], [], []>} : vector<16x64xbf16>, vector<64x64xbf16>, vector<16x64xf32> -> vector<16x64xf32>
    %94 = arith.truncf %93 : vector<16x64xf32> to vector<16x64xbf16>
    %c0_88 = arith.constant 0 : index
    %c0_89 = arith.constant 0 : index
    %c0_90 = arith.constant 0 : index
    %95 = vector.load %arg13[%c0_88, %c0_89, %c0_90] : memref<4x64x256xbf16, #tpu.memory_space<vmem>>, vector<1x64x256xbf16>
    %96 = vector.shape_cast %95 : vector<1x64x256xbf16> to vector<64x256xbf16>
    %cst_91 = arith.constant dense<0.000000e+00> : vector<16x256xf32>
    %97 = tpu.matmul %94, %96, %cst_91 {dimension_numbers = #tpu.dot_dimension_numbers<[1], [0], [0], [1], [0, 0, 1, 1], [], []>} : vector<16x64xbf16>, vector<64x256xbf16>, vector<16x256xf32> -> vector<16x256xf32>
    %c1_92 = arith.constant 1 : index
    %c0_93 = arith.constant 0 : index
    %c0_94 = arith.constant 0 : index
    %98 = vector.load %arg12[%c1_92, %c0_93, %c0_94] : memref<4x16x64xbf16, #tpu.memory_space<vmem>>, vector<1x16x64xbf16>
    %99 = vector.shape_cast %98 : vector<1x16x64xbf16> to vector<16x64xbf16>
    %cst_95 = arith.constant dense<0.000000e+00> : vector<16x64xf32>
    %100 = tpu.matmul %99, %90, %cst_95 {dimension_numbers = #tpu.dot_dimension_numbers<[1], [0], [0], [1], [0, 0, 1, 1], [], []>} : vector<16x64xbf16>, vector<64x64xbf16>, vector<16x64xf32> -> vector<16x64xf32>
    %101 = arith.truncf %100 : vector<16x64xf32> to vector<16x64xbf16>
    %c1_96 = arith.constant 1 : index
    %c0_97 = arith.constant 0 : index
    %c0_98 = arith.constant 0 : index
    %102 = vector.load %arg13[%c1_96, %c0_97, %c0_98] : memref<4x64x256xbf16, #tpu.memory_space<vmem>>, vector<1x64x256xbf16>
    %103 = vector.shape_cast %102 : vector<1x64x256xbf16> to vector<64x256xbf16>
    %cst_99 = arith.constant dense<0.000000e+00> : vector<16x256xf32>
    %104 = tpu.matmul %101, %103, %cst_99 {dimension_numbers = #tpu.dot_dimension_numbers<[1], [0], [0], [1], [0, 0, 1, 1], [], []>} : vector<16x64xbf16>, vector<64x256xbf16>, vector<16x256xf32> -> vector<16x256xf32>
    %105 = arith.addf %97, %104 : vector<16x256xf32>
    %c2_100 = arith.constant 2 : index
    %c0_101 = arith.constant 0 : index
    %c0_102 = arith.constant 0 : index
    %106 = vector.load %arg12[%c2_100, %c0_101, %c0_102] : memref<4x16x64xbf16, #tpu.memory_space<vmem>>, vector<1x16x64xbf16>
    %107 = vector.shape_cast %106 : vector<1x16x64xbf16> to vector<16x64xbf16>
    %cst_103 = arith.constant dense<0.000000e+00> : vector<16x64xf32>
    %108 = tpu.matmul %107, %90, %cst_103 {dimension_numbers = #tpu.dot_dimension_numbers<[1], [0], [0], [1], [0, 0, 1, 1], [], []>} : vector<16x64xbf16>, vector<64x64xbf16>, vector<16x64xf32> -> vector<16x64xf32>
    %109 = arith.truncf %108 : vector<16x64xf32> to vector<16x64xbf16>
    %c2_104 = arith.constant 2 : index
    %c0_105 = arith.constant 0 : index
    %c0_106 = arith.constant 0 : index
    %110 = vector.load %arg13[%c2_104, %c0_105, %c0_106] : memref<4x64x256xbf16, #tpu.memory_space<vmem>>, vector<1x64x256xbf16>
    %111 = vector.shape_cast %110 : vector<1x64x256xbf16> to vector<64x256xbf16>
    %cst_107 = arith.constant dense<0.000000e+00> : vector<16x256xf32>
    %112 = tpu.matmul %109, %111, %cst_107 {dimension_numbers = #tpu.dot_dimension_numbers<[1], [0], [0], [1], [0, 0, 1, 1], [], []>} : vector<16x64xbf16>, vector<64x256xbf16>, vector<16x256xf32> -> vector<16x256xf32>
    %113 = arith.addf %105, %112 : vector<16x256xf32>
    %c3 = arith.constant 3 : index
    %c0_108 = arith.constant 0 : index
    %c0_109 = arith.constant 0 : index
    %114 = vector.load %arg12[%c3, %c0_108, %c0_109] : memref<4x16x64xbf16, #tpu.memory_space<vmem>>, vector<1x16x64xbf16>
    %115 = vector.shape_cast %114 : vector<1x16x64xbf16> to vector<16x64xbf16>
    %cst_110 = arith.constant dense<0.000000e+00> : vector<16x64xf32>
    %116 = tpu.matmul %115, %90, %cst_110 {dimension_numbers = #tpu.dot_dimension_numbers<[1], [0], [0], [1], [0, 0, 1, 1], [], []>} : vector<16x64xbf16>, vector<64x64xbf16>, vector<16x64xf32> -> vector<16x64xf32>
    %117 = arith.truncf %116 : vector<16x64xf32> to vector<16x64xbf16>
    %c3_111 = arith.constant 3 : index
    %c0_112 = arith.constant 0 : index
    %c0_113 = arith.constant 0 : index
    %118 = vector.load %arg13[%c3_111, %c0_112, %c0_113] : memref<4x64x256xbf16, #tpu.memory_space<vmem>>, vector<1x64x256xbf16>
    %119 = vector.shape_cast %118 : vector<1x64x256xbf16> to vector<64x256xbf16>
    %cst_114 = arith.constant dense<0.000000e+00> : vector<16x256xf32>
    %120 = tpu.matmul %117, %119, %cst_114 {dimension_numbers = #tpu.dot_dimension_numbers<[1], [0], [0], [1], [0, 0, 1, 1], [], []>} : vector<16x64xbf16>, vector<64x256xbf16>, vector<16x256xf32> -> vector<16x256xf32>
    %121 = arith.addf %113, %120 : vector<16x256xf32>
    %c0_115 = arith.constant 0 : index
    %c0_116 = arith.constant 0 : index
    %122 = vector.load %arg14[%c0_115, %c0_116] : memref<1x256xf32, #tpu.memory_space<vmem>>, vector<1x256xf32>
    %123 = vector.broadcast %122 : vector<1x256xf32> to vector<16x256xf32>
    %124 = arith.addf %121, %123 : vector<16x256xf32>
    %cst_117 = arith.constant 0.000000e+00 : f32
    %125 = vector.broadcast %cst_117 : f32 to vector<16x256xf32>
    %126 = arith.maximumf %124, %125 : vector<16x256xf32>
    %127 = arith.truncf %126 : vector<16x256xf32> to vector<16x256xbf16>
    %c0_118 = arith.constant 0 : index
    %c0_119 = arith.constant 0 : index
    %128 = vector.load %arg15[%c0_118, %c0_119] : memref<256x128xbf16, #tpu.memory_space<vmem>>, vector<256x128xbf16>
    %cst_120 = arith.constant dense<0.000000e+00> : vector<16x128xf32>
    %129 = tpu.matmul %127, %128, %cst_120 {dimension_numbers = #tpu.dot_dimension_numbers<[1], [0], [0], [1], [0, 0, 1, 1], [], []>} : vector<16x256xbf16>, vector<256x128xbf16>, vector<16x128xf32> -> vector<16x128xf32>
    %c0_121 = arith.constant 0 : index
    %c0_122 = arith.constant 0 : index
    %130 = vector.load %arg16[%c0_121, %c0_122] : memref<1x128xf32, #tpu.memory_space<vmem>>, vector<1x128xf32>
    %131 = vector.broadcast %130 : vector<1x128xf32> to vector<16x128xf32>
    %132 = arith.addf %129, %131 : vector<16x128xf32>
    %c0_123 = arith.constant 0 : index
    %c0_124 = arith.constant 0 : index
    %133 = vector.load %arg17[%c0_123, %c0_124] : memref<16x128xf32, #tpu.memory_space<vmem>>, vector<16x128xf32>
    tpu.vector_store %arg17[%c0_123, %c0_124], %132 {strides = array<i32>} : memref<16x128xf32, #tpu.memory_space<vmem>>, vector<16x128xf32>,
    return
  }
  func.func @transform_0(%arg0: i32) -> (i32, i32) {
    %c0_i32 = arith.constant 0 : i32
    %c0_i32_0 = arith.constant 0 : i32
    return %arg0, %c0_i32 : i32, i32
  }
  func.func @transform_1(%arg0: i32) -> (i32, i32, i32) {
    %c0_i32 = arith.constant 0 : i32
    %c0_i32_0 = arith.constant 0 : i32
    %c0_i32_1 = arith.constant 0 : i32
    %c0_i32_2 = arith.constant 0 : i32
    return %c0_i32, %c0_i32_0, %c0_i32_1 : i32, i32, i32
  }
  func.func @transform_2(%arg0: i32) -> (i32, i32, i32) {
    %c0_i32 = arith.constant 0 : i32
    %c0_i32_0 = arith.constant 0 : i32
    %c0_i32_1 = arith.constant 0 : i32
    %c0_i32_2 = arith.constant 0 : i32
    return %c0_i32, %c0_i32_0, %c0_i32_1 : i32, i32, i32
  }
  func.func @transform_3(%arg0: i32) -> (i32, i32) {
    %c0_i32 = arith.constant 0 : i32
    %c0_i32_0 = arith.constant 0 : i32
    %c0_i32_1 = arith.constant 0 : i32
    return %c0_i32, %c0_i32_0 : i32, i32
  }
  func.func @transform_4(%arg0: i32) -> (i32, i32, i32) {
    %c0_i32 = arith.constant 0 : i32
    %c0_i32_0 = arith.constant 0 : i32
    %c0_i32_1 = arith.constant 0 : i32
    %c0_i32_2 = arith.constant 0 : i32
    return %c0_i32, %c0_i32_0, %c0_i32_1 : i32, i32, i32
  }
  func.func @transform_5(%arg0: i32) -> (i32, i32, i32) {
    %c0_i32 = arith.constant 0 : i32
    %c0_i32_0 = arith.constant 0 : i32
    %c0_i32_1 = arith.constant 0 : i32
    %c0_i32_2 = arith.constant 0 : i32
    return %c0_i32, %c0_i32_0, %c0_i32_1 : i32, i32, i32
  }
  func.func @transform_6(%arg0: i32) -> (i32, i32, i32) {
    %c0_i32 = arith.constant 0 : i32
    %c0_i32_0 = arith.constant 0 : i32
    %c0_i32_1 = arith.constant 0 : i32
    %c0_i32_2 = arith.constant 0 : i32
    return %c0_i32, %c0_i32_0, %c0_i32_1 : i32, i32, i32
  }
  func.func @transform_7(%arg0: i32) -> (i32, i32, i32) {
    %c0_i32 = arith.constant 0 : i32
    %c0_i32_0 = arith.constant 0 : i32
    %c0_i32_1 = arith.constant 0 : i32
    %c0_i32_2 = arith.constant 0 : i32
    return %c0_i32, %c0_i32_0, %c0_i32_1 : i32, i32, i32
  }
  func.func @transform_8(%arg0: i32) -> (i32, i32) {
    %c0_i32 = arith.constant 0 : i32
    %c0_i32_0 = arith.constant 0 : i32
    %c0_i32_1 = arith.constant 0 : i32
    return %c0_i32, %c0_i32_0 : i32, i32
  }
  func.func @transform_9(%arg0: i32) -> (i32, i32, i32) {
    %c0_i32 = arith.constant 0 : i32
    %c0_i32_0 = arith.constant 0 : i32
    %c0_i32_1 = arith.constant 0 : i32
    %c0_i32_2 = arith.constant 0 : i32
    return %c0_i32, %c0_i32_0, %c0_i32_1 : i32, i32, i32
  }
  func.func @transform_10(%arg0: i32) -> (i32, i32, i32) {
    %c0_i32 = arith.constant 0 : i32
    %c0_i32_0 = arith.constant 0 : i32
    %c0_i32_1 = arith.constant 0 : i32
    %c0_i32_2 = arith.constant 0 : i32
    return %c0_i32, %c0_i32_0, %c0_i32_1 : i32, i32, i32
  }
  func.func @transform_11(%arg0: i32) -> (i32, i32, i32) {
    %c0_i32 = arith.constant 0 : i32
    %c0_i32_0 = arith.constant 0 : i32
    %c0_i32_1 = arith.constant 0 : i32
    %c0_i32_2 = arith.constant 0 : i32
    return %c0_i32, %c0_i32_0, %c0_i32_1 : i32, i32, i32
  }
  func.func @transform_12(%arg0: i32) -> (i32, i32, i32) {
    %c0_i32 = arith.constant 0 : i32
    %c0_i32_0 = arith.constant 0 : i32
    %c0_i32_1 = arith.constant 0 : i32
    %c0_i32_2 = arith.constant 0 : i32
    return %c0_i32, %c0_i32_0, %c0_i32_1 : i32, i32, i32
  }
  func.func @transform_13(%arg0: i32) -> (i32, i32) {
    %c0_i32 = arith.constant 0 : i32
    %c0_i32_0 = arith.constant 0 : i32
    %c0_i32_1 = arith.constant 0 : i32
    return %c0_i32, %c0_i32_0 : i32, i32
  }
  func.func @transform_14(%arg0: i32) -> (i32, i32) {
    %c0_i32 = arith.constant 0 : i32
    %c0_i32_0 = arith.constant 0 : i32
    %c0_i32_1 = arith.constant 0 : i32
    return %c0_i32, %c0_i32_0 : i32, i32
  }
  func.func @transform_15(%arg0: i32) -> (i32, i32) {
    %c0_i32 = arith.constant 0 : i32
    %c0_i32_0 = arith.constant 0 : i32
    %c0_i32_1 = arith.constant 0 : i32
    return %c0_i32, %c0_i32_0 : i32, i32
  }
  func.func @transform_16(%arg0: i32) -> (i32, i32) {
    %c0_i32 = arith.constant 0 : i32
    %c0_i32_0 = arith.constant 0 : i32
    return %arg0, %c0_i32 : i32, i32
  }
}

</mosaic_0001>

<bundles_post_ra>
// kernel: cnn_forward.1
= control target key start
LH: loop header
LB: loop body
LE: loop exit
PB: predicated region body
PF: predicated region fallthrough
CT: control target
= control target key end

     0   :  { %vm502_vm0 = vcmask 261120   ;;  %vm1565_vm1 = vcmask 1043456   ;;  %vm1516_vm2 = vcmask 588800   ;;  %vm3702_vm3 = vcmask 523264   ;;  %s9774_s0 = inlined_call_operand.vmem [shape: bf16[288,72], index: 0, kind: input, shape index: {}]   ;;  %s9775_s1 = inlined_call_operand.vmem [shape: bf16[3,256,288], index: 1, kind: input, shape index: {}]   ;;  %s9776_s2 = inlined_call_operand.vmem [shape: bf16[3,72,128], index: 2, kind: input, shape index: {}]   ;;  %s9777_s3 = inlined_call_operand.vmem [shape: f32[1,128], index: 3, kind: input, shape index: {}]   ;;  %s9778_s4 = inlined_call_operand.vmem [shape: bf16[2,128,256], index: 4, kind: input, shape index: {}]   ;;  %s9779_s5 = inlined_call_operand.vmem [shape: bf16[2,128,64], index: 5, kind: input, shape index: {}]   ;;  %s9780_s6 = inlined_call_operand.vmem [shape: bf16[3,128,128], index: 6, kind: input, shape index: {}]   ;;  %s9781_s7 = inlined_call_operand.vmem [shape: bf16[3,64,128], index: 7, kind: input, shape index: {}]   ;;  %s9782_s8 = inlined_call_operand.vmem [shape: f32[1,128], index: 8, kind: input, shape index: {}]   ;;  %s9783_s9 = inlined_call_operand.vmem [shape: bf16[2,64,128], index: 9, kind: input, shape index: {}]   ;;  %s9784_s10 = inlined_call_operand.vmem [shape: bf16[2,128,64], index: 10, kind: input, shape index: {}]   ;;  %s9785_s12 = inlined_call_operand.vmem [shape: bf16[4,64,256], index: 12, kind: input, shape index: {}]   ;;  %s9786_s11 = inlined_call_operand.vmem [shape: bf16[4,16,64], index: 11, kind: input, shape index: {}]   ;;  %s9787_s15 = inlined_call_operand.vmem [shape: f32[1,128], index: 15, kind: input, shape index: {}]   ;;  %s9788_s14 = inlined_call_operand.vmem [shape: bf16[256,128], index: 14, kind: input, shape index: {}]   ;;  %s9789_s13 = inlined_call_operand.vmem [shape: f32[1,256], index: 13, kind: input, shape index: {}]   ;;  %s9790_s16 = inlined_call_operand.vmem [shape: f32[16,128], index: 16, kind: output, shape index: {}]  }
   0x1   :  { %9792 = sst [smem:[#allocation27_spill]] %s9774_s0  ;;  %v5117_v6 = vld [vmem:[%s9775_s1 + $0x8] sm:$0xf]  ;;  %v6875_v7 = vld [vmem:[%s9775_s1 + $0x10] sm:$0xf0] }
   0x2   :  { %s9793_s23 = sld [smem:[#allocation27_spill]]  ;;  %v5118_v10 = vor.u32 %v6875_v7, %v5117_v6  ;;  %v5129_v17 = vld [vmem:[%s9775_s1 + $0x20] sm:$0xf]  ;;  %v6878_v18 = vld [vmem:[%s9775_s1 + $0x28] sm:$0xf0] }
   0x3   :  { %v5130_v21 = vor.u32 %v6878_v18, %v5129_v17  ;;  %v5109_v24 = vld [vmem:[%s9775_s1] sm:$0xf]  ;;  %v6874_v25 = vld [vmem:[%s9775_s1 + $0x8] sm:$0xf0]  ;;  %v6873_v26 = vld [vmem:[%s9775_s1 + $0x4] sm:$0xf] }
   0x4   :  { %v5111_v27 = vld [vmem:[%s9775_s1 + $0xc] sm:$0xf0]  ;;  %v5453_v28 = vld [vmem:[%s9775_s1 + $0x180] sm:$0xf]  ;;  %v6926_v29 = vld [vmem:[%s9775_s1 + $0x188] sm:$0xf0]  ;;  %v5110_v30 = vor.u32 %v6874_v25, %v5109_v24 }
   0x5   :  { %v5114_v31 = vor.u32 %v6873_v26, %v5111_v27  ;;  %v5454_v32 = vor.u32 %v6926_v29, %v5453_v28  ;;  %v5141_v33 = vld [vmem:[%s9775_s1 + $0x38] sm:$0xf]  ;;  %v6881_v34 = vld [vmem:[%s9775_s1 + $0x40] sm:$0xf0]  ;;  %v6876_v38 = vld [vmem:[%s9775_s1 + $0x1c] sm:$0xf] }
   0x6   :  { %v5142_v35 = vor.u32 %v6881_v34, %v5141_v33  ;;  %v5121_v36 = vld [vmem:[%s9775_s1 + $0x18] sm:$0xf]  ;;  %v6877_v37 = vld [vmem:[%s9775_s1 + $0x20] sm:$0xf0]  ;;  %v5123_v39 = vld [vmem:[%s9775_s1 + $0x24] sm:$0xf0] }
   0x7   :  { %v5465_v40 = vld [vmem:[%s9775_s1 + $0x198] sm:$0xf]  ;;  %v6929_v41 = vld [vmem:[%s9775_s1 + $0x1a0] sm:$0xf0]  ;;  %v5122_v42 = vor.u32 %v6877_v37, %v5121_v36  ;;  %v5126_v43 = vor.u32 %v6876_v38, %v5123_v39  ;;  %v5153_v45 = vld [vmem:[%s9775_s1 + $0x50] sm:$0xf] }
   0x8   :  { %v7282_v0 = vld [vmem:[%s9793_s23 + $0x38] sm:$0xff]  ;;  %v7294_v2 = vld [vmem:[%s9793_s23 + $0x30] sm:$0xff]  ;;  %v6872_v4 = vld [vmem:[%s9793_s23 + $0x88] sm:$0xff]  ;;  %v5466_v44 = vor.u32 %v6929_v41, %v5465_v40 }
   0x9   :  { %v7287_v1 = vld [vmem:[%s9793_s23 + $0x78] sm:$0xff]  ;;  %551 = vmatpush.bf16.msra.mxu0 %v7282_v0  ;;  %v7299_v3 = vld [vmem:[%s9793_s23 + $0x70] sm:$0xff]  ;;  %1196 = vmatpush.bf16.msra.mxu3 %v7282_v0  ;;  %v7308_v5 = vld [vmem:[%s9793_s23 + $0x80] sm:$0xff] }
   0xa   :  { %640 = vmatpush.bf16.msra.mxu1 %v7287_v1  ;;  %735 = vmatpush.bf16.msra.mxu2 %v6872_v4  ;;  %v7321_v8 = vld [vmem:[%s9793_s23 + $0x28] sm:$0xff]  ;;  %v7336_v11 = vld [vmem:[%s9793_s23 + $0x20] sm:$0xff]  ;;  %v7351_v13 = vld [vmem:[%s9793_s23 + $0x18] sm:$0xff] }
   0xb   :  { %v7326_v9 = vld [vmem:[%s9793_s23 + $0x68] sm:$0xff]  ;;  %v7341_v12 = vld [vmem:[%s9793_s23 + $0x60] sm:$0xff]  ;;  %v7356_v14 = vld [vmem:[%s9793_s23 + $0x58] sm:$0xff] }
   0xc   :  { %v7365_v15 = vld [vmem:[%s9793_s23 + $0x10] sm:$0xff]  ;;  %v7385_v19 = vld [vmem:[%s9793_s23 + $0x8] sm:$0xff]  ;;  %v7396_v22 = vld [vmem:[%s9793_s23] sm:$0xff] }
   0xd   :  { %552 = vmatpush.bf16.msra.mxu0 %v7294_v2  ;;  %1197 = vmatpush.bf16.msra.mxu3 %v7294_v2  ;;  %v7370_v16 = vld [vmem:[%s9793_s23 + $0x50] sm:$0xff]  ;;  %v7390_v20 = vld [vmem:[%s9793_s23 + $0x48] sm:$0xff]  ;;  %v7401_v23 = vld [vmem:[%s9793_s23 + $0x40] sm:$0xff] }
   0xe   :  { %641 = vmatpush.bf16.msra.mxu1 %v7299_v3  ;;  %736 = vmatpush.bf16.msra.mxu2 %v7308_v5  ;;  %v6884_v46 = vld [vmem:[%s9775_s1 + $0x58] sm:$0xf0]  ;;  %v5133_v48 = vld [vmem:[%s9775_s1 + $0x30] sm:$0xf]  ;;  %v6879_v50 = vld [vmem:[%s9775_s1 + $0x34] sm:$0xf] }
   0xf   :  { %v5154_v47 = vor.u32 %v6884_v46, %v5153_v45  ;;  %v6880_v49 = vld [vmem:[%s9775_s1 + $0x38] sm:$0xf0]  ;;  %v5135_v51 = vld [vmem:[%s9775_s1 + $0x3c] sm:$0xf0]  ;;  %v5477_v52 = vld [vmem:[%s9775_s1 + $0x1b0] sm:$0xf] }
  0x10   :  { %v6932_v53 = vld [vmem:[%s9775_s1 + $0x1b8] sm:$0xf0]  ;;  %v5134_v54 = vor.u32 %v6880_v49, %v5133_v48  ;;  %v5138_v55 = vor.u32 %v6879_v50, %v5135_v51  ;;  %v5165_v57 = vld [vmem:[%s9775_s1 + $0x68] sm:$0xf]  ;;  %v6887_v58 = vld [vmem:[%s9775_s1 + $0x70] sm:$0xf0] }
  0x11   :  { %553 = vmatpush.bf16.msra.mxu0 %v7321_v8  ;;  %1198 = vmatpush.bf16.msra.mxu3 %v7321_v8  ;;  %v5478_v56 = vor.u32 %v6932_v53, %v5477_v52  ;;  %v5166_v59 = vor.u32 %v6887_v58, %v5165_v57  ;;  %v5145_v60 = vld [vmem:[%s9775_s1 + $0x48] sm:$0xf]  ;;  %v6883_v61 = vld [vmem:[%s9775_s1 + $0x50] sm:$0xf0]  ;;  %v6882_v62 = vld [vmem:[%s9775_s1 + $0x4c] sm:$0xf] }
  0x12   :  { %1285 = vmatpush.bf16.msrb.mxu2 %v7287_v1  ;;  %642 = vmatpush.bf16.msra.mxu1 %v7326_v9  ;;  %v5147_v63 = vld [vmem:[%s9775_s1 + $0x54] sm:$0xf0]  ;;  %v6890_v6 = vld [vmem:[%s9775_s1 + $0x88] sm:$0xf0]  ;;  %v6893_v18 = vld [vmem:[%s9775_s1 + $0xa0] sm:$0xf0] }
  0x13   :  { %5371 = vmatmul.msk.bf16.vlgmr.msra.gmra.mxu2 %vm502_vm0, %v5118_v10  ;;  %v6885_v10 = vld [vmem:[%s9775_s1 + $0x64] sm:$0xf]  ;;  %v5189_v17 = vld [vmem:[%s9775_s1 + $0x98] sm:$0xf]  ;;  %v5201_v29 = vld [vmem:[%s9775_s1 + $0xb0] sm:$0xf] }
  0x14   :  { %v5513_v24 = vld [vmem:[%s9775_s1 + $0x1f8] sm:$0xf]  ;;  %v6941_v25 = vld [vmem:[%s9775_s1 + $0x200] sm:$0xf0]  ;;  %v6892_v33 = vld [vmem:[%s9775_s1 + $0x98] sm:$0xf0] }
  0x15   :  { %554 = vmatpush.bf16.msra.mxu0 %v7336_v11  ;;  %1199 = vmatpush.bf16.msra.mxu3 %v7336_v11  ;;  %v5514_v28 = vor.u32 %v6941_v25, %v5513_v24  ;;  %v6891_v34 = vld [vmem:[%s9775_s1 + $0x94] sm:$0xf]  ;;  %v5525_v36 = vld [vmem:[%s9775_s1 + $0x210] sm:$0xf]  ;;  %v6944_v37 = vld [vmem:[%s9775_s1 + $0x218] sm:$0xf0] }
  0x16   :  { %1286 = vmatpush.bf16.msrb.mxu2 %v7299_v3  ;;  %643 = vmatpush.bf16.msra.mxu1 %v7341_v12  ;;  %v5526_v40 = vor.u32 %v6944_v37, %v5525_v36  ;;  %v5213_v41 = vld [vmem:[%s9775_s1 + $0xc8] sm:$0xf]  ;;  %v6895_v45 = vld [vmem:[%s9775_s1 + $0xb0] sm:$0xf0]  ;;  %v6894_v46 = vld [vmem:[%s9775_s1 + $0xac] sm:$0xf] }
  0x17   :  { %v5537_v48 = vld [vmem:[%s9775_s1 + $0x228] sm:$0xf]  ;;  %v6947_v49 = vld [vmem:[%s9775_s1 + $0x230] sm:$0xf0]  ;;  %v5205_v58 = vld [vmem:[%s9775_s1 + $0xc0] sm:$0xf] }
  0x18   :  { %v5538_v52 = vor.u32 %v6947_v49, %v5537_v48  ;;  %v6956_v48 = vld [vmem:[%s9775_s1 + $0x278] sm:$0xf0] }
  0x19   :  { %555 = vmatpush.bf16.msra.mxu0 %v7351_v13  ;;  %1200 = vmatpush.bf16.msra.mxu3 %v7351_v13 }
  0x1a   :  { %1287 = vmatpush.bf16.msrb.mxu2 %v7326_v9  ;;  %644 = vmatpush.bf16.msra.mxu1 %v7356_v14 }
  0x1d   :  { %556 = vmatpush.bf16.msra.mxu0 %v7365_v15  ;;  %1201 = vmatpush.bf16.msra.mxu3 %v7365_v15 }
  0x1e   :  { %1288 = vmatpush.bf16.msrb.mxu2 %v7341_v12  ;;  %645 = vmatpush.bf16.msra.mxu1 %v7370_v16 }
  0x21   :  { %557 = vmatpush.bf16.msra.mxu0 %v7385_v19  ;;  %1202 = vmatpush.bf16.msra.mxu3 %v7385_v19 }
  0x22   :  { %1289 = vmatpush.bf16.msrb.mxu2 %v7356_v14  ;;  %646 = vmatpush.bf16.msra.mxu1 %v7390_v20 }
  0x23   :  { %5372 = vmatmul.msk.bf16.gmra.mxu2 %vm502_vm0, %v5130_v21  ;;  %v6889_v21 = vld [vmem:[%s9775_s1 + $0x80] sm:$0xf0] }
  0x25   :  { %558 = vmatpush.bf16.msra.mxu0 %v7396_v22  ;;  %1203 = vmatpush.bf16.msra.mxu3 %v7396_v22 }
  0x26   :  { %1290 = vmatpush.bf16.msrb.mxu2 %v7370_v16  ;;  %647 = vmatpush.bf16.msra.mxu1 %v7401_v23 }
  0x28   :  { %559 = vmatmul.bf16.vlgmr.msra.gmra.mxu0 %v5110_v30  ;;  %1204 = vmatmul.bf16.vlgmr.msra.gmra.mxu3 %v5454_v32  ;;  %v6896_v30 = vld [vmem:[%s9775_s1 + $0xb8] sm:$0xf0]  ;;  %v5181_v32 = vld [vmem:[%s9775_s1 + $0x90] sm:$0xf] }
  0x29   :  { %1380 = vmatpush.bf16.msrb.mxu0 %v6872_v4  ;;  %648 = vmatmul.bf16.vlgmr.msra.gmra.mxu1 %v5114_v31  ;;  %v5202_v31 = vor.u32 %v6896_v30, %v5201_v29  ;;  %v5182_v38 = vor.u32 %v6892_v33, %v5181_v32  ;;  %v5249_v33 = vld [vmem:[%s9775_s1 + $0x110] sm:$0xf] }
  0x2a   :  { %1291 = vmatpush.bf16.msrb.mxu2 %v7390_v20 }
  0x2d   :  { %1381 = vmatpush.bf16.msrb.mxu0 %v7308_v5  ;;  %v5177_v5 = vld [vmem:[%s9775_s1 + $0x80] sm:$0xf] }
  0x2e   :  { %1292 = vmatpush.bf16.msrb.mxu2 %v7401_v23  ;;  %v5178_v7 = vor.u32 %v6890_v6, %v5177_v5 }
  0x31   :  { %2267 = vmatpush.bf16.msra.mxu0 %v7287_v1  ;;  %v6935_v1 = vld [vmem:[%s9775_s1 + $0x1d0] sm:$0xf0] }
  0x32   :  { %2178 = vmatpush.bf16.msra.mxu2 %v7282_v0  ;;  %v5489_v0 = vld [vmem:[%s9775_s1 + $0x1c8] sm:$0xf] }
  0x33   :  { %5373 = vmatmul.msk.bf16.gmra.mxu2 %vm502_vm0, %v5142_v35  ;;  %v5490_v4 = vor.u32 %v6935_v1, %v5489_v0  ;;  %v5183_v35 = vld [vmem:[%s9775_s1 + $0x9c] sm:$0xf0] }
  0x34   :  { %v5186_v39 = vor.u32 %v6891_v34, %v5183_v35  ;;  %v6908_v34 = vld [vmem:[%s9775_s1 + $0x118] sm:$0xf0] }
  0x35   :  { %2268 = vmatpush.bf16.msra.mxu0 %v7299_v3  ;;  %v5150_v3 = vor.u32 %v6882_v62, %v5147_v63  ;;  %v5549_v62 = vld [vmem:[%s9775_s1 + $0x240] sm:$0xf]  ;;  %v6950_v63 = vld [vmem:[%s9775_s1 + $0x248] sm:$0xf0] }
  0x36   :  { %2179 = vmatpush.bf16.msra.mxu2 %v7294_v2  ;;  %v5146_v2 = vor.u32 %v6883_v61, %v5145_v60  ;;  %v6897_v60 = vld [vmem:[%s9775_s1 + $0xc4] sm:$0xf]  ;;  %v5207_v61 = vld [vmem:[%s9775_s1 + $0xcc] sm:$0xf0] }
  0x37   :  { %v5210_v1 = vor.u32 %v6897_v60, %v5207_v61 }
  0x38   :  { %564 = vmatmul.bf16.gmra.mxu0 %v5122_v42  ;;  %1209 = vmatmul.bf16.gmra.mxu3 %v5466_v44  ;;  %v6899_v42 = vld [vmem:[%s9775_s1 + $0xd0] sm:$0xf0]  ;;  %v5193_v44 = vld [vmem:[%s9775_s1 + $0xa8] sm:$0xf] }
  0x39   :  { %2269 = vmatpush.bf16.msra.mxu0 %v7326_v9  ;;  %653 = vmatmul.bf16.gmra.mxu1 %v5126_v43  ;;  %v6886_v9 = vld [vmem:[%s9775_s1 + $0x68] sm:$0xf0]  ;;  %v5214_v43 = vor.u32 %v6899_v42, %v5213_v41  ;;  %v5194_v50 = vor.u32 %v6895_v45, %v5193_v44  ;;  %v5229_v42 = vld [vmem:[%s9775_s1 + $0xf0] sm:$0xf]  ;;  %v6903_v44 = vld [vmem:[%s9775_s1 + $0xf4] sm:$0xf] }
  0x3a   :  { %2180 = vmatpush.bf16.msra.mxu2 %v7321_v8  ;;  %v5157_v8 = vld [vmem:[%s9775_s1 + $0x60] sm:$0xf] }
  0x3b   :  { %v5231_v45 = vld [vmem:[%s9775_s1 + $0xfc] sm:$0xf0] }
  0x3d   :  { %2270 = vmatpush.bf16.msra.mxu0 %v7341_v12  ;;  %v5501_v12 = vld [vmem:[%s9775_s1 + $0x1e0] sm:$0xf] }
  0x3e   :  { %2181 = vmatpush.bf16.msra.mxu2 %v7336_v11  ;;  %v5159_v11 = vld [vmem:[%s9775_s1 + $0x6c] sm:$0xf0] }
  0x41   :  { %2271 = vmatpush.bf16.msra.mxu0 %v7356_v14  ;;  %v5158_v14 = vor.u32 %v6886_v9, %v5157_v8  ;;  %v5237_v8 = vld [vmem:[%s9775_s1 + $0xf8] sm:$0xf]  ;;  %v6905_v9 = vld [vmem:[%s9775_s1 + $0x100] sm:$0xf0] }
  0x42   :  { %2182 = vmatpush.bf16.msra.mxu2 %v7351_v13  ;;  %v6938_v13 = vld [vmem:[%s9775_s1 + $0x1e8] sm:$0xf0] }
  0x43   :  { %5374 = vmatmul.msk.bf16.gmra.mxu2 %vm502_vm0, %v5154_v47  ;;  %v5195_v47 = vld [vmem:[%s9775_s1 + $0xb4] sm:$0xf0] }
  0x44   :  { %v5198_v51 = vor.u32 %v6894_v46, %v5195_v47  ;;  %v5573_v47 = vld [vmem:[%s9775_s1 + $0x270] sm:$0xf] }
  0x45   :  { %2272 = vmatpush.bf16.msra.mxu0 %v7370_v16  ;;  %v5502_v16 = vor.u32 %v6938_v13, %v5501_v12 }
  0x46   :  { %2183 = vmatpush.bf16.msra.mxu2 %v7365_v15  ;;  %v5162_v15 = vor.u32 %v6885_v10, %v5159_v11 }
  0x48   :  { %569 = vmatmul.bf16.gmra.mxu0 %v5134_v54  ;;  %1214 = vmatmul.bf16.gmra.mxu3 %v5478_v56  ;;  %v5225_v54 = vld [vmem:[%s9775_s1 + $0xe0] sm:$0xf] }
  0x49   :  { %2273 = vmatpush.bf16.msra.mxu0 %v7390_v20  ;;  %658 = vmatmul.bf16.gmra.mxu1 %v5138_v55  ;;  %v5169_v20 = vld [vmem:[%s9775_s1 + $0x78] sm:$0xf]  ;;  %v6902_v55 = vld [vmem:[%s9775_s1 + $0xe8] sm:$0xf0] }
  0x4a   :  { %2184 = vmatpush.bf16.msra.mxu2 %v7385_v19  ;;  %v5190_v19 = vor.u32 %v6893_v18, %v5189_v17  ;;  %v5170_v26 = vor.u32 %v6889_v21, %v5169_v20  ;;  %v5226_v57 = vor.u32 %v6902_v55, %v5225_v54  ;;  %v5217_v17 = vld [vmem:[%s9775_s1 + $0xd8] sm:$0xf]  ;;  %v6901_v18 = vld [vmem:[%s9775_s1 + $0xe0] sm:$0xf0]  ;;  %v5219_v20 = vld [vmem:[%s9775_s1 + $0xe4] sm:$0xf0]  ;;  %v5574_v54 = vor.u32 %v6956_v48, %v5573_v47 }
  0x4b   :  { %v5218_v25 = vor.u32 %v6901_v18, %v5217_v17 }
  0x4d   :  { %2274 = vmatpush.bf16.msra.mxu0 %v7401_v23  ;;  %v5171_v23 = vld [vmem:[%s9775_s1 + $0x84] sm:$0xf0] }
  0x4e   :  { %2185 = vmatpush.bf16.msra.mxu2 %v7396_v22  ;;  %v6888_v22 = vld [vmem:[%s9775_s1 + $0x7c] sm:$0xf] }
  0x4f   :  { %v5174_v27 = vor.u32 %v6888_v22, %v5171_v23  ;;  %v5561_v22 = vld [vmem:[%s9775_s1 + $0x258] sm:$0xf]  ;;  %v6953_v23 = vld [vmem:[%s9775_s1 + $0x260] sm:$0xf0] }
  0x50   :  { %v5562_v29 = vor.u32 %v6953_v23, %v5561_v22  ;;  %v5273_v23 = vld [vmem:[%s9775_s1 + $0x140] sm:$0xf] }
  0x53   :  { %5375 = vmatmul.msk.bf16.gmra.mxu2 %vm502_vm0, %v5166_v59  ;;  %v6898_v59 = vld [vmem:[%s9775_s1 + $0xc8] sm:$0xf0] }
  0x54   :  { %v5206_v0 = vor.u32 %v6898_v59, %v5205_v58  ;;  %v5261_v58 = vld [vmem:[%s9775_s1 + $0x128] sm:$0xf]  ;;  %v6911_v59 = vld [vmem:[%s9775_s1 + $0x130] sm:$0xf0] }
  0x58   :  { %574 = vmatmul.bf16.gmra.mxu0 %v5146_v2  ;;  %1219 = vmatmul.bf16.gmra.mxu3 %v5490_v4  ;;  %v5550_v4 = vor.u32 %v6950_v63, %v5549_v62 }
  0x59   :  { %663 = vmatmul.bf16.gmra.mxu1 %v5150_v3 }
  0x63   :  { %5376 = vmatmul.msk.bf16.gmra.mxu2 %vm502_vm0, %v5178_v7 }
  0x68   :  { %579 = vmatmul.bf16.gmra.mxu0 %v5158_v14  ;;  %1224 = vmatmul.bf16.gmra.mxu3 %v5502_v16 }
  0x69   :  { %668 = vmatmul.bf16.gmra.mxu1 %v5162_v15  ;;  %v5238_v15 = vor.u32 %v6905_v9, %v5237_v8  ;;  %v5585_v9 = vld [vmem:[%s9775_s1 + $0x288] sm:$0xf] }
  0x73   :  { %5377 = vmatmul.msk.bf16.gmra.mxu2 %vm502_vm0, %v5190_v19  ;;  %v6900_v19 = vld [vmem:[%s9775_s1 + $0xdc] sm:$0xf] }
  0x78   :  { %584 = vmatmul.bf16.gmra.mxu0 %v5170_v26  ;;  %1229 = vmatmul.bf16.gmra.mxu3 %v5514_v28  ;;  %v5222_v26 = vor.u32 %v6900_v19, %v5219_v20 }
  0x79   :  { %673 = vmatmul.bf16.gmra.mxu1 %v5174_v27 }
  0x83   :  { %5378 = vmatmul.msk.bf16.gmra.mxu2 %vm502_vm0, %v5202_v31 }
  0x88   :  { %589 = vmatmul.bf16.gmra.mxu0 %v5182_v38  ;;  %1234 = vmatmul.bf16.gmra.mxu3 %v5526_v40  ;;  %v5250_v40 = vor.u32 %v6908_v34, %v5249_v33  ;;  %v5253_v34 = vld [vmem:[%s9775_s1 + $0x120] sm:$0xf] }
  0x89   :  { %678 = vmatmul.bf16.gmra.mxu1 %v5186_v39 }
  0x93   :  { %5379 = vmatmul.msk.bf16.gmra.mxu2 %vm502_vm0, %v5214_v43  ;;  %v6904_v43 = vld [vmem:[%s9775_s1 + $0xf8] sm:$0xf0] }
  0x96   :  { %v738_v53 = vpop.f32.mrf.mxu2 }
  0x98   :  { %594 = vmatmul.bf16.gmra.mxu0 %v5194_v50  ;;  %1239 = vmatmul.bf16.gmra.mxu3 %v5538_v52  ;;  %v5230_v50 = vor.u32 %v6904_v43, %v5229_v42  ;;  %v6962_v42 = vld [vmem:[%s9775_s1 + $0x2a8] sm:$0xf0] }
  0x99   :  { %683 = vmatmul.bf16.gmra.mxu1 %v5198_v51  ;;  %v5234_v51 = vor.u32 %v6903_v44, %v5231_v45 }
  0x9e   :  { %v740_v56 = vpop.f32.mrf.mxu2 }
  0xa3   :  { %5380 = vmatmul.msk.bf16.gmra.mxu2 %vm502_vm0, %v5226_v57 }
  0xa5   :  { %v560_v2 = vpop.f32.mrf.mxu0 }
  0xa6   :  { %v649_v3 = vpop.f32.mrf.mxu1  ;;  %v743_v6 = vpop.f32.mrf.mxu2 }
  0xa7   :  { %v650_v5 = vadd.f32 %v649_v3, %v560_v2  ;;  %v5241_v3 = vld [vmem:[%s9775_s1 + $0x108] sm:$0xf] }
  0xa8   :  { %599 = vmatmul.bf16.gmra.mxu0 %v5206_v0  ;;  %1244 = vmatmul.bf16.gmra.mxu3 %v5550_v4  ;;  %v6907_v4 = vld [vmem:[%s9775_s1 + $0x110] sm:$0xf0] }
  0xa9   :  { %v7649_v7 = vadd.f32 %v738_v53, %v650_v5  ;;  %688 = vmatmul.bf16.gmra.mxu1 %v5210_v1  ;;  %v5262_v1 = vor.u32 %v6911_v59, %v5261_v58  ;;  %v6906_v5 = vld [vmem:[%s9775_s1 + $0x10c] sm:$0xf] }
  0xab   :  { %v7657_v10 = vpop.f32.mrf.mxu3 }
  0xad   :  { %v562_v11 = vpop.f32.mrf.mxu0 }
  0xae   :  { %v651_v12 = vpop.f32.mrf.mxu1  ;;  %v745_v14 = vpop.f32.mrf.mxu2 }
  0xaf   :  { %v652_v13 = vadd.f32 %v651_v12, %v562_v11  ;;  %v6959_v11 = vld [vmem:[%s9775_s1 + $0x290] sm:$0xf0] }
  0xb0   :  { %v5586_v18 = vor.u32 %v6959_v11, %v5585_v9 }
  0xb1   :  { %v7659_v16 = vadd.f32 %v740_v56, %v652_v13  ;;  %v5242_v13 = vor.u32 %v6907_v4, %v5241_v3  ;;  %v842_v3 = vld [vmem:[%s9776_s2 + $0x20] sm:$0xf]  ;;  %v6913_v4 = vld [vmem:[%s9775_s1 + $0x140] sm:$0xf0] }
  0xb2   :  { %v1675_v9 = vunpack.c.l.b16 %v842_v3  ;;  %v6921_v3 = vld [vmem:[%s9776_s2] sm:$0xff] }
  0xb3   :  { %v818_v21 = vpack.c.bf16 %v7659_v16, %v7649_v7  ;;  %5381 = vmatmul.msk.bf16.gmra.mxu2 %vm502_vm0, %v5238_v15  ;;  %v7682_v24 = vpop.f32.mrf.mxu3  ;;  %v5473_v7 = vld [vmem:[%s9775_s1 + $0x1a0] sm:$0xf]  ;;  %v6930_v16 = vld [vmem:[%s9775_s1 + $0x1a8] sm:$0xf0] }
  0xb5   :  { %v565_v27 = vpop.f32.mrf.mxu0 }
  0xb6   :  { %v654_v28 = vpop.f32.mrf.mxu1  ;;  %v748_v31 = vpop.f32.mrf.mxu2 }
  0xb7   :  { %v655_v30 = vadd.f32 %v654_v28, %v565_v27 }
  0xb8   :  { %604 = vmatmul.bf16.gmra.mxu0 %v5218_v25  ;;  %1249 = vmatmul.bf16.gmra.mxu3 %v5562_v29  ;;  %v6914_v25 = vld [vmem:[%s9775_s1 + $0x148] sm:$0xf0] }
  0xb9   :  { %v7684_v32 = vadd.f32 %v743_v6, %v655_v30  ;;  %693 = vmatmul.bf16.gmra.mxu1 %v5222_v26  ;;  %v5243_v6 = vld [vmem:[%s9775_s1 + $0x114] sm:$0xf0] }
  0xbb   :  { %v7692_v35 = vpop.f32.mrf.mxu3 }
  0xbd   :  { %v567_v36 = vpop.f32.mrf.mxu0 }
  0xbe   :  { %v656_v37 = vpop.f32.mrf.mxu1  ;;  %v750_v39 = vpop.f32.mrf.mxu2 }
  0xbf   :  { %v657_v38 = vadd.f32 %v656_v37, %v567_v36  ;;  %v6910_v36 = vld [vmem:[%s9775_s1 + $0x128] sm:$0xf0]  ;;  %v6909_v37 = vld [vmem:[%s9775_s1 + $0x124] sm:$0xf] }
  0xc0   :  { %v5254_v44 = vor.u32 %v6910_v36, %v5253_v34  ;;  %v5297_v34 = vld [vmem:[%s9775_s1 + $0x170] sm:$0xf]  ;;  %v6920_v36 = vld [vmem:[%s9775_s1 + $0x178] sm:$0xf0] }
  0xc1   :  { %v7694_v41 = vadd.f32 %v745_v14, %v657_v38  ;;  %v5246_v14 = vor.u32 %v6906_v5, %v5243_v6  ;;  %v5255_v38 = vld [vmem:[%s9775_s1 + $0x12c] sm:$0xf0]  ;;  %v6912_v5 = vld [vmem:[%s9775_s1 + $0x13c] sm:$0xf]  ;;  %v5267_v6 = vld [vmem:[%s9775_s1 + $0x144] sm:$0xf0] }
  0xc2   :  { %v5258_v45 = vor.u32 %v6909_v37, %v5255_v38  ;;  %v6923_v38 = vld [vmem:[%s9776_s2 + $0x10] sm:$0xff] }
  0xc3   :  { %v819_v46 = vpack.c.bf16 %v7694_v41, %v7684_v32  ;;  %5382 = vmatmul.msk.bf16.gmra.mxu2 %vm502_vm0, %v5250_v40  ;;  %v7717_v49 = vpop.f32.mrf.mxu3  ;;  %v5597_v40 = vld [vmem:[%s9775_s1 + $0x2a0] sm:$0xf]  ;;  %v5485_v32 = vld [vmem:[%s9775_s1 + $0x1b8] sm:$0xf]  ;;  %v6933_v41 = vld [vmem:[%s9775_s1 + $0x1c0] sm:$0xf0] }
  0xc5   :  { %v570_v52 = vpop.f32.mrf.mxu0 }
  0xc6   :  { %v659_v53 = vpop.f32.mrf.mxu1  ;;  %v753_v56 = vpop.f32.mrf.mxu2 }
  0xc7   :  { %v660_v55 = vadd.f32 %v659_v53, %v570_v52 }
  0xc8   :  { %609 = vmatmul.bf16.gmra.mxu0 %v5230_v50  ;;  %1254 = vmatmul.bf16.gmra.mxu3 %v5574_v54  ;;  %v5598_v50 = vor.u32 %v6962_v42, %v5597_v40  ;;  %v5285_v54 = vld [vmem:[%s9775_s1 + $0x158] sm:$0xf] }
  0xc9   :  { %v7719_v57 = vadd.f32 %v748_v31, %v660_v55  ;;  %698 = vmatmul.bf16.gmra.mxu1 %v5234_v51  ;;  %v5274_v31 = vor.u32 %v6914_v25, %v5273_v23  ;;  %v6917_v55 = vld [vmem:[%s9775_s1 + $0x160] sm:$0xf0] }
  0xcb   :  { %v7727_v60 = vpop.f32.mrf.mxu3 }
  0xcd   :  { %v572_v61 = vpop.f32.mrf.mxu0 }
  0xce   :  { %v661_v62 = vpop.f32.mrf.mxu1  ;;  %v755_v0 = vpop.f32.mrf.mxu2 }
  0xcf   :  { %v662_v63 = vadd.f32 %v661_v62, %v572_v61 }
  0xd1   :  { %v7729_v2 = vadd.f32 %v750_v39, %v662_v63  ;;  %v5286_v63 = vor.u32 %v6917_v55, %v5285_v54  ;;  %v6915_v54 = vld [vmem:[%s9775_s1 + $0x154] sm:$0xf]  ;;  %v5279_v55 = vld [vmem:[%s9775_s1 + $0x15c] sm:$0xf0] }
  0xd3   :  { %v820_v8 = vpack.c.bf16 %v7729_v2, %v7719_v57  ;;  %5383 = vmatmul.msk.bf16.gmra.mxu2 %vm502_vm0, %v5262_v1  ;;  %v7752_v12 = vpop.f32.mrf.mxu3  ;;  %v5265_v1 = vld [vmem:[%s9775_s1 + $0x138] sm:$0xf]  ;;  %v5497_v57 = vld [vmem:[%s9775_s1 + $0x1d0] sm:$0xf]  ;;  %v6936_v2 = vld [vmem:[%s9775_s1 + $0x1d8] sm:$0xf0] }
  0xd5   :  { %v575_v15 = vpop.f32.mrf.mxu0 }
  0xd6   :  { %v664_v17 = vpop.f32.mrf.mxu1  ;;  %v758_v20 = vpop.f32.mrf.mxu2 }
  0xd7   :  { %v665_v19 = vadd.f32 %v664_v17, %v575_v15  ;;  %v1680_v15 = vpack.c.b16 %v1675_v9, %v1675_v9 }
  0xd8   :  { %614 = vmatmul.bf16.gmra.mxu0 %v5242_v13  ;;  %1259 = vmatmul.bf16.gmra.mxu3 %v5586_v18  ;;  %v5609_v13 = vld [vmem:[%s9775_s1 + $0x2b8] sm:$0xf]  ;;  %v5266_v18 = vor.u32 %v6913_v4, %v5265_v1  ;;  %v5282_v1 = vor.u32 %v6915_v54, %v5279_v55 }
  0xd9   :  { %v7754_v22 = vadd.f32 %v753_v56, %v665_v19  ;;  %703 = vmatmul.bf16.gmra.mxu1 %v5246_v14  ;;  %v6965_v14 = vld [vmem:[%s9775_s1 + $0x2c0] sm:$0xf0]  ;;  %v5270_v19 = vor.u32 %v6912_v5, %v5267_v6 }
  0xda   :  { %v5610_v25 = vor.u32 %v6965_v14, %v5609_v13 }
  0xdb   :  { %v7762_v26 = vpop.f32.mrf.mxu3 }
  0xdd   :  { %v577_v27 = vpop.f32.mrf.mxu0 }
  0xde   :  { %v666_v28 = vpop.f32.mrf.mxu1  ;;  %v760_v30 = vpop.f32.mrf.mxu2 }
  0xdf   :  { %v667_v29 = vadd.f32 %v666_v28, %v577_v27  ;;  %v1734_v27 = vsel %vm1565_vm1, %v1680_v15, 0  ;;  %v6925_v15 = vld [vmem:[%s9775_s1 + $0x184] sm:$0xf] }
  0xe0   :  { %1739 = vmatpush.bf16.msrb.mxu3 %v1734_v27 }
  0xe1   :  { %v7764_v33 = vadd.f32 %v755_v0, %v667_v29 }
  0xe3   :  { %v821_v39 = vpack.c.bf16 %v7764_v33, %v7754_v22  ;;  %5384 = vmatmul.msk.bf16.gmra.mxu2 %vm502_vm0, %v5274_v31  ;;  %v7787_v43 = vpop.f32.mrf.mxu3  ;;  %v6924_v31 = vld [vmem:[%s9776_s2 + $0x18] sm:$0xff]  ;;  %v5509_v22 = vld [vmem:[%s9775_s1 + $0x1e8] sm:$0xf]  ;;  %v6939_v33 = vld [vmem:[%s9775_s1 + $0x1f0] sm:$0xf0] }
  0xe4   :  { %1740 = vmatpush.bf16.msrb.mxu3 %v6924_v31  ;;  %v5289_v31 = vld [vmem:[%s9775_s1 + $0x168] sm:$0xf] }
  0xe5   :  { %v580_v47 = vpop.f32.mrf.mxu0 }
  0xe6   :  { %v669_v48 = vpop.f32.mrf.mxu1  ;;  %v763_v52 = vpop.f32.mrf.mxu2 }
  0xe7   :  { %v670_v51 = vadd.f32 %v669_v48, %v580_v47  ;;  %v5298_v47 = vor.u32 %v6920_v36, %v5297_v34  ;;  %v6919_v34 = vld [vmem:[%s9775_s1 + $0x170] sm:$0xf0]  ;;  %v6918_v36 = vld [vmem:[%s9775_s1 + $0x16c] sm:$0xf] }
  0xe8   :  { %619 = vmatmul.bf16.gmra.mxu0 %v5254_v44  ;;  %1264 = vmatmul.bf16.gmra.mxu3 %v5598_v50  ;;  %v5277_v50 = vld [vmem:[%s9775_s1 + $0x150] sm:$0xf] }
  0xe9   :  { %v7789_v53 = vadd.f32 %v758_v20, %v670_v51  ;;  %708 = vmatmul.bf16.gmra.mxu1 %v5258_v45  ;;  %1741 = vmatpush.bf16.msrb.mxu3 %v6923_v38  ;;  %v6922_v51 = vld [vmem:[%s9776_s2 + $0x8] sm:$0xff]  ;;  %v5291_v38 = vld [vmem:[%s9775_s1 + $0x174] sm:$0xf0] }
  0xeb   :  { %v7797_v56 = vpop.f32.mrf.mxu3 }
  0xed   :  { %v582_v58 = vpop.f32.mrf.mxu0  ;;  %1742 = vmatpush.bf16.msrb.mxu3 %v6922_v51 }
  0xee   :  { %v671_v59 = vpop.f32.mrf.mxu1  ;;  %v765_v62 = vpop.f32.mrf.mxu2 }
  0xef   :  { %v672_v61 = vadd.f32 %v671_v59, %v582_v58  ;;  %v5621_v59 = vld [vmem:[%s9775_s1 + $0x2d0] sm:$0xf] }
  0xf1   :  { %v7799_v0 = vadd.f32 %v760_v30, %v672_v61  ;;  %v6968_v61 = vld [vmem:[%s9775_s1 + $0x2d8] sm:$0xf0]  ;;  %1743 = vmatpush.bf16.msrb.mxu3 %v6921_v3 }
  0xf2   :  { %v5622_v6 = vor.u32 %v6968_v61, %v5621_v59 }
  0xf3   :  { %v822_v11 = vpack.c.bf16 %v7799_v0, %v7789_v53  ;;  %5385 = vmatmul.msk.bf16.gmra.mxu2 %vm502_vm0, %v5286_v63  ;;  %v7825_v17 = vpop.f32.mrf.mxu3  ;;  %v5521_v53 = vld [vmem:[%s9775_s1 + $0x200] sm:$0xf]  ;;  %v6942_v0 = vld [vmem:[%s9775_s1 + $0x208] sm:$0xf0] }
  0xf5   :  { %v585_v20 = vpop.f32.mrf.mxu0 }
  0xf6   :  { %v674_v23 = vpop.f32.mrf.mxu1  ;;  %v768_v29 = vpop.f32.mrf.mxu2 }
  0xf7   :  { %v675_v28 = vadd.f32 %v674_v23, %v585_v20 }
  0xf8   :  { %624 = vmatmul.bf16.gmra.mxu0 %v5266_v18  ;;  %1269 = vmatmul.bf16.gmra.mxu3 %v5610_v25  ;;  %v5455_v18 = vld [vmem:[%s9775_s1 + $0x18c] sm:$0xf0] }
  0xf9   :  { %v7828_v30 = vadd.f32 %v763_v52, %v675_v28  ;;  %713 = vmatmul.bf16.gmra.mxu1 %v5270_v19  ;;  %v6916_v52 = vld [vmem:[%s9775_s1 + $0x158] sm:$0xf0]  ;;  %v5458_v28 = vor.u32 %v6925_v15, %v5455_v18  ;;  %v5461_v18 = vld [vmem:[%s9775_s1 + $0x188] sm:$0xf] }
  0xfa   :  { %v5278_v63 = vor.u32 %v6916_v52, %v5277_v50  ;;  %v5294_v50 = vor.u32 %v6918_v36, %v5291_v38 }
  0xfb   :  { %v7839_v37 = vpop.f32.mrf.mxu3 }
  0xfd   :  { %v587_v40 = vpop.f32.mrf.mxu0 }
  0xfe   :  { %v676_v42 = vpop.f32.mrf.mxu1  ;;  %v770_v45 = vpop.f32.mrf.mxu2 }
  0xff   :  { %v677_v44 = vadd.f32 %v676_v42, %v587_v40  ;;  %v5633_v42 = vld [vmem:[%s9775_s1 + $0x2e8] sm:$0xf] }
 0x101   :  { %v7844_v48 = vadd.f32 %v765_v62, %v677_v44  ;;  %v6971_v44 = vld [vmem:[%s9775_s1 + $0x2f0] sm:$0xf0] }
 0x102   :  { %v5634_v54 = vor.u32 %v6971_v44, %v5633_v42  ;;  %v6931_v42 = vld [vmem:[%s9775_s1 + $0x1b4] sm:$0xf]  ;;  %v5479_v44 = vld [vmem:[%s9775_s1 + $0x1bc] sm:$0xf0] }
 0x103   :  { %v823_v58 = vpack.c.bf16 %v7844_v48, %v7828_v30  ;;  %5386 = vmatmul.msk.bf16.gmra.mxu2 %vm502_vm0, %v5298_v47  ;;  %v7870_v62 = vpop.f32.mrf.mxu3  ;;  %v5290_v47 = vor.u32 %v6919_v34, %v5289_v31  ;;  %v5533_v30 = vld [vmem:[%s9775_s1 + $0x218] sm:$0xf]  ;;  %v6945_v48 = vld [vmem:[%s9775_s1 + $0x220] sm:$0xf0] }
 0x105   :  { %v590_v4 = vpop.f32.mrf.mxu0 }
 0x106   :  { %v679_v5 = vpop.f32.mrf.mxu1  ;;  %v773_v13 = vpop.f32.mrf.mxu2 }
 0x107   :  { %v680_v9 = vadd.f32 %v679_v5, %v590_v4 }
 0x108   :  { %629 = vmatmul.bf16.gmra.mxu0 %v5278_v63  ;;  %1274 = vmatmul.bf16.gmra.mxu3 %v5622_v6  ;;  %v6928_v63 = vld [vmem:[%s9775_s1 + $0x19c] sm:$0xf] }
 0x109   :  { %v7875_v14 = vadd.f32 %v768_v29, %v680_v9  ;;  %718 = vmatmul.bf16.gmra.mxu1 %v5282_v1  ;;  %v5467_v1 = vld [vmem:[%s9775_s1 + $0x1a4] sm:$0xf0] }
 0x10a   :  { %v5470_v15 = vor.u32 %v6928_v63, %v5467_v1  ;;  %v5474_v63 = vor.u32 %v6930_v16, %v5473_v7  ;;  %v6937_v16 = vld [vmem:[%s9775_s1 + $0x1e4] sm:$0xf] }
 0x10b   :  { %v7883_v19 = vpop.f32.mrf.mxu3 }
 0x10d   :  { %v592_v20 = vpop.f32.mrf.mxu0 }
 0x10e   :  { %v681_v23 = vpop.f32.mrf.mxu1  ;;  %v775_v27 = vpop.f32.mrf.mxu2 }
 0x10f   :  { %v682_v25 = vadd.f32 %v681_v23, %v592_v20  ;;  %v6927_v20 = vld [vmem:[%s9775_s1 + $0x190] sm:$0xf0] }
 0x111   :  { %v7885_v29 = vadd.f32 %v770_v45, %v682_v25  ;;  %v5462_v25 = vor.u32 %v6927_v20, %v5461_v18  ;;  %v5491_v18 = vld [vmem:[%s9775_s1 + $0x1d4] sm:$0xf0] }
 0x113   :  { %v824_v40 = vpack.c.bf16 %v7885_v29, %v7875_v14  ;;  %1293 = vmatmul.bf16.vlgmr.msrb.gmra.mxu2 %v5458_v28  ;;  %v7907_v45 = vpop.f32.mrf.mxu3 }
 0x115   :  { %v595_v51 = vpop.f32.mrf.mxu0 }
 0x116   :  { %v684_v52 = vpop.f32.mrf.mxu1  ;;  %v778_v59 = vpop.f32.mrf.mxu2 }
 0x117   :  { %v685_v55 = vadd.f32 %v684_v52, %v595_v51 }
 0x118   :  { %634 = vmatmul.bf16.gmra.mxu0 %v5290_v47  ;;  %1279 = vmatmul.bf16.gmra.mxu3 %v5634_v54  ;;  %v5482_v54 = vor.u32 %v6931_v42, %v5479_v44  ;;  %v5486_v44 = vor.u32 %v6933_v41, %v5485_v32 }
 0x119   :  { %v7909_v61 = vadd.f32 %v773_v13, %v685_v55  ;;  %723 = vmatmul.bf16.gmra.mxu1 %v5294_v50 }
 0x11b   :  { %v7917_v5 = vpop.f32.mrf.mxu3 }
 0x11d   :  { %v597_v3 = vpop.f32.mrf.mxu0 }
 0x11e   :  { %v686_v4 = vpop.f32.mrf.mxu1  ;;  %v780_v9 = vpop.f32.mrf.mxu2 }
 0x11f   :  { %v687_v6 = vadd.f32 %v686_v4, %v597_v3 }
 0x121   :  { %v7919_v13 = vadd.f32 %v775_v27, %v687_v6 }
 0x123   :  { %v825_v23 = vpack.c.bf16 %v7919_v13, %v7909_v61  ;;  %1298 = vmatmul.bf16.gmra.mxu2 %v5470_v15  ;;  %v7929_v27 = vpop.f32.mrf.mxu3  ;;  %v6934_v15 = vld [vmem:[%s9775_s1 + $0x1cc] sm:$0xf]  ;;  %v5557_v61 = vld [vmem:[%s9775_s1 + $0x248] sm:$0xf]  ;;  %v6951_v13 = vld [vmem:[%s9775_s1 + $0x250] sm:$0xf0] }
 0x125   :  { %v600_v28 = vpop.f32.mrf.mxu0 }
 0x126   :  { %v689_v31 = vpop.f32.mrf.mxu1  ;;  %v783_v36 = vpop.f32.mrf.mxu2 }
 0x127   :  { %v690_v34 = vadd.f32 %v689_v31, %v600_v28 }
 0x128   :  { %5643 = vmatmul.msk.bf16.vlgmr.msrb.gmra.mxu0 %vm502_vm0, %v5462_v25  ;;  %5716 = vmatmul.msk.bf16.vlgmr.msrb.gmra.mxu3 %vm1516_vm2, %v818_v21 }
 0x129   :  { %v7931_v38 = vadd.f32 %v778_v59, %v690_v34 }
 0x12b   :  { %v7952_v21 = vpop.f32.mrf.mxu3 }
 0x12d   :  { %v602_v47 = vpop.f32.mrf.mxu0 }
 0x12e   :  { %v691_v50 = vpop.f32.mrf.mxu1  ;;  %v785_v52 = vpop.f32.mrf.mxu2 }
 0x12f   :  { %v692_v51 = vadd.f32 %v691_v50, %v602_v47 }
 0x131   :  { %v7944_v55 = vadd.f32 %v780_v9, %v692_v51 }
 0x133   :  { %v826_v59 = vpack.c.bf16 %v7944_v55, %v7931_v38  ;;  %1303 = vmatmul.bf16.gmra.mxu2 %v5482_v54  ;;  %v7969_v20 = vpop.f32.mrf.mxu3 }
 0x135   :  { %v605_v1 = vpop.f32.mrf.mxu0 }
 0x136   :  { %v694_v3 = vpop.f32.mrf.mxu1  ;;  %v788_v6 = vpop.f32.mrf.mxu2 }
 0x137   :  { %v695_v4 = vadd.f32 %v694_v3, %v605_v1 }
 0x138   :  { %5644 = vmatmul.msk.bf16.gmra.mxu0 %vm502_vm0, %v5474_v63  ;;  %5717 = vmatmul.msk.bf16.gmra.mxu3 %vm1516_vm2, %v819_v46  ;;  %v5503_v63 = vld [vmem:[%s9775_s1 + $0x1ec] sm:$0xf0] }
 0x139   :  { %v7956_v9 = vadd.f32 %v783_v36, %v695_v4  ;;  %v5494_v36 = vor.u32 %v6934_v15, %v5491_v18  ;;  %v5506_v15 = vor.u32 %v6937_v16, %v5503_v63 }
 0x13b   :  { %v7981_v51 = vpop.f32.mrf.mxu3 }
 0x13d   :  { %v607_v25 = vpop.f32.mrf.mxu0 }
 0x13e   :  { %v696_v28 = vpop.f32.mrf.mxu1  ;;  %v790_v34 = vpop.f32.mrf.mxu2 }
 0x13f   :  { %v697_v31 = vadd.f32 %v696_v28, %v607_v25  ;;  %v5498_v28 = vor.u32 %v6936_v2, %v5497_v57 }
 0x141   :  { %v7971_v42 = vadd.f32 %v785_v52, %v697_v31 }
 0x143   :  { %v827_v46 = vpack.c.bf16 %v7971_v42, %v7956_v9  ;;  %1308 = vmatmul.bf16.gmra.mxu2 %v5494_v36  ;;  %v7996_v18 = vpop.f32.mrf.mxu3 }
 0x145   :  { %v610_v47 = vpop.f32.mrf.mxu0 }
 0x146   :  { %v699_v50 = vpop.f32.mrf.mxu1  ;;  %v793_v52 = vpop.f32.mrf.mxu2 }
 0x147   :  { %v700_v54 = vadd.f32 %v699_v50, %v610_v47  ;;  %v6940_v47 = vld [vmem:[%s9775_s1 + $0x1fc] sm:$0xf]  ;;  %v5515_v50 = vld [vmem:[%s9775_s1 + $0x204] sm:$0xf0] }
 0x148   :  { %5645 = vmatmul.msk.bf16.gmra.mxu0 %vm502_vm0, %v5486_v44  ;;  %5718 = vmatmul.msk.bf16.gmra.mxu3 %vm1516_vm2, %v820_v8 }
 0x149   :  { %v7983_v7 = vadd.f32 %v788_v6, %v700_v54 }
 0x14d   :  { %v612_v1 = vpop.f32.mrf.mxu0 }
 0x14e   :  { %v701_v3 = vpop.f32.mrf.mxu1  ;;  %v795_v6 = vpop.f32.mrf.mxu2 }
 0x14f   :  { %v702_v4 = vadd.f32 %v701_v3, %v612_v1  ;;  %v5518_v1 = vor.u32 %v6940_v47, %v5515_v50 }
 0x151   :  { %v7998_v25 = vadd.f32 %v790_v34, %v702_v4  ;;  %v8015_v34 = vpop.f32.mrf.mxu3 }
 0x153   :  { %v828_v8 = vpack.c.bf16 %v7998_v25, %v7983_v7  ;;  %1313 = vmatmul.bf16.gmra.mxu2 %v5506_v15  ;;  %v5510_v15 = vor.u32 %v6939_v33, %v5509_v22  ;;  %v5522_v22 = vor.u32 %v6942_v0, %v5521_v53  ;;  %v5667_v33 = vld [vmem:[%s9776_s2 + $0x44] sm:$0xf]  ;;  %v6960_v25 = vld [vmem:[%s9775_s1 + $0x298] sm:$0xf0] }
 0x155   :  { %v615_v31 = vpop.f32.mrf.mxu0 }
 0x156   :  { %v704_v36 = vpop.f32.mrf.mxu1  ;;  %v798_v41 = vpop.f32.mrf.mxu2 }
 0x157   :  { %v705_v32 = vadd.f32 %v704_v36, %v615_v31  ;;  %v6943_v36 = vld [vmem:[%s9775_s1 + $0x214] sm:$0xf] }
 0x158   :  { %5646 = vmatmul.msk.bf16.gmra.mxu0 %vm502_vm0, %v5498_v28  ;;  %5719 = vmatmul.msk.bf16.gmra.mxu3 %vm1516_vm2, %v821_v39 }
 0x159   :  { %v8008_v44 = vadd.f32 %v793_v52, %v705_v32  ;;  %v8033_v4 = vpop.f32.mrf.mxu3  ;;  %v5527_v32 = vld [vmem:[%s9775_s1 + $0x21c] sm:$0xf0] }
 0x15d   :  { %v617_v54 = vpop.f32.mrf.mxu0 }
 0x15e   :  { %v706_v52 = vpop.f32.mrf.mxu1  ;;  %v800_v63 = vpop.f32.mrf.mxu2 }
 0x15f   :  { %v707_v16 = vadd.f32 %v706_v52, %v617_v54 }
 0x161   :  { %v8023_v3 = vadd.f32 %v795_v6, %v707_v16  ;;  %v8048_v54 = vpop.f32.mrf.mxu3  ;;  %v5530_v16 = vor.u32 %v6943_v36, %v5527_v32 }
 0x163   :  { %v829_v39 = vpack.c.bf16 %v8023_v3, %v8008_v44  ;;  %1318 = vmatmul.bf16.gmra.mxu2 %v5518_v1 }
 0x165   :  { %v620_v57 = vpop.f32.mrf.mxu0 }
 0x166   :  { %v709_v2 = vpop.f32.mrf.mxu1  ;;  %v803_v6 = vpop.f32.mrf.mxu2 }
 0x167   :  { %v710_v28 = vadd.f32 %v709_v2, %v620_v57  ;;  %v1506_v57 = vunpack.c.l.b16 %v5667_v33 }
 0x168   :  { %5647 = vmatmul.msk.bf16.gmra.mxu0 %vm502_vm0, %v5510_v15  ;;  %5720 = vmatmul.msk.bf16.gmra.mxu3 %vm1516_vm2, %v822_v11 }
 0x169   :  { %v8035_v31 = vadd.f32 %v798_v41, %v710_v28  ;;  %v1511_v36 = vpack.c.b16 %v1506_v57, %v1506_v57  ;;  %v8063_v32 = vpop.f32.mrf.mxu3  ;;  %v6976_v57 = vld [vmem:[%s9776_s2 + $0x3c] sm:$0xff] }
 0x16d   :  { %v622_v47 = vpop.f32.mrf.mxu0 }
 0x16e   :  { %v711_v50 = vpop.f32.mrf.mxu1  ;;  %v805_v52 = vpop.f32.mrf.mxu2 }
 0x16f   :  { %v712_v41 = vadd.f32 %v711_v50, %v622_v47  ;;  %v1567_v50 = vsel %vm1565_vm1, %v1511_v36, 0 }
 0x170   :  { %1572 = vmatpush.bf16.msrb.mxu1 %v1567_v50 }
 0x171   :  { %v8050_v1 = vadd.f32 %v800_v63, %v712_v41  ;;  %v6946_v41 = vld [vmem:[%s9775_s1 + $0x22c] sm:$0xf] }
 0x173   :  { %v830_v11 = vpack.c.bf16 %v8050_v1, %v8035_v31  ;;  %1323 = vmatmul.bf16.gmra.mxu2 %v5530_v16  ;;  %v5539_v16 = vld [vmem:[%s9775_s1 + $0x234] sm:$0xf0] }
 0x174   :  { %v5542_v33 = vor.u32 %v6946_v41, %v5539_v16  ;;  %1573 = vmatpush.bf16.msrb.mxu1 %v6976_v57  ;;  %v6975_v16 = vld [vmem:[%s9776_s2 + $0x34] sm:$0xff]  ;;  %v6973_v57 = vld [vmem:[%s9776_s2 + $0x24] sm:$0xff] }
 0x175   :  { %v625_v15 = vpop.f32.mrf.mxu0 }
 0x176   :  { %v714_v63 = vpop.f32.mrf.mxu1  ;;  %v808_v28 = vpop.f32.mrf.mxu2 }
 0x177   :  { %v715_v2 = vadd.f32 %v714_v63, %v625_v15 }
 0x178   :  { %5648 = vmatmul.msk.bf16.gmra.mxu0 %vm502_vm0, %v5522_v22  ;;  %5721 = vmatmul.msk.bf16.gmra.mxu3 %vm1516_vm2, %v823_v58  ;;  %v8087_v58 = vpop.f32.mrf.mxu3 }
 0x179   :  { %v8065_v47 = vadd.f32 %v803_v6, %v715_v2  ;;  %1574 = vmatpush.bf16.msrb.mxu1 %v6975_v16 }
 0x17d   :  { %v627_v6 = vpop.f32.mrf.mxu0 }
 0x17e   :  { %v716_v53 = vpop.f32.mrf.mxu1  ;;  %v810_v22 = vpop.f32.mrf.mxu2 }
 0x17f   :  { %v717_v0 = vadd.f32 %v716_v53, %v627_v6  ;;  %v6974_v53 = vld [vmem:[%s9776_s2 + $0x2c] sm:$0xff] }
 0x180   :  { %1575 = vmatpush.bf16.msrb.mxu1 %v6974_v53 }
 0x181   :  { %v8079_v15 = vadd.f32 %v805_v52, %v717_v0  ;;  %v5534_v52 = vor.u32 %v6945_v48, %v5533_v30  ;;  %v6949_v0 = vld [vmem:[%s9775_s1 + $0x244] sm:$0xf] }
 0x183   :  { %v831_v63 = vpack.c.bf16 %v8079_v15, %v8065_v47  ;;  %1328 = vmatmul.bf16.gmra.mxu2 %v5542_v33  ;;  %v8113_v33 = vpop.f32.mrf.mxu3 }
 0x184   :  { %1576 = vmatpush.bf16.msrb.mxu1 %v6973_v57 }
 0x185   :  { %v630_v2 = vpop.f32.mrf.mxu0 }
 0x186   :  { %v719_v36 = vpop.f32.mrf.mxu1  ;;  %v813_v41 = vpop.f32.mrf.mxu2 }
 0x187   :  { %v720_v50 = vadd.f32 %v719_v36, %v630_v2  ;;  %v5545_v2 = vld [vmem:[%s9775_s1 + $0x230] sm:$0xf]  ;;  %v6948_v36 = vld [vmem:[%s9775_s1 + $0x238] sm:$0xf0] }
 0x188   :  { %5649 = vmatmul.msk.bf16.gmra.mxu0 %vm502_vm0, %v5534_v52  ;;  %5722 = vmatmul.msk.bf16.gmra.mxu3 %vm1516_vm2, %v824_v40 }
 0x189   :  { %v8097_v6 = vadd.f32 %v808_v28, %v720_v50  ;;  %v5551_v28 = vld [vmem:[%s9775_s1 + $0x24c] sm:$0xf0]  ;;  %v7192_v50 = vld [vmem:[%s9793_s23 + $0x88] sm:$0xff] }
 0x18a   :  { %v5554_v40 = vor.u32 %v6949_v0, %v5551_v28  ;;  %2362 = vmatpush.bf16.msra.mxu1 %v7192_v50  ;;  %v7193_v28 = vld [vmem:[%s9793_s23 + $0x80] sm:$0xff] }
 0x18d   :  { %v632_v30 = vpop.f32.mrf.mxu0 }
 0x18e   :  { %v721_v48 = vpop.f32.mrf.mxu1  ;;  %v815_v29 = vpop.f32.mrf.mxu2  ;;  %2363 = vmatpush.bf16.msra.mxu1 %v7193_v28 }
 0x18f   :  { %v722_v14 = vadd.f32 %v721_v48, %v632_v30 }
 0x191   :  { %v8118_v52 = vadd.f32 %v810_v22, %v722_v14  ;;  %v5546_v22 = vor.u32 %v6948_v36, %v5545_v2  ;;  %v8134_v14 = vpop.f32.mrf.mxu3  ;;  %v5563_v2 = vld [vmem:[%s9775_s1 + $0x264] sm:$0xf0] }
 0x193   :  { %1333 = vmatmul.bf16.gmra.mxu2 %v5554_v40  ;;  %v6952_v40 = vld [vmem:[%s9775_s1 + $0x25c] sm:$0xf] }
 0x195   :  { %v635_v53 = vpop.f32.mrf.mxu0 }
 0x196   :  { %v724_v0 = vpop.f32.mrf.mxu1  ;;  %v1294_v48 = vpop.f32.mrf.mxu2 }
 0x197   :  { %v725_v30 = vadd.f32 %v724_v0, %v635_v53  ;;  %v5566_v0 = vor.u32 %v6952_v40, %v5563_v2  ;;  %v6955_v2 = vld [vmem:[%s9775_s1 + $0x274] sm:$0xf] }
 0x198   :  { %5650 = vmatmul.msk.bf16.gmra.mxu0 %vm502_vm0, %v5546_v22  ;;  %5723 = vmatmul.msk.bf16.gmra.mxu3 %vm1516_vm2, %v825_v23 }
 0x199   :  { %v8136_v57 = vadd.f32 %v813_v41, %v725_v30  ;;  %v8151_v22 = vpop.f32.mrf.mxu3  ;;  %v5558_v30 = vor.u32 %v6951_v13, %v5557_v61 }
 0x19d   :  { %v637_v36 = vpop.f32.mrf.mxu0 }
 0x19e   :  { %v726_v50 = vpop.f32.mrf.mxu1  ;;  %v1296_v41 = vpop.f32.mrf.mxu2 }
 0x19f   :  { %v727_v53 = vadd.f32 %v726_v50, %v637_v36 }
 0x1a1   :  { %v8149_v28 = vadd.f32 %v815_v29, %v727_v53  ;;  %v1295_v29 = vadd.f32 %v1294_v48, %v7657_v10  ;;  %v8167_v40 = vpop.f32.mrf.mxu3  ;;  %v5575_v53 = vld [vmem:[%s9775_s1 + $0x27c] sm:$0xf0]  ;;  %v6954_v48 = vld [vmem:[%s9775_s1 + $0x268] sm:$0xf0] }
 0x1a2   :  { %v5578_v55 = vor.u32 %v6955_v2, %v5575_v53  ;;  %v5569_v10 = vld [vmem:[%s9775_s1 + $0x260] sm:$0xf]  ;;  %v5587_v2 = vld [vmem:[%s9775_s1 + $0x294] sm:$0xf0] }
 0x1a3   :  { %1338 = vmatmul.bf16.gmra.mxu2 %v5566_v0  ;;  %v1297_v0 = vadd.f32 %v1296_v41, %v7682_v24  ;;  %v5570_v23 = vor.u32 %v6954_v48, %v5569_v10  ;;  %v6961_v10 = vld [vmem:[%s9775_s1 + $0x2a4] sm:$0xf]  ;;  %v5599_v48 = vld [vmem:[%s9775_s1 + $0x2ac] sm:$0xf0] }
 0x1a5   :  { %v1383_v36 = vpop.f32.mrf.mxu0 }
 0x1a6   :  { %v1299_v50 = vpop.f32.mrf.mxu2  ;;  %v1384_v13 = vadd.f32 %v1383_v36, %v1295_v29  ;;  %v6958_v29 = vld [vmem:[%s9775_s1 + $0x28c] sm:$0xf] }
 0x1a7   :  { %v1300_v36 = vadd.f32 %v1299_v50, %v7692_v35  ;;  %v5581_v35 = vld [vmem:[%s9775_s1 + $0x278] sm:$0xf] }
 0x1a8   :  { %5651 = vmatmul.msk.bf16.gmra.mxu0 %vm502_vm0, %v5558_v30  ;;  %5724 = vmatmul.msk.bf16.gmra.mxu3 %vm1516_vm2, %v826_v59 }
 0x1a9   :  { %v8183_v16 = vpop.f32.mrf.mxu3 }
 0x1ad   :  { %v1385_v61 = vpop.f32.mrf.mxu0 }
 0x1ae   :  { %v1386_v30 = vadd.f32 %v1385_v61, %v1297_v0  ;;  %v1301_v38 = vpop.f32.mrf.mxu2 }
 0x1af   :  { %v1302_v53 = vadd.f32 %v1301_v38, %v7717_v49 }
 0x1b0   :  { %v1463_v59 = vpack.c.bf16 %v1386_v30, %v1384_v13  ;;  %v5590_v30 = vor.u32 %v6958_v29, %v5587_v2 }
 0x1b1   :  { %v8198_v9 = vpop.f32.mrf.mxu3 }
 0x1b2   :  { %5684 = vmatmul.msk.bf16.vlgmr.msrb.gmra.mxu1 %vm1516_vm2, %v1463_v59 }
 0x1b3   :  { %1343 = vmatmul.bf16.gmra.mxu2 %v5578_v55 }
 0x1b5   :  { %v1388_v24 = vpop.f32.mrf.mxu0 }
 0x1b6   :  { %v1304_v41 = vpop.f32.mrf.mxu2  ;;  %v1389_v61 = vadd.f32 %v1388_v24, %v1300_v36 }
 0x1b7   :  { %v1305_v59 = vadd.f32 %v1304_v41, %v7727_v60  ;;  %v5593_v60 = vld [vmem:[%s9775_s1 + $0x290] sm:$0xf] }
 0x1b8   :  { %5652 = vmatmul.msk.bf16.gmra.mxu0 %vm502_vm0, %v5570_v23  ;;  %5725 = vmatmul.msk.bf16.gmra.mxu3 %vm1516_vm2, %v827_v46  ;;  %v6957_v46 = vld [vmem:[%s9775_s1 + $0x280] sm:$0xf0] }
 0x1b9   :  { %v5582_v49 = vor.u32 %v6957_v46, %v5581_v35  ;;  %v8208_v55 = vpop.f32.mrf.mxu3 }
 0x1bd   :  { %v1390_v0 = vpop.f32.mrf.mxu0 }
 0x1be   :  { %v1391_v23 = vadd.f32 %v1390_v0, %v1302_v53  ;;  %v1306_v13 = vpop.f32.mrf.mxu2  ;;  %v5602_v0 = vor.u32 %v6961_v10, %v5599_v48 }
 0x1bf   :  { %v1307_v24 = vadd.f32 %v1306_v13, %v7752_v12  ;;  %v5594_v12 = vor.u32 %v6960_v25, %v5593_v60  ;;  %v6964_v13 = vld [vmem:[%s9775_s1 + $0x2bc] sm:$0xf] }
 0x1c0   :  { %v1464_v42 = vpack.c.bf16 %v1391_v23, %v1389_v61 }
 0x1c2   :  { %5685 = vmatmul.msk.bf16.gmra.mxu1 %vm1516_vm2, %v1464_v42 }
 0x1c3   :  { %1348 = vmatmul.bf16.gmra.mxu2 %v5590_v30  ;;  %v5611_v30 = vld [vmem:[%s9775_s1 + $0x2c4] sm:$0xf0] }
 0x1c4   :  { %v5614_v3 = vor.u32 %v6964_v13, %v5611_v30  ;;  %v6970_v13 = vld [vmem:[%s9775_s1 + $0x2ec] sm:$0xf]  ;;  %v5635_v30 = vld [vmem:[%s9775_s1 + $0x2f4] sm:$0xf0] }
 0x1c5   :  { %v1393_v50 = vpop.f32.mrf.mxu0  ;;  %v5638_v15 = vor.u32 %v6970_v13, %v5635_v30 }
 0x1c6   :  { %v1309_v38 = vpop.f32.mrf.mxu2  ;;  %v1394_v29 = vadd.f32 %v1393_v50, %v1305_v59 }
 0x1c7   :  { %v1310_v23 = vadd.f32 %v1309_v38, %v7762_v26  ;;  %v5605_v26 = vld [vmem:[%s9775_s1 + $0x2a8] sm:$0xf]  ;;  %v6963_v38 = vld [vmem:[%s9775_s1 + $0x2b0] sm:$0xf0] }
 0x1c8   :  { %5653 = vmatmul.msk.bf16.gmra.mxu0 %vm502_vm0, %v5582_v49  ;;  %5726 = vmatmul.msk.bf16.gmra.mxu3 %vm1516_vm2, %v828_v8  ;;  %v8229_v8 = vpop.f32.mrf.mxu3 }
 0x1cd   :  { %v1395_v36 = vpop.f32.mrf.mxu0 }
 0x1ce   :  { %v1396_v2 = vadd.f32 %v1395_v36, %v1307_v24  ;;  %v1311_v53 = vpop.f32.mrf.mxu2  ;;  %v6967_v36 = vld [vmem:[%s9775_s1 + $0x2d4] sm:$0xf] }
 0x1cf   :  { %v1312_v42 = vadd.f32 %v1311_v53, %v7787_v43  ;;  %v5606_v43 = vor.u32 %v6963_v38, %v5605_v26  ;;  %v9794_v38 = vpack.c.bf16 %v8118_v52, %v8097_v6  ;;  %v6972_v6 = vld [vmem:[%s9775_s1 + $0x2f8] sm:$0xf0] }
 0x1d0   :  { %v1465_v7 = vpack.c.bf16 %v1396_v2, %v1394_v29  ;;  %v8244_v35 = vpop.f32.mrf.mxu3  ;;  %v5623_v29 = vld [vmem:[%s9775_s1 + $0x2dc] sm:$0xf0] }
 0x1d1   :  { %v5626_v25 = vor.u32 %v6967_v36, %v5623_v29 }
 0x1d2   :  { %5686 = vmatmul.msk.bf16.gmra.mxu1 %vm1516_vm2, %v1465_v7 }
 0x1d3   :  { %1353 = vmatmul.bf16.gmra.mxu2 %v5602_v0 }
 0x1d5   :  { %v1398_v41 = vpop.f32.mrf.mxu0 }
 0x1d6   :  { %v1314_v61 = vpop.f32.mrf.mxu2  ;;  %v1399_v49 = vadd.f32 %v1398_v41, %v1310_v23 }
 0x1d7   :  { %v1315_v24 = vadd.f32 %v1314_v61, %v7797_v56  ;;  %v5617_v56 = vld [vmem:[%s9775_s1 + $0x2c0] sm:$0xf] }
 0x1d8   :  { %5654 = vmatmul.msk.bf16.gmra.mxu0 %vm502_vm0, %v5594_v12  ;;  %5727 = vmatmul.msk.bf16.gmra.mxu3 %vm1516_vm2, %v829_v39  ;;  %v8253_v48 = vpop.f32.mrf.mxu3 }
 0x1dd   :  { %v1400_v46 = vpop.f32.mrf.mxu0 }
 0x1de   :  { %v1401_v50 = vadd.f32 %v1400_v46, %v1312_v42  ;;  %v1316_v44 = vpop.f32.mrf.mxu2 }
 0x1df   :  { %v1317_v2 = vadd.f32 %v1316_v44, %v7825_v17  ;;  %v6969_v44 = vld [vmem:[%s9775_s1 + $0x2e0] sm:$0xf0] }
 0x1e0   :  { %v1466_v39 = vpack.c.bf16 %v1401_v50, %v1399_v49  ;;  %v8268_v1 = vpop.f32.mrf.mxu3 }
 0x1e2   :  { %5687 = vmatmul.msk.bf16.gmra.mxu1 %vm1516_vm2, %v1466_v39 }
 0x1e3   :  { %1358 = vmatmul.bf16.gmra.mxu2 %v5614_v3 }
 0x1e5   :  { %v1403_v59 = vpop.f32.mrf.mxu0 }
 0x1e6   :  { %v1319_v10 = vpop.f32.mrf.mxu2  ;;  %v1404_v0 = vadd.f32 %v1403_v59, %v1315_v24 }
 0x1e7   :  { %v1320_v61 = vadd.f32 %v1319_v10, %v7839_v37  ;;  %v5629_v37 = vld [vmem:[%s9775_s1 + $0x2d8] sm:$0xf] }
 0x1e8   :  { %5655 = vmatmul.msk.bf16.gmra.mxu0 %vm502_vm0, %v5606_v43  ;;  %5728 = vmatmul.msk.bf16.gmra.mxu3 %vm1516_vm2, %v830_v11  ;;  %v6966_v11 = vld [vmem:[%s9775_s1 + $0x2c8] sm:$0xf0]  ;;  %v8283_v23 = vpop.f32.mrf.mxu3  ;;  %v5630_v3 = vor.u32 %v6969_v44, %v5629_v37 }
 0x1e9   :  { %v5618_v17 = vor.u32 %v6966_v11, %v5617_v56 }
 0x1ed   :  { %v1405_v53 = vpop.f32.mrf.mxu0 }
 0x1ee   :  { %v1406_v7 = vadd.f32 %v1405_v53, %v1317_v2  ;;  %v1321_v60 = vpop.f32.mrf.mxu2 }
 0x1ef   :  { %v1322_v42 = vadd.f32 %v1321_v60, %v7870_v62  ;;  %v9795_v60 = vpack.c.bf16 %v8149_v28, %v8136_v57 }
 0x1f0   :  { %v1467_v31 = vpack.c.bf16 %v1406_v7, %v1404_v0  ;;  %v8299_v39 = vpop.f32.mrf.mxu3  ;;  %v5641_v0 = vld [vmem:[%s9775_s1 + $0x2f0] sm:$0xf] }
 0x1f2   :  { %5688 = vmatmul.msk.bf16.gmra.mxu1 %vm1516_vm2, %v1467_v31 }
 0x1f3   :  { %1363 = vmatmul.bf16.gmra.mxu2 %v5626_v25 }
 0x1f5   :  { %v1408_v12 = vpop.f32.mrf.mxu0 }
 0x1f6   :  { %v1324_v41 = vpop.f32.mrf.mxu2  ;;  %v1409_v49 = vadd.f32 %v1408_v12, %v1320_v61 }
 0x1f7   :  { %v1325_v43 = vadd.f32 %v1324_v41, %v7883_v19  ;;  %v5642_v19 = vor.u32 %v6972_v6, %v5641_v0 }
 0x1f8   :  { %5656 = vmatmul.msk.bf16.gmra.mxu0 %vm502_vm0, %v5618_v17  ;;  %5729 = vmatmul.msk.bf16.gmra.mxu3 %vm1516_vm2, %v831_v63  ;;  %v8308_v2 = vpop.f32.mrf.mxu3 }
 0x1fd   :  { %v1410_v46 = vpop.f32.mrf.mxu0 }
 0x1fe   :  { %v1411_v50 = vadd.f32 %v1410_v46, %v1322_v42  ;;  %v1326_v47 = vpop.f32.mrf.mxu2 }
 0x1ff   :  { %v1327_v59 = vadd.f32 %v1326_v47, %v7907_v45 }
 0x200   :  { %v1468_v63 = vpack.c.bf16 %v1411_v50, %v1409_v49  ;;  %v8318_v7 = vpop.f32.mrf.mxu3 }
 0x202   :  { %5689 = vmatmul.msk.bf16.gmra.mxu1 %vm1516_vm2, %v1468_v63 }
 0x203   :  { %1368 = vmatmul.bf16.gmra.mxu2 %v5638_v15 }
 0x205   :  { %v1413_v62 = vpop.f32.mrf.mxu0 }
 0x206   :  { %v1329_v26 = vpop.f32.mrf.mxu2  ;;  %v1414_v24 = vadd.f32 %v1413_v62, %v1325_v43 }
 0x207   :  { %v1330_v25 = vadd.f32 %v1329_v26, %v7917_v5 }
 0x208   :  { %5657 = vmatmul.msk.bf16.gmra.mxu0 %vm502_vm0, %v5630_v3  ;;  %5730 = vmatmul.msk.bf16.gmra.mxu3 %vm1516_vm2, %v9794_v38 }
 0x20d   :  { %v1415_v10 = vpop.f32.mrf.mxu0 }
 0x20e   :  { %v1416_v36 = vadd.f32 %v1415_v10, %v1327_v59  ;;  %v1331_v29 = vpop.f32.mrf.mxu2 }
 0x20f   :  { %v1332_v31 = vadd.f32 %v1331_v29, %v7929_v27 }
 0x210   :  { %v1469_v53 = vpack.c.bf16 %v1416_v36, %v1414_v24 }
 0x212   :  { %5690 = vmatmul.msk.bf16.gmra.mxu1 %vm1516_vm2, %v1469_v53 }
 0x215   :  { %v1418_v52 = vpop.f32.mrf.mxu0 }
 0x216   :  { %v1334_v45 = vpop.f32.mrf.mxu2  ;;  %v1419_v11 = vadd.f32 %v1418_v52, %v1330_v25 }
 0x217   :  { %v1335_v30 = vadd.f32 %v1334_v45, %v7952_v21 }
 0x218   :  { %5658 = vmatmul.msk.bf16.gmra.mxu0 %vm502_vm0, %v5642_v19  ;;  %5731 = vmatmul.msk.bf16.gmra.mxu3 %vm1516_vm2, %v9795_v60 }
 0x21d   :  { %v1420_v56 = vpop.f32.mrf.mxu0 }
 0x21e   :  { %v1421_v17 = vadd.f32 %v1420_v56, %v1332_v31  ;;  %v1336_v12 = vpop.f32.mrf.mxu2 }
 0x21f   :  { %v1337_v42 = vadd.f32 %v1336_v12, %v7969_v20 }
 0x220   :  { %v1470_v41 = vpack.c.bf16 %v1421_v17, %v1419_v11 }
 0x222   :  { %5691 = vmatmul.msk.bf16.gmra.mxu1 %vm1516_vm2, %v1470_v41 }
 0x225   :  { %v1423_v61 = vpop.f32.mrf.mxu0 }
 0x226   :  { %v1339_v13 = vpop.f32.mrf.mxu2  ;;  %v1424_v28 = vadd.f32 %v1423_v61, %v1335_v30 }
 0x227   :  { %v1340_v63 = vadd.f32 %v1339_v13, %v7981_v51 }
 0x22d   :  { %v1425_v57 = vpop.f32.mrf.mxu0 }
 0x22e   :  { %v1426_v46 = vadd.f32 %v1425_v57, %v1337_v42  ;;  %v1341_v49 = vpop.f32.mrf.mxu2 }
 0x22f   :  { %v8329_v5 = vpop.f32.mrf.mxu1  ;;  %v1342_v37 = vadd.f32 %v1341_v49, %v7996_v18 }
 0x230   :  { %v1471_v27 = vpack.c.bf16 %v1426_v46, %v1424_v28 }
 0x232   :  { %5692 = vmatmul.msk.bf16.gmra.mxu1 %vm1516_vm2, %v1471_v27 }
 0x235   :  { %v1428_v50 = vpop.f32.mrf.mxu0 }
 0x236   :  { %v1344_v47 = vpop.f32.mrf.mxu2  ;;  %v1429_v44 = vadd.f32 %v1428_v50, %v1340_v63 }
 0x237   :  { %v8332_v15 = vpop.f32.mrf.mxu1  ;;  %v1345_v10 = vadd.f32 %v1344_v47, %v8015_v34 }
 0x23d   :  { %v1430_v21 = vpop.f32.mrf.mxu0 }
 0x23e   :  { %v1431_v20 = vadd.f32 %v1430_v21, %v1342_v37  ;;  %v1346_v3 = vpop.f32.mrf.mxu2 }
 0x23f   :  { %v8336_v62 = vpop.f32.mrf.mxu1  ;;  %v1347_v24 = vadd.f32 %v1346_v3, %v8033_v4 }
 0x240   :  { %v1472_v26 = vpack.c.bf16 %v1431_v20, %v1429_v44  ;;  %v5798_v44 = vld [vmem:[%s9775_s1 + $0x300] sm:$0xf]  ;;  %v6978_v20 = vld [vmem:[%s9775_s1 + $0x308] sm:$0xf0] }
 0x241   :  { %v5799_v3 = vor.u32 %v6978_v20, %v5798_v44  ;;  %v6987_v44 = vld [vmem:[%s9775_s1 + $0x350] sm:$0xf0] }
 0x242   :  { %5693 = vmatmul.msk.bf16.gmra.mxu1 %vm1516_vm2, %v1472_v26  ;;  %v6977_v26 = vld [vmem:[%s9775_s1 + $0x304] sm:$0xf] }
 0x243   :  { %2186 = vmatmul.bf16.vlgmr.msra.gmra.mxu2 %v5799_v3  ;;  %v6986_v3 = vld [vmem:[%s9775_s1 + $0x34c] sm:$0xf] }
 0x245   :  { %v1433_v38 = vpop.f32.mrf.mxu0 }
 0x246   :  { %v1349_v43 = vpop.f32.mrf.mxu2  ;;  %v1434_v36 = vadd.f32 %v1433_v38, %v1345_v10  ;;  %v5800_v38 = vld [vmem:[%s9775_s1 + $0x30c] sm:$0xf0] }
 0x247   :  { %v8339_v59 = vpop.f32.mrf.mxu1  ;;  %v1350_v45 = vadd.f32 %v1349_v43, %v8048_v54  ;;  %v5803_v10 = vor.u32 %v6977_v26, %v5800_v38  ;;  %v5818_v38 = vld [vmem:[%s9775_s1 + $0x320] sm:$0xf] }
 0x249   :  { %2275 = vmatmul.bf16.vlgmr.msra.gmra.mxu0 %v5803_v10  ;;  %v6982_v10 = vld [vmem:[%s9775_s1 + $0x328] sm:$0xf0] }
 0x24d   :  { %v1435_v51 = vpop.f32.mrf.mxu0 }
 0x24e   :  { %v1436_v18 = vadd.f32 %v1435_v51, %v1347_v24  ;;  %v1351_v29 = vpop.f32.mrf.mxu2 }
 0x24f   :  { %v8343_v53 = vpop.f32.mrf.mxu1  ;;  %v1352_v60 = vadd.f32 %v1351_v29, %v8063_v32 }
 0x250   :  { %v1473_v0 = vpack.c.bf16 %v1436_v18, %v1434_v36 }
 0x252   :  { %5694 = vmatmul.msk.bf16.gmra.mxu1 %vm1516_vm2, %v1473_v0 }
 0x255   :  { %v1438_v6 = vpop.f32.mrf.mxu0 }
 0x256   :  { %v1354_v19 = vpop.f32.mrf.mxu2  ;;  %v1439_v25 = vadd.f32 %v1438_v6, %v1350_v45  ;;  %v5810_v45 = vld [vmem:[%s9775_s1 + $0x318] sm:$0xf] }
 0x257   :  { %v8346_v52 = vpop.f32.mrf.mxu1  ;;  %v1355_v61 = vadd.f32 %v1354_v19, %v8087_v58 }
 0x25d   :  { %v1440_v34 = vpop.f32.mrf.mxu0 }
 0x25e   :  { %v1441_v4 = vadd.f32 %v1440_v34, %v1352_v60  ;;  %v1356_v31 = vpop.f32.mrf.mxu2  ;;  %v6981_v60 = vld [vmem:[%s9775_s1 + $0x320] sm:$0xf0] }
 0x25f   :  { %v8350_v56 = vpop.f32.mrf.mxu1  ;;  %v1357_v13 = vadd.f32 %v1356_v31, %v8113_v33  ;;  %v5811_v34 = vor.u32 %v6981_v60, %v5810_v45 }
 0x260   :  { %v1474_v11 = vpack.c.bf16 %v1441_v4, %v1439_v25  ;;  %v5812_v25 = vld [vmem:[%s9775_s1 + $0x324] sm:$0xf0] }
 0x261   :  { %2191 = vmatmul.bf16.gmra.mxu2 %v5811_v34  ;;  %v5830_v34 = vld [vmem:[%s9775_s1 + $0x338] sm:$0xf] }
 0x262   :  { %5695 = vmatmul.msk.bf16.gmra.mxu1 %vm1516_vm2, %v1474_v11 }
 0x265   :  { %v1443_v17 = vpop.f32.mrf.mxu0 }
 0x266   :  { %v1359_v41 = vpop.f32.mrf.mxu2  ;;  %v1444_v30 = vadd.f32 %v1443_v17, %v1355_v61 }
 0x267   :  { %v8353_v12 = vpop.f32.mrf.mxu1  ;;  %v1360_v27 = vadd.f32 %v1359_v41, %v8134_v14 }
 0x26d   :  { %v1445_v54 = vpop.f32.mrf.mxu0 }
 0x26e   :  { %v1446_v32 = vadd.f32 %v1445_v54, %v1357_v13  ;;  %v1361_v28 = vpop.f32.mrf.mxu2 }
 0x26f   :  { %v8357_v42 = vpop.f32.mrf.mxu1  ;;  %v1362_v47 = vadd.f32 %v1361_v28, %v8151_v22  ;;  %v6984_v28 = vld [vmem:[%s9775_s1 + $0x338] sm:$0xf0] }
 0x270   :  { %v1475_v57 = vpack.c.bf16 %v1446_v32, %v1444_v30 }
 0x272   :  { %5696 = vmatmul.msk.bf16.gmra.mxu1 %vm1516_vm2, %v1475_v57  ;;  %v5822_v57 = vld [vmem:[%s9775_s1 + $0x330] sm:$0xf] }
 0x275   :  { %v1448_v46 = vpop.f32.mrf.mxu0 }
 0x276   :  { %v1364_v50 = vpop.f32.mrf.mxu2  ;;  %v1449_v63 = vadd.f32 %v1448_v46, %v1360_v27  ;;  %v5823_v46 = vor.u32 %v6984_v28, %v5822_v57  ;;  %v5842_v28 = vld [vmem:[%s9775_s1 + $0x350] sm:$0xf] }
 0x277   :  { %v8360_v49 = vpop.f32.mrf.mxu1  ;;  %v1365_v24 = vadd.f32 %v1364_v50, %v8167_v40  ;;  %v6980_v40 = vld [vmem:[%s9775_s1 + $0x31c] sm:$0xf] }
 0x278   :  { %v5815_v31 = vor.u32 %v6980_v40, %v5812_v25  ;;  %2196 = vmatmul.bf16.gmra.mxu2 %v5823_v46  ;;  %v6988_v46 = vld [vmem:[%s9775_s1 + $0x358] sm:$0xf0] }
 0x27a   :  { %2280 = vmatmul.bf16.gmra.mxu0 %v5815_v31  ;;  %v5858_v31 = vld [vmem:[%s9775_s1 + $0x378] sm:$0xf] }
 0x27d   :  { %v1450_v58 = vpop.f32.mrf.mxu0 }
 0x27e   :  { %v1451_v33 = vadd.f32 %v1450_v58, %v1362_v47  ;;  %v1366_v14 = vpop.f32.mrf.mxu2  ;;  %v5806_v47 = vld [vmem:[%s9775_s1 + $0x308] sm:$0xf]  ;;  %v6979_v58 = vld [vmem:[%s9775_s1 + $0x310] sm:$0xf0] }
 0x27f   :  { %v8364_v37 = vpop.f32.mrf.mxu1  ;;  %v1367_v51 = vadd.f32 %v1366_v14, %v8183_v16  ;;  %v5836_v14 = vld [vmem:[%s9775_s1 + $0x354] sm:$0xf0] }
 0x280   :  { %v1476_v21 = vpack.c.bf16 %v1451_v33, %v1449_v63  ;;  %v5807_v63 = vor.u32 %v6979_v58, %v5806_v47  ;;  %v5839_v26 = vor.u32 %v6986_v3, %v5836_v14  ;;  %v6996_v47 = vld [vmem:[%s9775_s1 + $0x398] sm:$0xf0]  ;;  %v5854_v14 = vld [vmem:[%s9775_s1 + $0x368] sm:$0xf] }
 0x282   :  { %5697 = vmatmul.msk.bf16.gmra.mxu1 %vm1516_vm2, %v1476_v21  ;;  %v5834_v21 = vld [vmem:[%s9775_s1 + $0x348] sm:$0xf] }
 0x283   :  { %v5835_v20 = vor.u32 %v6987_v44, %v5834_v21  ;;  %v6995_v21 = vld [vmem:[%s9775_s1 + $0x394] sm:$0xf]  ;;  %v5872_v44 = vld [vmem:[%s9775_s1 + $0x39c] sm:$0xf0] }
 0x284   :  { %v5875_v3 = vor.u32 %v6995_v21, %v5872_v44  ;;  %v7001_v44 = vld [vmem:[%s9775_s1 + $0x3c4] sm:$0xf] }
 0x285   :  { %v1453_v22 = vpop.f32.mrf.mxu0 }
 0x286   :  { %v1454_v18 = vadd.f32 %v1453_v22, %v1365_v24  ;;  %v1369_v0 = vpop.f32.mrf.mxu2  ;;  %v5819_v24 = vor.u32 %v6982_v10, %v5818_v38 }
 0x287   :  { %v8379_v43 = vpop.f32.mrf.mxu1  ;;  %v1370_v17 = vadd.f32 %v1369_v0, %v8198_v9  ;;  %v6983_v9 = vld [vmem:[%s9775_s1 + $0x334] sm:$0xf]  ;;  %v6989_v0 = vld [vmem:[%s9775_s1 + $0x364] sm:$0xf] }
 0x288   :  { %2201 = vmatmul.bf16.gmra.mxu2 %v5835_v20 }
 0x28d   :  { %v1455_v36 = vpop.f32.mrf.mxu0 }
 0x28e   :  { %v1456_v29 = vadd.f32 %v1455_v36, %v1367_v51  ;;  %v1371_v11 = vpop.f32.mrf.mxu2  ;;  %v5846_v36 = vld [vmem:[%s9775_s1 + $0x360] sm:$0xf] }
 0x28f   :  { %v8383_v6 = vpop.f32.mrf.mxu1  ;;  %v1372_v41 = vadd.f32 %v1371_v11, %v8208_v55  ;;  %v5824_v55 = vld [vmem:[%s9775_s1 + $0x33c] sm:$0xf0]  ;;  %v6993_v11 = vld [vmem:[%s9775_s1 + $0x380] sm:$0xf0] }
 0x290   :  { %v1477_v19 = vpack.c.bf16 %v1456_v29, %v1454_v18  ;;  %v5827_v50 = vor.u32 %v6983_v9, %v5824_v55  ;;  %v6990_v18 = vld [vmem:[%s9775_s1 + $0x368] sm:$0xf0]  ;;  %v5843_v9 = vor.u32 %v6988_v46, %v5842_v28  ;;  %v5894_v46 = vld [vmem:[%s9775_s1 + $0x3c0] sm:$0xf] }
 0x291   :  { %v5847_v29 = vor.u32 %v6990_v18, %v5846_v36  ;;  %v5882_v36 = vld [vmem:[%s9775_s1 + $0x3a8] sm:$0xf]  ;;  %v6999_v18 = vld [vmem:[%s9775_s1 + $0x3b0] sm:$0xf0] }
 0x292   :  { %5698 = vmatmul.msk.bf16.gmra.mxu1 %vm1516_vm2, %v1477_v19  ;;  %2285 = vmatmul.bf16.gmra.mxu0 %v5827_v50  ;;  %v5848_v19 = vld [vmem:[%s9775_s1 + $0x36c] sm:$0xf0] }
 0x293   :  { %v5851_v60 = vor.u32 %v6989_v0, %v5848_v19  ;;  %v5870_v50 = vld [vmem:[%s9775_s1 + $0x390] sm:$0xf]  ;;  %v6998_v0 = vld [vmem:[%s9775_s1 + $0x3ac] sm:$0xf]  ;;  %v5884_v19 = vld [vmem:[%s9775_s1 + $0x3b4] sm:$0xf0] }
 0x294   :  { %v5871_v58 = vor.u32 %v6996_v47, %v5870_v50 }
 0x295   :  { %v1458_v16 = vpop.f32.mrf.mxu0 }
 0x296   :  { %v1459_v13 = vadd.f32 %v1458_v16, %v1370_v17  ;;  %v6985_v16 = vld [vmem:[%s9775_s1 + $0x340] sm:$0xf0]  ;;  %v8479_v17 = vpop.f32.mrf.mxu3 }
 0x297   :  { %v8398_v4 = vpop.f32.mrf.mxu1  ;;  %v5831_v40 = vor.u32 %v6985_v16, %v5830_v34  ;;  %v5887_v34 = vor.u32 %v6998_v0, %v5884_v19  ;;  %v6012_v16 = vld [vmem:[%s9776_s2 + $0x68] sm:$0xf] }
 0x298   :  { %2206 = vmatmul.bf16.gmra.mxu2 %v5847_v29  ;;  %v5883_v29 = vor.u32 %v6999_v18, %v5882_v36  ;;  %v5878_v36 = vld [vmem:[%s9775_s1 + $0x398] sm:$0xf]  ;;  %v6997_v18 = vld [vmem:[%s9775_s1 + $0x3a0] sm:$0xf0] }
 0x299   :  { %v5879_v0 = vor.u32 %v6997_v18, %v5878_v36  ;;  %v5890_v36 = vld [vmem:[%s9775_s1 + $0x3b0] sm:$0xf]  ;;  %v7000_v18 = vld [vmem:[%s9775_s1 + $0x3b8] sm:$0xf0] }
 0x29d   :  { %v1460_v61 = vpop.f32.mrf.mxu0 }
 0x29e   :  { %v1461_v54 = vadd.f32 %v1460_v61, %v1372_v41  ;;  %v5859_v41 = vor.u32 %v6993_v11, %v5858_v31  ;;  %v6992_v61 = vld [vmem:[%s9775_s1 + $0x37c] sm:$0xf]  ;;  %v8490_v57 = vpop.f32.mrf.mxu3  ;;  %v2488_v31 = vunpack.c.l.b16 %v6012_v16  ;;  %v5866_v11 = vld [vmem:[%s9775_s1 + $0x380] sm:$0xf] }
 0x29f   :  { %v8402_v30 = vpop.f32.mrf.mxu1 }
 0x2a0   :  { %v1478_v32 = vpack.c.bf16 %v1461_v54, %v1459_v13  ;;  %v5860_v13 = vld [vmem:[%s9775_s1 + $0x384] sm:$0xf0] }
 0x2a2   :  { %5699 = vmatmul.msk.bf16.gmra.mxu1 %vm1516_vm2, %v1478_v32  ;;  %2290 = vmatmul.bf16.gmra.mxu0 %v5839_v26  ;;  %v5863_v32 = vor.u32 %v6992_v61, %v5860_v13  ;;  %v6991_v26 = vld [vmem:[%s9775_s1 + $0x370] sm:$0xf0]  ;;  %v2493_v61 = vpack.c.b16 %v2488_v31, %v2488_v31  ;;  %v7027_v31 = vld [vmem:[%s9776_s2 + $0x58] sm:$0xff] }
 0x2a3   :  { %v5855_v38 = vor.u32 %v6991_v26, %v5854_v14 }
 0x2a4   :  { %v2547_v13 = vsel %vm1565_vm1, %v2493_v61, 0 }
 0x2a5   :  { %2552 = vmatpush.bf16.msra.mxu3 %v2547_v13  ;;  %v7026_v13 = vld [vmem:[%s9776_s2 + $0x50] sm:$0xff] }
 0x2a7   :  { %v8417_v27 = vpop.f32.mrf.mxu1 }
 0x2a8   :  { %2211 = vmatmul.bf16.gmra.mxu2 %v5859_v41  ;;  %v6994_v41 = vld [vmem:[%s9775_s1 + $0x388] sm:$0xf0] }
 0x2af   :  { %v8425_v33 = vpop.f32.mrf.mxu1 }
 0x2b2   :  { %5988 = vmatmul.msk.bf16.vlgmr.msra.gmra.mxu1 %vm502_vm0, %v5807_v63  ;;  %2295 = vmatmul.bf16.gmra.mxu0 %v5851_v60  ;;  %v8507_v63 = vpop.f32.mrf.mxu3 }
 0x2b7   :  { %v8440_v22 = vpop.f32.mrf.mxu1 }
 0x2b8   :  { %2216 = vmatmul.bf16.gmra.mxu2 %v5871_v58 }
 0x2ba   :  { %v8523_v10 = vpop.f32.mrf.mxu3 }
 0x2bf   :  { %v8448_v51 = vpop.f32.mrf.mxu1 }
 0x2c2   :  { %5989 = vmatmul.msk.bf16.gmra.mxu1 %vm502_vm0, %v5819_v24  ;;  %2300 = vmatmul.bf16.gmra.mxu0 %v5863_v32  ;;  %v5867_v32 = vor.u32 %v6994_v41, %v5866_v11  ;;  %v5906_v11 = vld [vmem:[%s9775_s1 + $0x3d8] sm:$0xf]  ;;  %v7005_v41 = vld [vmem:[%s9775_s1 + $0x3e0] sm:$0xf0] }
 0x2c3   :  { %v5907_v61 = vor.u32 %v7005_v41, %v5906_v11 }
 0x2c6   :  { %v8565_v58 = vpop.f32.mrf.mxu2  ;;  %v8567_v21 = vpop.f32.mrf.mxu0 }
 0x2c7   :  { %v8463_v45 = vpop.f32.mrf.mxu1 }
 0x2c8   :  { %9796 = vst [vmem:[#allocation2_spill] sm:$0xff] %v8463_v45  ;;  %2221 = vmatmul.bf16.gmra.mxu2 %v5883_v29 }
 0x2ce   :  { %v2189_v19 = vpop.f32.mrf.mxu2 }
 0x2cf   :  { %v8471_v25 = vpop.f32.mrf.mxu1 }
 0x2d0   :  { %9797 = vst [vmem:[#allocation3_spill] sm:$0xff] %v8471_v25 }
 0x2d2   :  { %5990 = vmatmul.msk.bf16.gmra.mxu1 %vm502_vm0, %v5831_v40  ;;  %2305 = vmatmul.bf16.gmra.mxu0 %v5875_v3  ;;  %v8545_v40 = vpop.f32.mrf.mxu3  ;;  %v5896_v3 = vld [vmem:[%s9775_s1 + $0x3cc] sm:$0xf0] }
 0x2d3   :  { %v5899_v26 = vor.u32 %v7001_v44, %v5896_v3 }
 0x2d7   :  { %v8488_v54 = vpop.f32.mrf.mxu1 }
 0x2d8   :  { %9798 = vst [vmem:[#allocation4_spill] sm:$0xff] %v8488_v54 }
 0x2da   :  { %v8563_v47 = vpop.f32.mrf.mxu3 }
 0x2df   :  { %v8498_v55 = vpop.f32.mrf.mxu1 }
 0x2e0   :  { %9799 = vst [vmem:[#allocation5_spill] sm:$0xff] %v8498_v55 }
 0x2e2   :  { %5991 = vmatmul.msk.bf16.gmra.mxu1 %vm502_vm0, %v5843_v9  ;;  %2310 = vmatmul.bf16.gmra.mxu0 %v5887_v34  ;;  %v7002_v9 = vld [vmem:[%s9775_s1 + $0x3c8] sm:$0xf0]  ;;  %v8586_v29 = vpop.f32.mrf.mxu3  ;;  %v2278_v34 = vpop.f32.mrf.mxu0 }
 0x2e3   :  { %v5895_v50 = vor.u32 %v7002_v9, %v5894_v46  ;;  %v7004_v9 = vld [vmem:[%s9775_s1 + $0x3dc] sm:$0xf] }
 0x2e5   :  { %2226 = vmatmul.bf16.gmra.mxu2 %v5895_v50  ;;  %v5908_v50 = vld [vmem:[%s9775_s1 + $0x3e4] sm:$0xf0] }
 0x2e7   :  { %v8515_v20 = vpop.f32.mrf.mxu1 }
 0x2e8   :  { %9800 = vst [vmem:[#allocation6_spill] sm:$0xff] %v8515_v20  ;;  %v7010_v20 = vld [vmem:[%s9775_s1 + $0x40c] sm:$0xf] }
 0x2ea   :  { %v8613_v44 = vpop.f32.mrf.mxu3 }
 0x2ef   :  { %v8525_v24 = vpop.f32.mrf.mxu1 }
 0x2f0   :  { %9801 = vst [vmem:[#allocation7_spill] sm:$0xff] %v8525_v24 }
 0x2f2   :  { %5992 = vmatmul.msk.bf16.gmra.mxu1 %vm502_vm0, %v5855_v38  ;;  %v7028_v38 = vld [vmem:[%s9776_s2 + $0x60] sm:$0xff]  ;;  %2315 = vmatmul.bf16.gmra.mxu0 %v5899_v26  ;;  %v5911_v26 = vor.u32 %v7004_v9, %v5908_v50  ;;  %v8634_v9 = vpop.f32.mrf.mxu3 }
 0x2f3   :  { %2553 = vmatpush.bf16.msra.mxu3 %v7028_v38  ;;  %v7025_v38 = vld [vmem:[%s9776_s2 + $0x48] sm:$0xff] }
 0x2f5   :  { %2231 = vmatmul.bf16.gmra.mxu2 %v5907_v61  ;;  %v5918_v61 = vld [vmem:[%s9775_s1 + $0x3f0] sm:$0xf] }
 0x2f7   :  { %v8540_v60 = vpop.f32.mrf.mxu1  ;;  %2554 = vmatpush.bf16.msra.mxu3 %v7027_v31  ;;  %v8605_v46 = vpop.f32.mrf.mxu0 }
 0x2f8   :  { %9802 = vst [vmem:[#allocation8_spill] sm:$0xff] %v8540_v60 }
 0x2fb   :  { %2555 = vmatpush.bf16.msra.mxu3 %v7026_v13  ;;  %v7008_v13 = vld [vmem:[%s9775_s1 + $0x3f8] sm:$0xf0] }
 0x2fc   :  { %v5919_v50 = vor.u32 %v7008_v13, %v5918_v61  ;;  %v8649_v61 = vpop.f32.mrf.mxu3  ;;  %v7003_v13 = vld [vmem:[%s9775_s1 + $0x3d0] sm:$0xf0] }
 0x2ff   :  { %v8554_v28 = vpop.f32.mrf.mxu1  ;;  %2556 = vmatpush.bf16.msra.mxu3 %v7025_v38  ;;  %v2283_v11 = vpop.f32.mrf.mxu0 }
 0x300   :  { %9803 = vst [vmem:[#allocation9_spill] sm:$0xff] %v8554_v28 }
 0x302   :  { %5993 = vmatmul.msk.bf16.gmra.mxu1 %vm502_vm0, %v5867_v32  ;;  %v8603_v32 = vpop.f32.mrf.mxu2  ;;  %2320 = vmatmul.bf16.gmra.mxu0 %v5911_v26 }
 0x304   :  { %v8666_v60 = vpop.f32.mrf.mxu3 }
 0x305   :  { %2236 = vmatmul.bf16.gmra.mxu2 %v5919_v50  ;;  %9809 = vst [vmem:[#allocation15_spill] sm:$0xff] %v8666_v60 }
 0x307   :  { %v8575_v14 = vpop.f32.mrf.mxu1 }
 0x308   :  { %9804 = vst [vmem:[#allocation10_spill] sm:$0xff] %v8575_v14 }
 0x30a   :  { %v2194_v31 = vpop.f32.mrf.mxu2 }
 0x30c   :  { %v8685_v45 = vpop.f32.mrf.mxu3 }
 0x30d   :  { %9810 = vst [vmem:[#allocation16_spill] sm:$0xff] %v8685_v45 }
 0x30f   :  { %v8588_v16 = vpop.f32.mrf.mxu1  ;;  %v8639_v38 = vpop.f32.mrf.mxu0 }
 0x310   :  { %9805 = vst [vmem:[#allocation11_spill] sm:$0xff] %v8588_v16 }
 0x312   :  { %5994 = vmatmul.msk.bf16.gmra.mxu1 %vm502_vm0, %v5879_v0  ;;  %v5891_v0 = vor.u32 %v7000_v18, %v5890_v36  ;;  %v8637_v26 = vpop.f32.mrf.mxu2  ;;  %v7007_v36 = vld [vmem:[%s9775_s1 + $0x3f4] sm:$0xf]  ;;  %v5920_v18 = vld [vmem:[%s9775_s1 + $0x3fc] sm:$0xf0] }
 0x317   :  { %v8615_v3 = vpop.f32.mrf.mxu1  ;;  %v2288_v14 = vpop.f32.mrf.mxu0 }
 0x318   :  { %9806 = vst [vmem:[#allocation12_spill] sm:$0xff] %v8615_v3  ;;  %v5923_v3 = vor.u32 %v7007_v36, %v5920_v18  ;;  %v2277_v18 = vadd.f32 %v8567_v21, %v8565_v58  ;;  %v5914_v21 = vld [vmem:[%s9775_s1 + $0x3e0] sm:$0xf] }
 0x31a   :  { %2325 = vmatmul.bf16.gmra.mxu0 %v5923_v3  ;;  %v2199_v16 = vpop.f32.mrf.mxu2  ;;  %v7011_v3 = vld [vmem:[%s9775_s1 + $0x410] sm:$0xf0] }
 0x31f   :  { %v8626_v41 = vpop.f32.mrf.mxu1  ;;  %v8670_v24 = vpop.f32.mrf.mxu0 }
 0x320   :  { %9807 = vst [vmem:[#allocation13_spill] sm:$0xff] %v8626_v41 }
 0x322   :  { %5995 = vmatmul.msk.bf16.gmra.mxu1 %vm502_vm0, %v5891_v0  ;;  %v5902_v0 = vld [vmem:[%s9775_s1 + $0x3c8] sm:$0xf] }
 0x323   :  { %v5903_v50 = vor.u32 %v7003_v13, %v5902_v0  ;;  %v2279_v0 = vadd.f32 %v2278_v34, %v2189_v19  ;;  %v8668_v13 = vpop.f32.mrf.mxu2  ;;  %v7006_v19 = vld [vmem:[%s9775_s1 + $0x3e8] sm:$0xf0] }
 0x324   :  { %v5915_v34 = vor.u32 %v7006_v19, %v5914_v21 }
 0x327   :  { %v8647_v41 = vpop.f32.mrf.mxu1  ;;  %v2293_v25 = vpop.f32.mrf.mxu0 }
 0x328   :  { %9808 = vst [vmem:[#allocation14_spill] sm:$0xff] %v8647_v41  ;;  %v5930_v41 = vld [vmem:[%s9775_s1 + $0x408] sm:$0xf] }
 0x329   :  { %v5931_v36 = vor.u32 %v7011_v3, %v5930_v41  ;;  %v5932_v41 = vld [vmem:[%s9775_s1 + $0x414] sm:$0xf0] }
 0x32a   :  { %v5935_v3 = vor.u32 %v7010_v20, %v5932_v41  ;;  %v2284_v41 = vadd.f32 %v2283_v11, %v2194_v31  ;;  %v7009_v31 = vld [vmem:[%s9775_s1 + $0x400] sm:$0xf0] }
 0x32b   :  { %2241 = vmatmul.bf16.gmra.mxu2 %v5931_v36  ;;  %v2204_v54 = vpop.f32.mrf.mxu2 }
 0x32c   :  { %2330 = vmatmul.bf16.gmra.mxu0 %v5935_v3 }
 0x32f   :  { %v2365_v28 = vpop.f32.mrf.mxu1  ;;  %v8698_v3 = vpop.f32.mrf.mxu0 }
 0x330   :  { %v2366_v36 = vadd.f32 %v2365_v28, %v2277_v18  ;;  %v7014_v28 = vld [vmem:[%s9775_s1 + $0x428] sm:$0xf0] }
 0x332   :  { %5996 = vmatmul.msk.bf16.gmra.mxu1 %vm502_vm0, %v5903_v50 }
 0x337   :  { %v2367_v50 = vpop.f32.mrf.mxu1  ;;  %v2298_v45 = vpop.f32.mrf.mxu0 }
 0x338   :  { %v2368_v55 = vadd.f32 %v2367_v50, %v2279_v0  ;;  %v2282_v0 = vadd.f32 %v8605_v46, %v8603_v32  ;;  %v8696_v50 = vpop.f32.mrf.mxu2  ;;  %v5926_v46 = vld [vmem:[%s9775_s1 + $0x3f8] sm:$0xf] }
 0x339   :  { %v5927_v11 = vor.u32 %v7009_v31, %v5926_v46  ;;  %v5956_v46 = vld [vmem:[%s9775_s1 + $0x444] sm:$0xf0] }
 0x33a   :  { %v2445_v58 = vpack.c.bf16 %v2368_v55, %v2366_v36  ;;  %v5942_v55 = vld [vmem:[%s9775_s1 + $0x420] sm:$0xf]  ;;  %v7013_v36 = vld [vmem:[%s9775_s1 + $0x424] sm:$0xf] }
 0x33b   :  { %v5943_v18 = vor.u32 %v7014_v28, %v5942_v55  ;;  %v8706_v28 = vpop.f32.mrf.mxu3 }
 0x33c   :  { %6029 = vmatmul.msk.bf16.vlgmr.msra.gmra.mxu3 %vm1516_vm2, %v2445_v58  ;;  %v5944_v58 = vld [vmem:[%s9775_s1 + $0x42c] sm:$0xf0]  ;;  %9811 = vst [vmem:[#allocation17_spill] sm:$0xff] %v8706_v28 }
 0x33d   :  { %2246 = vmatmul.bf16.gmra.mxu2 %v5943_v18  ;;  %v5947_v19 = vor.u32 %v7013_v36, %v5944_v58 }
 0x33f   :  { %v2370_v20 = vpop.f32.mrf.mxu1  ;;  %2335 = vmatmul.bf16.gmra.mxu0 %v5947_v19  ;;  %v2289_v19 = vadd.f32 %v2288_v14, %v2199_v16  ;;  %v5938_v14 = vld [vmem:[%s9775_s1 + $0x410] sm:$0xf]  ;;  %v7012_v16 = vld [vmem:[%s9775_s1 + $0x418] sm:$0xf0] }
 0x340   :  { %v2209_v18 = vpop.f32.mrf.mxu2 }
 0x342   :  { %5997 = vmatmul.msk.bf16.gmra.mxu1 %vm502_vm0, %v5915_v34  ;;  %v2371_v34 = vadd.f32 %v2370_v20, %v2282_v0  ;;  %v5954_v20 = vld [vmem:[%s9775_s1 + $0x438] sm:$0xf]  ;;  %v7017_v0 = vld [vmem:[%s9775_s1 + $0x440] sm:$0xf0] }
 0x343   :  { %v8722_v58 = vpop.f32.mrf.mxu3 }
 0x344   :  { %9812 = vst [vmem:[#allocation18_spill] sm:$0xff] %v8722_v58 }
 0x347   :  { %v2372_v21 = vpop.f32.mrf.mxu1 }
 0x348   :  { %v2373_v55 = vadd.f32 %v2372_v21, %v2284_v41  ;;  %v5955_v41 = vor.u32 %v7017_v0, %v5954_v20  ;;  %v2287_v21 = vadd.f32 %v8639_v38, %v8637_v26  ;;  %v5939_v38 = vor.u32 %v7012_v16, %v5938_v14 }
 0x34a   :  { %v2446_v32 = vpack.c.bf16 %v2373_v55, %v2371_v34  ;;  %v8726_v34 = vpop.f32.mrf.mxu2  ;;  %v8728_v55 = vpop.f32.mrf.mxu0 }
 0x34b   :  { %v8743_v26 = vpop.f32.mrf.mxu3 }
 0x34c   :  { %6030 = vmatmul.msk.bf16.gmra.mxu3 %vm1516_vm2, %v2446_v32  ;;  %v7016_v32 = vld [vmem:[%s9775_s1 + $0x43c] sm:$0xf]  ;;  %9813 = vst [vmem:[#allocation19_spill] sm:$0xff] %v8743_v26 }
 0x34d   :  { %2251 = vmatmul.bf16.gmra.mxu2 %v5955_v41 }
 0x34f   :  { %v2375_v36 = vpop.f32.mrf.mxu1 }
 0x350   :  { %v2376_v20 = vadd.f32 %v2375_v36, %v2287_v21  ;;  %v5966_v36 = vld [vmem:[%s9775_s1 + $0x450] sm:$0xf]  ;;  %v7020_v21 = vld [vmem:[%s9775_s1 + $0x458] sm:$0xf0] }
 0x352   :  { %5998 = vmatmul.msk.bf16.gmra.mxu1 %vm502_vm0, %v5927_v11  ;;  %v5959_v11 = vor.u32 %v7016_v32, %v5956_v46  ;;  %v2214_v58 = vpop.f32.mrf.mxu2  ;;  %v2303_v28 = vpop.f32.mrf.mxu0  ;;  %v2292_v46 = vadd.f32 %v8670_v24, %v8668_v13 }
 0x353   :  { %v8760_v14 = vpop.f32.mrf.mxu3 }
 0x354   :  { %2340 = vmatmul.bf16.gmra.mxu0 %v5959_v11  ;;  %9814 = vst [vmem:[#allocation20_spill] sm:$0xff] %v8760_v14 }
 0x357   :  { %v2377_v31 = vpop.f32.mrf.mxu1 }
 0x358   :  { %v2378_v0 = vadd.f32 %v2377_v31, %v2289_v19  ;;  %v5967_v19 = vor.u32 %v7020_v21, %v5966_v36  ;;  %v2294_v31 = vadd.f32 %v2293_v25, %v2204_v54  ;;  %v5950_v25 = vld [vmem:[%s9775_s1 + $0x428] sm:$0xf]  ;;  %v7015_v54 = vld [vmem:[%s9775_s1 + $0x430] sm:$0xf0] }
 0x359   :  { %v5951_v24 = vor.u32 %v7015_v54, %v5950_v25 }
 0x35a   :  { %v2447_v41 = vpack.c.bf16 %v2378_v0, %v2376_v20  ;;  %v2217_v11 = vpop.f32.mrf.mxu2  ;;  %v2306_v20 = vpop.f32.mrf.mxu0  ;;  %v7019_v0 = vld [vmem:[%s9775_s1 + $0x454] sm:$0xf] }
 0x35c   :  { %6031 = vmatmul.msk.bf16.gmra.mxu3 %vm1516_vm2, %v2447_v41  ;;  %v5968_v41 = vld [vmem:[%s9775_s1 + $0x45c] sm:$0xf0] }
 0x35d   :  { %2256 = vmatmul.bf16.gmra.mxu2 %v5967_v19  ;;  %v5971_v36 = vor.u32 %v7019_v0, %v5968_v41  ;;  %v2297_v41 = vadd.f32 %v8698_v3, %v8696_v50  ;;  %v7018_v50 = vld [vmem:[%s9775_s1 + $0x448] sm:$0xf0] }
 0x35f   :  { %v2380_v32 = vpop.f32.mrf.mxu1 }
 0x362   :  { %5999 = vmatmul.msk.bf16.gmra.mxu1 %vm502_vm0, %v5939_v38  ;;  %v2381_v38 = vadd.f32 %v2380_v32, %v2292_v46  ;;  %v2219_v13 = vpop.f32.mrf.mxu2  ;;  %v2308_v26 = vpop.f32.mrf.mxu0  ;;  %v5978_v32 = vld [vmem:[%s9775_s1 + $0x468] sm:$0xf]  ;;  %v7023_v46 = vld [vmem:[%s9775_s1 + $0x470] sm:$0xf0] }
 0x363   :  { %v5979_v0 = vor.u32 %v7023_v46, %v5978_v32 }
 0x364   :  { %2345 = vmatmul.bf16.gmra.mxu0 %v5971_v36  ;;  %v7022_v36 = vld [vmem:[%s9775_s1 + $0x46c] sm:$0xf] }
 0x367   :  { %v2382_v16 = vpop.f32.mrf.mxu1 }
 0x368   :  { %v2383_v21 = vadd.f32 %v2382_v16, %v2294_v31  ;;  %v8775_v31 = vpop.f32.mrf.mxu3  ;;  %v2299_v16 = vadd.f32 %v2298_v45, %v2209_v18  ;;  %v5962_v45 = vld [vmem:[%s9775_s1 + $0x440] sm:$0xf] }
 0x369   :  { %9815 = vst [vmem:[#allocation21_spill] sm:$0xff] %v8775_v31  ;;  %v5963_v3 = vor.u32 %v7018_v50, %v5962_v45  ;;  %v7021_v45 = vld [vmem:[%s9775_s1 + $0x460] sm:$0xf0] }
 0x36a   :  { %v2448_v19 = vpack.c.bf16 %v2383_v21, %v2381_v38  ;;  %v5980_v38 = vld [vmem:[%s9775_s1 + $0x474] sm:$0xf0]  ;;  %v2222_v32 = vpop.f32.mrf.mxu2  ;;  %v2311_v46 = vpop.f32.mrf.mxu0 }
 0x36c   :  { %6032 = vmatmul.msk.bf16.gmra.mxu3 %vm1516_vm2, %v2448_v19  ;;  %v5983_v19 = vor.u32 %v7022_v36, %v5980_v38  ;;  %v2304_v38 = vadd.f32 %v2303_v28, %v2214_v58  ;;  %v2307_v58 = vadd.f32 %v2306_v20, %v2217_v11 }
 0x36d   :  { %2261 = vmatmul.bf16.gmra.mxu2 %v5979_v0 }
 0x36f   :  { %v2385_v14 = vpop.f32.mrf.mxu1 }
 0x370   :  { %v2386_v25 = vadd.f32 %v2385_v14, %v2297_v41  ;;  %v8786_v0 = vpop.f32.mrf.mxu3 }
 0x371   :  { %9816 = vst [vmem:[#allocation22_spill] sm:$0xff] %v8786_v0 }
 0x372   :  { %6000 = vmatmul.msk.bf16.gmra.mxu1 %vm502_vm0, %v5951_v24  ;;  %v2224_v14 = vpop.f32.mrf.mxu2  ;;  %v2313_v41 = vpop.f32.mrf.mxu0 }
 0x374   :  { %2350 = vmatmul.bf16.gmra.mxu0 %v5983_v19 }
 0x377   :  { %v2387_v21 = vpop.f32.mrf.mxu1 }
 0x378   :  { %v2388_v54 = vadd.f32 %v2387_v21, %v2299_v16  ;;  %v2302_v16 = vadd.f32 %v8728_v55, %v8726_v34  ;;  %v8798_v36 = vpop.f32.mrf.mxu3 }
 0x379   :  { %9817 = vst [vmem:[#allocation23_spill] sm:$0xff] %v8798_v36 }
 0x37a   :  { %v2449_v24 = vpack.c.bf16 %v2388_v54, %v2386_v25  ;;  %v2227_v50 = vpop.f32.mrf.mxu2 }
 0x37c   :  { %6033 = vmatmul.msk.bf16.gmra.mxu3 %vm1516_vm2, %v2449_v24  ;;  %v5974_v24 = vld [vmem:[%s9775_s1 + $0x458] sm:$0xf] }
 0x37d   :  { %v5975_v34 = vor.u32 %v7021_v45, %v5974_v24  ;;  %v7024_v24 = vld [vmem:[%s9775_s1 + $0x478] sm:$0xf0] }
 0x37f   :  { %v2390_v18 = vpop.f32.mrf.mxu1 }
 0x380   :  { %v2391_v19 = vadd.f32 %v2390_v18, %v2302_v16  ;;  %v8807_v55 = vpop.f32.mrf.mxu3  ;;  %v2309_v18 = vadd.f32 %v2308_v26, %v2219_v13 }
 0x381   :  { %9818 = vst [vmem:[#allocation24_spill] sm:$0xff] %v8807_v55 }
 0x382   :  { %6001 = vmatmul.msk.bf16.gmra.mxu1 %vm502_vm0, %v5963_v3  ;;  %v2316_v3 = vpop.f32.mrf.mxu0  ;;  %v2229_v16 = vpop.f32.mrf.mxu2 }
 0x387   :  { %v2392_v21 = vpop.f32.mrf.mxu1 }
 0x388   :  { %v2393_v25 = vadd.f32 %v2392_v21, %v2304_v38  ;;  %v8810_v36 = vpop.f32.mrf.mxu3 }
 0x389   :  { %9819 = vst [vmem:[#allocation25_spill] sm:$0xff] %v8810_v36 }
 0x38a   :  { %v2450_v54 = vpack.c.bf16 %v2393_v25, %v2391_v19  ;;  %v2318_v38 = vpop.f32.mrf.mxu0  ;;  %v2232_v20 = vpop.f32.mrf.mxu2 }
 0x38b   :  { %v2319_v60 = vadd.f32 %v2318_v38, %v2229_v16 }
 0x38c   :  { %6034 = vmatmul.msk.bf16.gmra.mxu3 %vm1516_vm2, %v2450_v54  ;;  %v5986_v54 = vld [vmem:[%s9775_s1 + $0x470] sm:$0xf] }
 0x38d   :  { %v5987_v11 = vor.u32 %v7024_v24, %v5986_v54  ;;  %v2317_v54 = vadd.f32 %v2316_v3, %v2227_v50  ;;  %v8833_v3 = vld [vmem:[%s9777_s3] ss:$0 sm:$0xff] }
 0x38f   :  { %v2395_v28 = vpop.f32.mrf.mxu1 }
 0x390   :  { %v2396_v19 = vadd.f32 %v2395_v28, %v2307_v58  ;;  %v8820_v45 = vpop.f32.mrf.mxu3  ;;  %v2314_v28 = vadd.f32 %v2313_v41, %v2224_v14  ;;  %v1746_v41 = vadd.f32 %v8229_v8, %v8329_v5 }
 0x391   :  { %9820 = vst [vmem:[#allocation26_spill] sm:$0xff] %v8820_v45 }
 0x392   :  { %6002 = vmatmul.msk.bf16.gmra.mxu1 %vm502_vm0, %v5975_v34  ;;  %v2321_v13 = vpop.f32.mrf.mxu0  ;;  %v2312_v34 = vadd.f32 %v2311_v46, %v2222_v32 }
 0x393   :  { %v2322_v50 = vadd.f32 %v2321_v13, %v2232_v20 }
 0x397   :  { %v2397_v21 = vpop.f32.mrf.mxu1 }
 0x398   :  { %v2398_v25 = vadd.f32 %v2397_v21, %v2309_v18  ;;  %v8823_v55 = vpop.f32.mrf.mxu3 }
 0x39a   :  { %v2451_v0 = vpack.c.bf16 %v2398_v25, %v2396_v19  ;;  %v2234_v25 = vpop.f32.mrf.mxu2  ;;  %v2323_v36 = vpop.f32.mrf.mxu0 }
 0x39b   :  { %v2324_v16 = vadd.f32 %v2323_v36, %v2234_v25 }
 0x39c   :  { %6035 = vmatmul.msk.bf16.gmra.mxu3 %vm1516_vm2, %v2451_v0 }
 0x39f   :  { %v2400_v26 = vpop.f32.mrf.mxu1 }
 0x3a0   :  { %v2401_v18 = vadd.f32 %v2400_v26, %v2312_v34 }
 0x3a2   :  { %6003 = vmatmul.msk.bf16.gmra.mxu1 %vm502_vm0, %v5987_v11  ;;  %v2237_v24 = vpop.f32.mrf.mxu2  ;;  %v2326_v31 = vpop.f32.mrf.mxu0 }
 0x3a3   :  { %v8825_v11 = vpop.f32.mrf.mxu3 }
 0x3a7   :  { %v2402_v58 = vpop.f32.mrf.mxu1 }
 0x3a8   :  { %v2403_v21 = vadd.f32 %v2402_v58, %v2314_v28 }
 0x3aa   :  { %v2452_v19 = vpack.c.bf16 %v2403_v21, %v2401_v18  ;;  %v2239_v26 = vpop.f32.mrf.mxu2  ;;  %v2328_v34 = vpop.f32.mrf.mxu0 }
 0x3ac   :  { %6036 = vmatmul.msk.bf16.gmra.mxu3 %vm1516_vm2, %v2452_v19 }
 0x3af   :  { %v2405_v0 = vpop.f32.mrf.mxu1 }
 0x3b0   :  { %v2406_v32 = vadd.f32 %v2405_v0, %v2317_v54 }
 0x3b2   :  { %v2242_v0 = vpop.f32.mrf.mxu2  ;;  %v2331_v54 = vpop.f32.mrf.mxu0 }
 0x3b7   :  { %v2407_v45 = vpop.f32.mrf.mxu1 }
 0x3b8   :  { %v2408_v46 = vadd.f32 %v2407_v45, %v2319_v60  ;;  %v1748_v60 = vadd.f32 %v8244_v35, %v8332_v15  ;;  %v1751_v35 = vadd.f32 %v8253_v48, %v8336_v62 }
 0x3ba   :  { %v2453_v14 = vpack.c.bf16 %v2408_v46, %v2406_v32 }
 0x3bc   :  { %6037 = vmatmul.msk.bf16.gmra.mxu3 %vm1516_vm2, %v2453_v14 }
 0x3bf   :  { %v2410_v28 = vpop.f32.mrf.mxu1  ;;  %v2558_v58 = vpop.f32.mrf.mxu3 }
 0x3c0   :  { %v2638_v18 = vadd.f32 %v2558_v58, %v1746_v41  ;;  %v2411_v21 = vadd.f32 %v2410_v28, %v2322_v50  ;;  %v2244_v41 = vpop.f32.mrf.mxu2  ;;  %v2333_v28 = vpop.f32.mrf.mxu0  ;;  %v2327_v58 = vadd.f32 %v2326_v31, %v2237_v24  ;;  %v2329_v50 = vadd.f32 %v2328_v34, %v2239_v26 }
 0x3c2   :  { %v2674_v8 = vadd.f32 %v8833_v3, %v2638_v18  ;;  %v1753_v18 = vadd.f32 %v8268_v1, %v8339_v59  ;;  %v1756_v1 = vadd.f32 %v8283_v23, %v8343_v53 }
 0x3c4   :  { %v2706_v13 = vmax.f32 %v2674_v8, 0.0 }
 0x3c7   :  { %v2412_v38 = vpop.f32.mrf.mxu1  ;;  %v2560_v45 = vpop.f32.mrf.mxu3 }
 0x3c8   :  { %v2413_v5 = vadd.f32 %v2412_v38, %v2324_v16  ;;  %v2639_v19 = vadd.f32 %v2560_v45, %v1748_v60  ;;  %v2336_v31 = vpop.f32.mrf.mxu0 }
 0x3ca   :  { %v2454_v32 = vpack.c.bf16 %v2413_v5, %v2411_v21  ;;  %v2675_v20 = vadd.f32 %v8833_v3, %v2639_v19 }
 0x3cc   :  { %v2707_v46 = vmax.f32 %v2675_v20, 0.0  ;;  %6038 = vmatmul.msk.bf16.gmra.mxu3 %vm1516_vm2, %v2454_v32  ;;  %v2247_v32 = vpop.f32.mrf.mxu2  ;;  %v2332_v20 = vadd.f32 %v2331_v54, %v2242_v0 }
 0x3ce   :  { %v8842_v15 = vpack.c.bf16 %v2707_v46, %v2706_v13  ;;  %v1758_v13 = vadd.f32 %v8299_v39, %v8346_v52  ;;  %v2334_v46 = vadd.f32 %v2333_v28, %v2244_v41  ;;  %v1761_v39 = vadd.f32 %v8308_v2, %v8350_v56 }
 0x3cf   :  { %v2415_v36 = vpop.f32.mrf.mxu1  ;;  %v2563_v25 = vpop.f32.mrf.mxu3 }
 0x3d0   :  { %v2640_v14 = vadd.f32 %v2563_v25, %v1751_v35  ;;  %v2416_v38 = vadd.f32 %v2415_v36, %v2327_v58  ;;  %v2338_v36 = vpop.f32.mrf.mxu0 }
 0x3d2   :  { %v2676_v45 = vadd.f32 %v8833_v3, %v2640_v14 }
 0x3d4   :  { %v2708_v5 = vmax.f32 %v2676_v45, 0.0  ;;  %v2249_v35 = vpop.f32.mrf.mxu2 }
 0x3d7   :  { %v2417_v60 = vpop.f32.mrf.mxu1  ;;  %v2565_v16 = vpop.f32.mrf.mxu3 }
 0x3d8   :  { %v2418_v21 = vadd.f32 %v2417_v60, %v2329_v50  ;;  %v2641_v8 = vadd.f32 %v2565_v16, %v1753_v18  ;;  %v2341_v45 = vpop.f32.mrf.mxu0 }
 0x3da   :  { %v2455_v48 = vpack.c.bf16 %v2418_v21, %v2416_v38  ;;  %v2677_v62 = vadd.f32 %v8833_v3, %v2641_v8  ;;  %v2337_v21 = vadd.f32 %v2336_v31, %v2247_v32  ;;  %v1763_v8 = vadd.f32 %v8318_v7, %v8353_v12 }
 0x3db   :  { %v1766_v7 = vadd.f32 %v8479_v17, %v8357_v42 }
 0x3dc   :  { %v2709_v19 = vmax.f32 %v2677_v62, 0.0  ;;  %6039 = vmatmul.msk.bf16.gmra.mxu3 %vm1516_vm2, %v2455_v48  ;;  %v2252_v28 = vpop.f32.mrf.mxu2  ;;  %v2339_v48 = vadd.f32 %v2338_v36, %v2249_v35 }
 0x3dd   :  { %v2342_v36 = vadd.f32 %v2341_v45, %v2252_v28  ;;  %v1771_v45 = vadd.f32 %v8507_v63, %v8364_v37 }
 0x3de   :  { %v8851_v59 = vpack.c.bf16 %v2709_v19, %v2708_v5 }
 0x3df   :  { %v2420_v24 = vpop.f32.mrf.mxu1  ;;  %v2568_v26 = vpop.f32.mrf.mxu3 }
 0x3e0   :  { %v2642_v34 = vadd.f32 %v2568_v26, %v1756_v1  ;;  %v2421_v58 = vadd.f32 %v2420_v24, %v2332_v20  ;;  %v2343_v20 = vpop.f32.mrf.mxu0 }
 0x3e2   :  { %v2678_v18 = vadd.f32 %v8833_v3, %v2642_v34 }
 0x3e4   :  { %v2710_v16 = vmax.f32 %v2678_v18, 0.0  ;;  %v2254_v34 = vpop.f32.mrf.mxu2 }
 0x3e5   :  { %v2344_v18 = vadd.f32 %v2343_v20, %v2254_v34 }
 0x3e7   :  { %v2422_v25 = vpop.f32.mrf.mxu1  ;;  %v2570_v14 = vpop.f32.mrf.mxu3 }
 0x3e8   :  { %v2423_v50 = vadd.f32 %v2422_v25, %v2334_v46  ;;  %v2643_v60 = vadd.f32 %v2570_v14, %v1758_v13  ;;  %v2346_v14 = vpop.f32.mrf.mxu0 }
 0x3ea   :  { %v2456_v23 = vpack.c.bf16 %v2423_v50, %v2421_v58  ;;  %v2679_v53 = vadd.f32 %v8833_v3, %v2643_v60  ;;  %v1768_v58 = vadd.f32 %v8490_v57, %v8360_v49 }
 0x3ec   :  { %v2711_v38 = vmax.f32 %v2679_v53, 0.0  ;;  %6040 = vmatmul.msk.bf16.gmra.mxu3 %vm1516_vm2, %v2456_v23  ;;  %v2257_v25 = vpop.f32.mrf.mxu2 }
 0x3ee   :  { %v8860_v52 = vpack.c.bf16 %v2711_v38, %v2710_v16 }
 0x3ef   :  { %v2425_v0 = vpop.f32.mrf.mxu1  ;;  %v2573_v54 = vpop.f32.mrf.mxu3 }
 0x3f0   :  { %v2644_v41 = vadd.f32 %v2573_v54, %v1761_v39  ;;  %v2426_v19 = vadd.f32 %v2425_v0, %v2337_v21  ;;  %v2347_v21 = vadd.f32 %v2346_v14, %v2257_v25  ;;  %v1778_v25 = vadd.f32 %v8563_v47, %v8398_v4 }
 0x3f1   :  { %v1781_v4 = vadd.f32 %v8586_v29, %v8402_v30  ;;  %v1788_v30 = vadd.f32 %v8649_v61, %v8440_v22 }
 0x3f2   :  { %v2680_v1 = vadd.f32 %v8833_v3, %v2644_v41  ;;  %v2348_v41 = vpop.f32.mrf.mxu0 }
 0x3f4   :  { %v2712_v13 = vmax.f32 %v2680_v1, 0.0  ;;  %v2259_v54 = vpop.f32.mrf.mxu2 }
 0x3f7   :  { %v2427_v62 = vpop.f32.mrf.mxu1  ;;  %v2575_v5 = vpop.f32.mrf.mxu3 }
 0x3f8   :  { %v2428_v24 = vadd.f32 %v2427_v62, %v2339_v48  ;;  %v2645_v26 = vadd.f32 %v2575_v5, %v1763_v8  ;;  %v1773_v48 = vadd.f32 %v8523_v10, %v8379_v43  ;;  %v2349_v62 = vadd.f32 %v2348_v41, %v2259_v54 }
 0x3f9   :  { %v1776_v10 = vadd.f32 %v8545_v40, %v8383_v6 }
 0x3fa   :  { %v2457_v2 = vpack.c.bf16 %v2428_v24, %v2426_v19  ;;  %v2681_v56 = vadd.f32 %v8833_v3, %v2645_v26  ;;  %v2351_v34 = vpop.f32.mrf.mxu0 }
 0x3fc   :  { %v2713_v46 = vmax.f32 %v2681_v56, 0.0  ;;  %6041 = vmatmul.msk.bf16.gmra.mxu3 %vm1516_vm2, %v2457_v2  ;;  %v2262_v56 = vpop.f32.mrf.mxu2 }
 0x3fe   :  { %v8869_v12 = vpack.c.bf16 %v2713_v46, %v2712_v13 }
 0x3ff   :  { %v2430_v32 = vpop.f32.mrf.mxu1  ;;  %v2578_v31 = vpop.f32.mrf.mxu3 }
 0x400   :  { %v2646_v35 = vadd.f32 %v2578_v31, %v1766_v7  ;;  %v2431_v23 = vadd.f32 %v2430_v32, %v2342_v36 }
 0x402   :  { %v2682_v53 = vadd.f32 %v8833_v3, %v2646_v35  ;;  %v2353_v31 = vpop.f32.mrf.mxu0  ;;  %v2352_v35 = vadd.f32 %v2351_v34, %v2262_v56 }
 0x404   :  { %v2714_v39 = vmax.f32 %v2682_v53, 0.0  ;;  %v2264_v32 = vpop.f32.mrf.mxu2 }
 0x405   :  { %v2354_v14 = vadd.f32 %v2353_v31, %v2264_v32  ;;  %v9827_v32 = vld [vmem:[#allocation18_spill] sm:$0xff] }
 0x407   :  { %v2432_v50 = vpop.f32.mrf.mxu1  ;;  %v2580_v60 = vpop.f32.mrf.mxu3 }
 0x408   :  { %v2433_v16 = vadd.f32 %v2432_v50, %v2344_v18  ;;  %v2647_v38 = vadd.f32 %v2580_v60, %v1768_v58 }
 0x40a   :  { %v2458_v42 = vpack.c.bf16 %v2433_v16, %v2431_v23  ;;  %v2683_v17 = vadd.f32 %v8833_v3, %v2647_v38 }
 0x40c   :  { %v2715_v0 = vmax.f32 %v2683_v17, 0.0  ;;  %6042 = vmatmul.msk.bf16.gmra.mxu3 %vm1516_vm2, %v2458_v42 }
 0x40e   :  { %v8876_v28 = vpack.c.bf16 %v2715_v0, %v2714_v39  ;;  %v1783_v39 = vadd.f32 %v8613_v44, %v8417_v27 }
 0x40f   :  { %v2435_v49 = vpop.f32.mrf.mxu1  ;;  %v2583_v57 = vpop.f32.mrf.mxu3 }
 0x410   :  { %v2648_v8 = vadd.f32 %v2583_v57, %v1771_v45  ;;  %v2436_v1 = vadd.f32 %v2435_v49, %v2347_v21  ;;  %v1786_v21 = vadd.f32 %v8634_v9, %v8425_v33  ;;  %v9821_v9 = vld [vmem:[#allocation15_spill] sm:$0xff] }
 0x412   :  { %v2684_v24 = vadd.f32 %v8833_v3, %v2648_v8 }
 0x414   :  { %v2716_v46 = vmax.f32 %v2684_v24, 0.0 }
 0x417   :  { %v2437_v5 = vpop.f32.mrf.mxu1  ;;  %v2585_v19 = vpop.f32.mrf.mxu3 }
 0x418   :  { %v2438_v26 = vadd.f32 %v2437_v5, %v2349_v62  ;;  %v2649_v2 = vadd.f32 %v2585_v19, %v1773_v48 }
 0x41a   :  { %v2459_v20 = vpack.c.bf16 %v2438_v26, %v2436_v1  ;;  %v2685_v13 = vadd.f32 %v8833_v3, %v2649_v2  ;;  %v1791_v1 = vadd.f32 %v9821_v9, %v8448_v51  ;;  %v9822_v26 = vld [vmem:[#allocation2_spill] sm:$0xff]  ;;  %v9823_v2 = vld [vmem:[#allocation16_spill] sm:$0xff]  ;;  %v9836_v9 = vld [vmem:[#allocation9_spill] sm:$0xff] }
 0x41b   :  { %v1793_v56 = vadd.f32 %v9823_v2, %v9822_v26  ;;  %v9838_v26 = vld [vmem:[#allocation10_spill] sm:$0xff]  ;;  %v9839_v2 = vld [vmem:[#allocation24_spill] sm:$0xff] }
 0x41c   :  { %v2717_v37 = vmax.f32 %v2685_v13, 0.0  ;;  %6043 = vmatmul.msk.bf16.gmra.mxu3 %vm1516_vm2, %v2459_v20 }
 0x41e   :  { %v2743_v63 = vpack.c.bf16 %v2717_v37, %v2716_v46 }
 0x41f   :  { %v2440_v7 = vpop.f32.mrf.mxu1  ;;  %v2588_v43 = vpop.f32.mrf.mxu3 }
 0x420   :  { %v2650_v36 = vadd.f32 %v2588_v43, %v1776_v10  ;;  %v2441_v50 = vadd.f32 %v2440_v7, %v2352_v35  ;;  %v9826_v10 = vld [vmem:[#allocation4_spill] sm:$0xff] }
 0x421   :  { %v1798_v31 = vadd.f32 %v9827_v32, %v9826_v10  ;;  %v9842_v32 = vld [vmem:[#allocation12_spill] sm:$0xff] }
 0x422   :  { %v2686_v60 = vadd.f32 %v8833_v3, %v2650_v36 }
 0x424   :  { %v2718_v42 = vmax.f32 %v2686_v60, 0.0 }
 0x427   :  { %v2442_v58 = vpop.f32.mrf.mxu1  ;;  %v2590_v18 = vpop.f32.mrf.mxu3 }
 0x428   :  { %v2443_v23 = vadd.f32 %v2442_v58, %v2354_v14  ;;  %v2651_v53 = vadd.f32 %v2590_v18, %v1778_v25  ;;  %v9828_v18 = vld [vmem:[#allocation5_spill] sm:$0xff] }
 0x42a   :  { %v2460_v16 = vpack.c.bf16 %v2443_v23, %v2441_v50  ;;  %v2687_v38 = vadd.f32 %v8833_v3, %v2651_v53 }
 0x42c   :  { %v2719_v6 = vmax.f32 %v2687_v38, 0.0  ;;  %6044 = vmatmul.msk.bf16.gmra.mxu3 %vm1516_vm2, %v2460_v16  ;;  %v9830_v16 = vld [vmem:[#allocation6_spill] sm:$0xff]  ;;  %v9831_v38 = vld [vmem:[#allocation20_spill] sm:$0xff] }
 0x42e   :  { %v2744_v40 = vpack.c.bf16 %v2719_v6, %v2718_v42  ;;  %v1803_v42 = vadd.f32 %v9831_v38, %v9830_v16  ;;  %v6047_v38 = vld [vmem:[%s9778_s4] sm:$0xf] }
 0x42f   :  { %v2593_v17 = vpop.f32.mrf.mxu3 }
 0x430   :  { %v2652_v47 = vadd.f32 %v2593_v17, %v1781_v4 }
 0x432   :  { %v2688_v54 = vadd.f32 %v8833_v3, %v2652_v47 }
 0x434   :  { %v2720_v57 = vmax.f32 %v2688_v54, 0.0  ;;  %v9833_v54 = vld [vmem:[#allocation21_spill] sm:$0xff] }
 0x437   :  { %v2595_v0 = vpop.f32.mrf.mxu3 }
 0x438   :  { %v2653_v41 = vadd.f32 %v2595_v0, %v1783_v39  ;;  %v9832_v0 = vld [vmem:[#allocation7_spill] sm:$0xff] }
 0x43a   :  { %v2689_v49 = vadd.f32 %v8833_v3, %v2653_v41  ;;  %v1806_v41 = vadd.f32 %v9833_v54, %v9832_v0  ;;  %v6127_v0 = vld [vmem:[%s9778_s4 + $0x80] sm:$0xf]  ;;  %v7046_v54 = vld [vmem:[%s9778_s4 + $0x84] sm:$0xf0] }
 0x43c   :  { %v2721_v45 = vmax.f32 %v2689_v49, 0.0 }
 0x43e   :  { %v2745_v8 = vpack.c.bf16 %v2721_v45, %v2720_v57 }
 0x43f   :  { %v2598_v48 = vpop.f32.mrf.mxu3 }
 0x440   :  { %v2654_v62 = vadd.f32 %v2598_v48, %v1786_v21  ;;  %2850 = vmatpush.bf16.msrb.mxu2 %v2745_v8  ;;  %3045 = vmatpush.bf16.msrb.mxu1 %v2745_v8  ;;  %v9834_v21 = vld [vmem:[#allocation8_spill] sm:$0xff]  ;;  %v9835_v8 = vld [vmem:[#allocation22_spill] sm:$0xff] }
 0x441   :  { %v1808_v48 = vadd.f32 %v9835_v8, %v9834_v21  ;;  %v6055_v21 = vld [vmem:[%s9778_s4 + $0x10] sm:$0xf] }
 0x442   :  { %v2690_v29 = vadd.f32 %v8833_v3, %v2654_v62 }
 0x444   :  { %2851 = vmatpush.bf16.msrb.mxu2 %v2744_v40  ;;  %3046 = vmatpush.bf16.msrb.mxu1 %v2744_v40  ;;  %v2722_v19 = vmax.f32 %v2690_v29, 0.0 }
 0x447   :  { %v2600_v27 = vpop.f32.mrf.mxu3 }
 0x448   :  { %v2655_v44 = vadd.f32 %v2600_v27, %v1788_v30  ;;  %2852 = vmatpush.bf16.msrb.mxu2 %v2743_v63  ;;  %3047 = vmatpush.bf16.msrb.mxu1 %v2743_v63 }
 0x44a   :  { %v2691_v5 = vadd.f32 %v8833_v3, %v2655_v44 }
 0x44c   :  { %v2723_v33 = vmax.f32 %v2691_v5, 0.0  ;;  %2853 = vmatpush.bf16.msrb.mxu2 %v8876_v28  ;;  %3048 = vmatpush.bf16.msrb.mxu1 %v8876_v28 }
 0x44e   :  { %v8908_v24 = vpack.c.bf16 %v2723_v33, %v2722_v19 }
 0x44f   :  { %v2603_v22 = vpop.f32.mrf.mxu3 }
 0x450   :  { %v2656_v61 = vadd.f32 %v2603_v22, %v1791_v1  ;;  %2854 = vmatpush.bf16.msrb.mxu2 %v8869_v12  ;;  %3049 = vmatpush.bf16.msrb.mxu1 %v8869_v12  ;;  %v9825_v12 = vld [vmem:[#allocation17_spill] sm:$0xff]  ;;  %v9837_v1 = vld [vmem:[#allocation23_spill] sm:$0xff] }
 0x451   :  { %v1811_v22 = vadd.f32 %v9837_v1, %v9836_v9  ;;  %v6143_v1 = vld [vmem:[%s9778_s4 + $0xa0] sm:$0xf] }
 0x452   :  { %v2692_v28 = vadd.f32 %v8833_v3, %v2656_v61 }
 0x454   :  { %2855 = vmatpush.bf16.msrb.mxu2 %v8860_v52  ;;  %3050 = vmatpush.bf16.msrb.mxu1 %v8860_v52  ;;  %v2724_v13 = vmax.f32 %v2692_v28, 0.0  ;;  %v9824_v52 = vld [vmem:[#allocation3_spill] sm:$0xff] }
 0x455   :  { %v1796_v37 = vadd.f32 %v9825_v12, %v9824_v52 }
 0x457   :  { %v2605_v34 = vpop.f32.mrf.mxu3 }
 0x458   :  { %v2657_v20 = vadd.f32 %v2605_v34, %v1793_v56  ;;  %2856 = vmatpush.bf16.msrb.mxu2 %v8851_v59  ;;  %3051 = vmatpush.bf16.msrb.mxu1 %v8851_v59  ;;  %v1813_v56 = vadd.f32 %v9839_v2, %v9838_v26  ;;  %v7036_v26 = vld [vmem:[%s9778_s4 + $0x34] sm:$0xf0] }
 0x45a   :  { %v2693_v51 = vadd.f32 %v8833_v3, %v2657_v20 }
 0x45c   :  { %v2725_v46 = vmax.f32 %v2693_v51, 0.0  ;;  %2857 = vmatpush.bf16.msrb.mxu2 %v8842_v15  ;;  %3052 = vmatpush.bf16.msrb.mxu1 %v8842_v15  ;;  %v9829_v15 = vld [vmem:[#allocation19_spill] sm:$0xff] }
 0x45d   :  { %v1801_v50 = vadd.f32 %v9829_v15, %v9828_v18 }
 0x45e   :  { %v8924_v63 = vpack.c.bf16 %v2725_v46, %v2724_v13 }
 0x45f   :  { %v2608_v7 = vpop.f32.mrf.mxu3 }
 0x460   :  { %v2658_v43 = vadd.f32 %v2608_v7, %v1796_v37  ;;  %v9840_v37 = vld [vmem:[#allocation11_spill] sm:$0xff]  ;;  %v9841_v7 = vld [vmem:[#allocation25_spill] sm:$0xff] }
 0x462   :  { %v2694_v59 = vadd.f32 %v8833_v3, %v2658_v43  ;;  %v1816_v43 = vadd.f32 %v9841_v7, %v9840_v37  ;;  %v7038_v37 = vld [vmem:[%s9778_s4 + $0x44] sm:$0xf0] }
 0x464   :  { %v2726_v14 = vmax.f32 %v2694_v59, 0.0 }
 0x467   :  { %v2610_v35 = vpop.f32.mrf.mxu3 }
 0x468   :  { %v2659_v36 = vadd.f32 %v2610_v35, %v1798_v31  ;;  %v9843_v31 = vld [vmem:[#allocation26_spill] sm:$0xff] }
 0x469   :  { %v1818_v35 = vadd.f32 %v9843_v31, %v9842_v32  ;;  %v7033_v32 = vld [vmem:[%s9778_s4 + $0x24] sm:$0xf]  ;;  %v6065_v31 = vld [vmem:[%s9778_s4 + $0x28] sm:$0xf0] }
 0x46a   :  { %v2695_v25 = vadd.f32 %v8833_v3, %v2659_v36 }
 0x46c   :  { %v2727_v58 = vmax.f32 %v2695_v25, 0.0 }
 0x46e   :  { %v8932_v60 = vpack.c.bf16 %v2727_v58, %v2726_v14 }
 0x46f   :  { %v2613_v23 = vpop.f32.mrf.mxu3 }
 0x470   :  { %v2660_v53 = vadd.f32 %v2613_v23, %v1801_v50  ;;  %v9844_v23 = vld [vmem:[#allocation13_spill] sm:$0xff] }
 0x472   :  { %v2696_v40 = vadd.f32 %v8833_v3, %v2660_v53  ;;  %v1821_v53 = vadd.f32 %v8823_v55, %v9844_v23  ;;  %v6153_v23 = vld [vmem:[%s9778_s4 + $0xb8] sm:$0xf0] }
 0x474   :  { %v2728_v47 = vmax.f32 %v2696_v40, 0.0 }
 0x477   :  { %v2615_v6 = vpop.f32.mrf.mxu3 }
 0x478   :  { %v2661_v17 = vadd.f32 %v2615_v6, %v1803_v42  ;;  %v7030_v42 = vld [vmem:[%s9778_s4 + $0x4] sm:$0xf0]  ;;  %v9845_v6 = vld [vmem:[#allocation14_spill] sm:$0xff] }
 0x479   :  { %v1823_v40 = vadd.f32 %v8825_v11, %v9845_v6  ;;  %v6167_v6 = vld [vmem:[%s9778_s4 + $0xd0] sm:$0xf] }
 0x47a   :  { %v2697_v4 = vadd.f32 %v8833_v3, %v2661_v17  ;;  %v6048_v17 = vor.u32 %v7030_v42, %v6047_v38 }
 0x47c   :  { %v2729_v39 = vmax.f32 %v2697_v4, 0.0  ;;  %2858 = vmatmul.bf16.vlgmr.msrb.gmra.mxu2 %v6048_v17 }
 0x47e   :  { %v8940_v49 = vpack.c.bf16 %v2729_v39, %v2728_v47 }
 0x47f   :  { %v2618_v57 = vpop.f32.mrf.mxu3 }
 0x480   :  { %v2662_v45 = vadd.f32 %v2618_v57, %v1806_v41 }
 0x482   :  { %v2698_v30 = vadd.f32 %v8833_v3, %v2662_v45  ;;  %v6128_v45 = vor.u32 %v7046_v54, %v6127_v0  ;;  %v6161_v0 = vld [vmem:[%s9778_s4 + $0xc8] sm:$0xf0]  ;;  %v7037_v54 = vld [vmem:[%s9778_s4 + $0x44] sm:$0xf] }
 0x484   :  { %v2730_v44 = vmax.f32 %v2698_v30, 0.0  ;;  %3053 = vmatmul.bf16.vlgmr.msrb.gmra.mxu1 %v6128_v45 }
 0x487   :  { %v2620_v62 = vpop.f32.mrf.mxu3 }
 0x488   :  { %v2663_v27 = vadd.f32 %v2620_v62, %v1808_v48  ;;  %v6135_v48 = vld [vmem:[%s9778_s4 + $0x90] sm:$0xf]  ;;  %v7048_v62 = vld [vmem:[%s9778_s4 + $0x94] sm:$0xf0] }
 0x489   :  { %v6136_v30 = vor.u32 %v7048_v62, %v6135_v48  ;;  %v7044_v48 = vld [vmem:[%s9778_s4 + $0x74] sm:$0xf0] }
 0x48a   :  { %v2699_v29 = vadd.f32 %v8833_v3, %v2663_v27  ;;  %v6063_v27 = vld [vmem:[%s9778_s4 + $0x20] sm:$0xf] }
 0x48c   :  { %v2731_v5 = vmax.f32 %v2699_v29, 0.0  ;;  %v7034_v29 = vld [vmem:[%s9778_s4 + $0x24] sm:$0xf0] }
 0x48e   :  { %v2750_v19 = vpack.c.bf16 %v2731_v5, %v2730_v44  ;;  %v6064_v44 = vor.u32 %v7034_v29, %v6063_v27  ;;  %v7045_v5 = vld [vmem:[%s9778_s4 + $0x84] sm:$0xf]  ;;  %v6169_v27 = vld [vmem:[%s9778_s4 + $0xd8] sm:$0xf0]  ;;  %v7039_v29 = vld [vmem:[%s9778_s4 + $0x54] sm:$0xf] }
 0x48f   :  { %v2623_v33 = vpop.f32.mrf.mxu3 }
 0x490   :  { %v2664_v61 = vadd.f32 %v2623_v33, %v1811_v22 }
 0x492   :  { %v2700_v28 = vadd.f32 %v8833_v3, %v2664_v61  ;;  %v6071_v61 = vld [vmem:[%s9778_s4 + $0x30] sm:$0xf] }
 0x493   :  { %v6072_v2 = vor.u32 %v7036_v26, %v6071_v61  ;;  %v7066_v61 = vld [vmem:[%s9779_s5 + $0x28] sm:$0xff] }
 0x494   :  { %v2732_v13 = vmax.f32 %v2700_v28, 0.0  ;;  %3058 = vmatmul.bf16.gmra.mxu1 %v6136_v30  ;;  %v6057_v28 = vld [vmem:[%s9778_s4 + $0x18] sm:$0xf0]  ;;  %v7055_v30 = vld [vmem:[%s9778_s4 + $0xd4] sm:$0xf]  ;;  %v7074_v26 = vld [vmem:[%s9779_s5 + $0x68] sm:$0xff] }
 0x497   :  { %v2625_v34 = vpop.f32.mrf.mxu3 }
 0x498   :  { %v2665_v20 = vadd.f32 %v2625_v34, %v1813_v56  ;;  %v7047_v56 = vld [vmem:[%s9778_s4 + $0x94] sm:$0xf] }
 0x499   :  { %v7031_v34 = vld [vmem:[%s9778_s4 + $0x14] sm:$0xf] }
 0x49a   :  { %v2701_v51 = vadd.f32 %v8833_v3, %v2665_v20 }
 0x49c   :  { %v2733_v46 = vmax.f32 %v2701_v51, 0.0  ;;  %v6060_v51 = vor.u32 %v7031_v34, %v6057_v28  ;;  %v6097_v34 = vld [vmem:[%s9778_s4 + $0x68] sm:$0xf0]  ;;  %v7065_v28 = vld [vmem:[%s9779_s5 + $0x20] sm:$0xff] }
 0x49e   :  { %v2751_v52 = vpack.c.bf16 %v2733_v46, %v2732_v13  ;;  %v6151_v13 = vld [vmem:[%s9778_s4 + $0xb0] sm:$0xf]  ;;  %v7052_v46 = vld [vmem:[%s9778_s4 + $0xb4] sm:$0xf0] }
 0x49f   :  { %v2628_v12 = vpop.f32.mrf.mxu3 }
 0x4a0   :  { %v2666_v10 = vadd.f32 %v2628_v12, %v1816_v43  ;;  %v6079_v12 = vld [vmem:[%s9778_s4 + $0x40] sm:$0xf]  ;;  %v7049_v43 = vld [vmem:[%s9778_s4 + $0xa4] sm:$0xf] }
 0x4a1   :  { %v6080_v7 = vor.u32 %v7038_v37, %v6079_v12 }
 0x4a2   :  { %v2702_v36 = vadd.f32 %v8833_v3, %v2666_v10  ;;  %v6145_v10 = vld [vmem:[%s9778_s4 + $0xa8] sm:$0xf0] }
 0x4a4   :  { %v2734_v58 = vmax.f32 %v2702_v36, 0.0  ;;  %v6159_v36 = vld [vmem:[%s9778_s4 + $0xc0] sm:$0xf] }
 0x4a7   :  { %v2630_v59 = vpop.f32.mrf.mxu3 }
 0x4a8   :  { %v2667_v25 = vadd.f32 %v2630_v59, %v1818_v35  ;;  %v6148_v35 = vor.u32 %v7049_v43, %v6145_v10  ;;  %v6068_v59 = vor.u32 %v7033_v32, %v6065_v31  ;;  %v7071_v43 = vld [vmem:[%s9779_s5 + $0x50] sm:$0xff]  ;;  %v6185_v32 = vld [vmem:[%s9778_s4 + $0xf8] sm:$0xf0] }
 0x4a9   :  { %v7059_v10 = vld [vmem:[%s9778_s4 + $0xf4] sm:$0xf] }
 0x4aa   :  { %v2703_v14 = vadd.f32 %v8833_v3, %v2667_v25  ;;  %v7054_v25 = vld [vmem:[%s9778_s4 + $0xc4] sm:$0xf0]  ;;  %v7043_v31 = vld [vmem:[%s9778_s4 + $0x74] sm:$0xf] }
 0x4ac   :  { %v2735_v18 = vmax.f32 %v2703_v14, 0.0  ;;  %v6160_v14 = vor.u32 %v7054_v25, %v6159_v36  ;;  %v7070_v36 = vld [vmem:[%s9779_s5 + $0x48] sm:$0xff]  ;;  %v6188_v25 = vor.u32 %v7059_v10, %v6185_v32 }
 0x4ae   :  { %v2752_v15 = vpack.c.bf16 %v2735_v18, %v2734_v58  ;;  %v6087_v58 = vld [vmem:[%s9778_s4 + $0x50] sm:$0xf]  ;;  %v7040_v18 = vld [vmem:[%s9778_s4 + $0x54] sm:$0xf0] }
 0x4af   :  { %v2633_v50 = vpop.f32.mrf.mxu3 }
 0x4b0   :  { %v2668_v16 = vadd.f32 %v2633_v50, %v1821_v53  ;;  %v7051_v50 = vld [vmem:[%s9778_s4 + $0xb4] sm:$0xf] }
 0x4b1   :  { %v7035_v53 = vld [vmem:[%s9778_s4 + $0x34] sm:$0xf]  ;;  %v6156_v38 = vor.u32 %v7051_v50, %v6153_v23 }
 0x4b2   :  { %v2704_v47 = vadd.f32 %v8833_v3, %v2668_v16  ;;  %v6073_v16 = vld [vmem:[%s9778_s4 + $0x38] sm:$0xf0] }
 0x4b3   :  { %v6076_v42 = vor.u32 %v7035_v53, %v6073_v16 }
 0x4b4   :  { %v2736_v41 = vmax.f32 %v2704_v47, 0.0  ;;  %v7042_v47 = vld [vmem:[%s9778_s4 + $0x64] sm:$0xf0] }
 0x4b7   :  { %v2635_v4 = vpop.f32.mrf.mxu3 }
 0x4b8   :  { %v2669_v39 = vadd.f32 %v2635_v4, %v1823_v40  ;;  %v7056_v40 = vld [vmem:[%s9778_s4 + $0xd4] sm:$0xf0]  ;;  %v6095_v4 = vld [vmem:[%s9778_s4 + $0x60] sm:$0xf] }
 0x4b9   :  { %v6168_v17 = vor.u32 %v7056_v40, %v6167_v6 }
 0x4ba   :  { %v2705_v55 = vadd.f32 %v8833_v3, %v2669_v39  ;;  %v7032_v3 = vld [vmem:[%s9778_s4 + $0x14] sm:$0xf0]  ;;  %v6096_v39 = vor.u32 %v7042_v47, %v6095_v4 }
 0x4bb   :  { %v6056_v8 = vor.u32 %v7032_v3, %v6055_v21  ;;  %v7058_v21 = vld [vmem:[%s9778_s4 + $0xe4] sm:$0xf0] }
 0x4bc   :  { %v2737_v57 = vmax.f32 %v2705_v55, 0.0  ;;  %v7053_v55 = vld [vmem:[%s9778_s4 + $0xc4] sm:$0xf] }
 0x4bd   :  { %2863 = vmatmul.bf16.gmra.mxu2 %v6056_v8  ;;  %v6103_v8 = vld [vmem:[%s9778_s4 + $0x70] sm:$0xf] }
 0x4be   :  { %v2753_v11 = vpack.c.bf16 %v2737_v57, %v2736_v41  ;;  %v6081_v41 = vld [vmem:[%s9778_s4 + $0x48] sm:$0xf0]  ;;  %v6164_v57 = vor.u32 %v7053_v55, %v6161_v0  ;;  %v6104_v62 = vor.u32 %v7044_v48, %v6103_v8 }
 0x4bf   :  { %v6084_v45 = vor.u32 %v7037_v54, %v6081_v41 }
 0x4c0   :  { %2899 = vmatpush.bf16.msrb.mxu0 %v2753_v11  ;;  %3094 = vmatpush.bf16.msrb.mxu3 %v2753_v11  ;;  %v6175_v11 = vld [vmem:[%s9778_s4 + $0xe0] sm:$0xf] }
 0x4c1   :  { %v6176_v3 = vor.u32 %v7058_v21, %v6175_v11 }
 0x4c4   :  { %2900 = vmatpush.bf16.msrb.mxu0 %v2752_v15  ;;  %3095 = vmatpush.bf16.msrb.mxu3 %v2752_v15  ;;  %v6088_v15 = vor.u32 %v7040_v18, %v6087_v58  ;;  %v7061_v18 = vld [vmem:[%s9779_s5] sm:$0xff] }
 0x4c8   :  { %2901 = vmatpush.bf16.msrb.mxu0 %v2751_v52  ;;  %3096 = vmatpush.bf16.msrb.mxu3 %v2751_v52  ;;  %v6152_v52 = vor.u32 %v7052_v46, %v6151_v13  ;;  %v7073_v13 = vld [vmem:[%s9779_s5 + $0x60] sm:$0xff]  ;;  %v7064_v46 = vld [vmem:[%s9779_s5 + $0x18] sm:$0xff] }
 0x4cc   :  { %2902 = vmatpush.bf16.msrb.mxu0 %v2750_v19  ;;  %3097 = vmatpush.bf16.msrb.mxu3 %v2750_v19  ;;  %v7029_v19 = vld [vmem:[%s9778_s4 + $0x4] sm:$0xf] }
 0x4cd   :  { %2868 = vmatmul.bf16.gmra.mxu2 %v6064_v44  ;;  %v6089_v44 = vld [vmem:[%s9778_s4 + $0x58] sm:$0xf0] }
 0x4d0   :  { %2903 = vmatpush.bf16.msrb.mxu0 %v8940_v49  ;;  %3098 = vmatpush.bf16.msrb.mxu3 %v8940_v49  ;;  %v6129_v49 = vld [vmem:[%s9778_s4 + $0x88] sm:$0xf0] }
 0x4d1   :  { %v6132_v33 = vor.u32 %v7045_v5, %v6129_v49  ;;  %v6172_v5 = vor.u32 %v7055_v30, %v6169_v27  ;;  %v6092_v49 = vor.u32 %v7039_v29, %v6089_v44 }
 0x4d4   :  { %2904 = vmatpush.bf16.msrb.mxu0 %v8932_v60  ;;  %3099 = vmatpush.bf16.msrb.mxu3 %v8932_v60  ;;  %v6049_v60 = vld [vmem:[%s9778_s4 + $0x8] sm:$0xf0] }
 0x4d5   :  { %v6052_v9 = vor.u32 %v7029_v19, %v6049_v60  ;;  %v6183_v19 = vld [vmem:[%s9778_s4 + $0xf0] sm:$0xf]  ;;  %v7060_v60 = vld [vmem:[%s9778_s4 + $0xf4] sm:$0xf0] }
 0x4d8   :  { %2905 = vmatpush.bf16.msrb.mxu0 %v8924_v63  ;;  %3100 = vmatpush.bf16.msrb.mxu3 %v8924_v63  ;;  %v7050_v63 = vld [vmem:[%s9778_s4 + $0xa4] sm:$0xf0] }
 0x4d9   :  { %v6144_v22 = vor.u32 %v7050_v63, %v6143_v1  ;;  %v7076_v1 = vld [vmem:[%s9779_s5 + $0x78] sm:$0xff]  ;;  %v7067_v63 = vld [vmem:[%s9779_s5 + $0x30] sm:$0xff] }
 0x4db   :  { %3063 = vmatmul.bf16.gmra.mxu1 %v6144_v22  ;;  %v7075_v22 = vld [vmem:[%s9779_s5 + $0x70] sm:$0xff] }
 0x4dc   :  { %2906 = vmatpush.bf16.msrb.mxu0 %v8908_v24  ;;  %3101 = vmatpush.bf16.msrb.mxu3 %v8908_v24  ;;  %v6137_v24 = vld [vmem:[%s9778_s4 + $0x98] sm:$0xf0] }
 0x4dd   :  { %2873 = vmatmul.bf16.gmra.mxu2 %v6072_v2  ;;  %v6140_v20 = vor.u32 %v7047_v56, %v6137_v24  ;;  %v7057_v2 = vld [vmem:[%s9778_s4 + $0xe4] sm:$0xf]  ;;  %v6177_v56 = vld [vmem:[%s9778_s4 + $0xe8] sm:$0xf0] }
 0x4de   :  { %v7041_v24 = vld [vmem:[%s9778_s4 + $0x64] sm:$0xf] }
 0x4df   :  { %3102 = vmatmul.bf16.vlgmr.msrb.gmra.mxu3 %v6132_v33  ;;  %2907 = vmatmul.bf16.vlgmr.msrb.gmra.mxu0 %v6052_v9  ;;  %v6184_v33 = vor.u32 %v7060_v60, %v6183_v19  ;;  %v7068_v9 = vld [vmem:[%s9779_s5 + $0x38] sm:$0xff] }
 0x4e0   :  { %3231 = vmatpush.bf16.msra.mxu2 %v7068_v9  ;;  %3345 = vmatpush.bf16.msra.mxu0 %v7076_v1 }
 0x4e4   :  { %3232 = vmatpush.bf16.msra.mxu2 %v7067_v63  ;;  %3346 = vmatpush.bf16.msra.mxu0 %v7075_v22 }
 0x4e8   :  { %3233 = vmatpush.bf16.msra.mxu2 %v7066_v61  ;;  %3347 = vmatpush.bf16.msra.mxu0 %v7074_v26 }
 0x4eb   :  { %3068 = vmatmul.bf16.gmra.mxu1 %v6152_v52  ;;  %v7072_v52 = vld [vmem:[%s9779_s5 + $0x58] sm:$0xff] }
 0x4ec   :  { %3234 = vmatpush.bf16.msra.mxu2 %v7065_v28  ;;  %3348 = vmatpush.bf16.msra.mxu0 %v7073_v13 }
 0x4ed   :  { %2878 = vmatmul.bf16.gmra.mxu2 %v6080_v7  ;;  %v7063_v7 = vld [vmem:[%s9779_s5 + $0x10] sm:$0xff] }
 0x4ef   :  { %3107 = vmatmul.bf16.gmra.mxu3 %v6140_v20  ;;  %2912 = vmatmul.bf16.gmra.mxu0 %v6060_v51  ;;  %v6180_v20 = vor.u32 %v7057_v2, %v6177_v56  ;;  %v6100_v51 = vor.u32 %v7041_v24, %v6097_v34 }
 0x4f0   :  { %3235 = vmatpush.bf16.msra.mxu2 %v7064_v46  ;;  %3349 = vmatpush.bf16.msra.mxu0 %v7072_v52 }
 0x4f4   :  { %3236 = vmatpush.bf16.msra.mxu2 %v7063_v7  ;;  %3350 = vmatpush.bf16.msra.mxu0 %v7071_v43 }
 0x4f8   :  { %3351 = vmatpush.bf16.msra.mxu0 %v7070_v36 }
 0x4fb   :  { %3073 = vmatmul.bf16.gmra.mxu1 %v6160_v14 }
 0x4fd   :  { %2883 = vmatmul.bf16.gmra.mxu2 %v6088_v15  ;;  %v7069_v15 = vld [vmem:[%s9779_s5 + $0x40] sm:$0xff] }
 0x4fe   :  { %3352 = vmatpush.bf16.msra.mxu0 %v7069_v15 }
 0x4ff   :  { %3112 = vmatmul.bf16.gmra.mxu3 %v6148_v35  ;;  %2917 = vmatmul.bf16.gmra.mxu0 %v6068_v59  ;;  %v2859_v37 = vpop.f32.mrf.mxu2  ;;  %v6105_v35 = vld [vmem:[%s9778_s4 + $0x78] sm:$0xf0]  ;;  %v7062_v59 = vld [vmem:[%s9779_s5 + $0x8] sm:$0xff] }
 0x500   :  { %v6108_v14 = vor.u32 %v7043_v31, %v6105_v35  ;;  %3237 = vmatpush.bf16.msra.mxu2 %v7062_v59 }
 0x501   :  { %v3054_v12 = vpop.f32.mrf.mxu1 }
 0x504   :  { %3238 = vmatpush.bf16.msra.mxu2 %v7061_v18 }
 0x507   :  { %v2861_v50 = vpop.f32.mrf.mxu2 }
 0x509   :  { %v3056_v58 = vpop.f32.mrf.mxu1 }
 0x50b   :  { %3078 = vmatmul.bf16.gmra.mxu1 %v6168_v17 }
 0x50d   :  { %2888 = vmatmul.bf16.gmra.mxu2 %v6096_v39 }
 0x50f   :  { %3117 = vmatmul.bf16.gmra.mxu3 %v6156_v38  ;;  %2922 = vmatmul.bf16.gmra.mxu0 %v6076_v42 }
 0x511   :  { %v3059_v23 = vpop.f32.mrf.mxu1 }
 0x519   :  { %v3061_v38 = vpop.f32.mrf.mxu1 }
 0x51b   :  { %3083 = vmatmul.bf16.gmra.mxu1 %v6176_v3 }
 0x51d   :  { %2893 = vmatmul.bf16.gmra.mxu2 %v6104_v62 }
 0x51f   :  { %3122 = vmatmul.bf16.gmra.mxu3 %v6164_v57  ;;  %2927 = vmatmul.bf16.gmra.mxu0 %v6084_v45 }
 0x52b   :  { %3088 = vmatmul.bf16.gmra.mxu1 %v6184_v33 }
 0x52f   :  { %3127 = vmatmul.bf16.gmra.mxu3 %v6172_v5  ;;  %2932 = vmatmul.bf16.gmra.mxu0 %v6092_v49 }
 0x53f   :  { %3132 = vmatmul.bf16.gmra.mxu3 %v6180_v20  ;;  %2937 = vmatmul.bf16.gmra.mxu0 %v6100_v51 }
 0x540   :  { %v2864_v53 = vpop.f32.mrf.mxu2 }
 0x548   :  { %v2866_v6 = vpop.f32.mrf.mxu2 }
 0x54f   :  { %3137 = vmatmul.bf16.gmra.mxu3 %v6188_v25  ;;  %2942 = vmatmul.bf16.gmra.mxu0 %v6108_v14 }
 0x550   :  { %v2869_v41 = vpop.f32.mrf.mxu2 }
 0x558   :  { %v3064_v0 = vpop.f32.mrf.mxu1  ;;  %v2871_v48 = vpop.f32.mrf.mxu2 }
 0x55c   :  { %v2908_v16 = vpop.f32.mrf.mxu0 }
 0x55d   :  { %v2909_v17 = vadd.f32 %v2908_v16, %v2859_v37 }
 0x560   :  { %v3066_v8 = vpop.f32.mrf.mxu1  ;;  %v2874_v9 = vpop.f32.mrf.mxu2 }
 0x562   :  { %v3103_v42 = vpop.f32.mrf.mxu3 }
 0x563   :  { %v3104_v4 = vadd.f32 %v3103_v42, %v3054_v12 }
 0x564   :  { %v2910_v40 = vpop.f32.mrf.mxu0 }
 0x565   :  { %v2911_v39 = vadd.f32 %v2910_v40, %v2861_v50  ;;  %v3143_v57 = vmax.f32 %v2909_v17, %v3104_v4 }
 0x568   :  { %v3069_v33 = vpop.f32.mrf.mxu1  ;;  %v2876_v56 = vpop.f32.mrf.mxu2 }
 0x56a   :  { %v3105_v47 = vpop.f32.mrf.mxu3 }
 0x56b   :  { %v3106_v55 = vadd.f32 %v3105_v47, %v3056_v58 }
 0x56c   :  { %v2913_v54 = vpop.f32.mrf.mxu0 }
 0x56d   :  { %v3144_v45 = vmax.f32 %v2911_v39, %v3106_v55  ;;  %v2914_v62 = vadd.f32 %v2913_v54, %v2864_v53 }
 0x56f   :  { %v3159_v11 = vpack.c.bf16 %v3144_v45, %v3143_v57 }
 0x570   :  { %v3071_v26 = vpop.f32.mrf.mxu1  ;;  %v2879_v37 = vpop.f32.mrf.mxu2 }
 0x571   :  { %3239 = vmatmul.bf16.vlgmr.msra.gmra.mxu2 %v3159_v11  ;;  %3353 = vmatmul.bf16.vlgmr.msra.gmra.mxu0 %v3159_v11 }
 0x572   :  { %v3108_v21 = vpop.f32.mrf.mxu3 }
 0x573   :  { %v3109_v30 = vadd.f32 %v3108_v21, %v3059_v23 }
 0x574   :  { %v2915_v3 = vpop.f32.mrf.mxu0 }
 0x575   :  { %v2916_v29 = vadd.f32 %v2915_v3, %v2866_v6  ;;  %v3145_v49 = vmax.f32 %v2914_v62, %v3109_v30 }
 0x578   :  { %v3074_v52 = vpop.f32.mrf.mxu1  ;;  %v2881_v14 = vpop.f32.mrf.mxu2 }
 0x57a   :  { %v3110_v27 = vpop.f32.mrf.mxu3 }
 0x57b   :  { %v3111_v44 = vadd.f32 %v3110_v27, %v3061_v38 }
 0x57c   :  { %v2918_v5 = vpop.f32.mrf.mxu0 }
 0x57d   :  { %v3146_v19 = vmax.f32 %v2916_v29, %v3111_v44  ;;  %v2919_v22 = vadd.f32 %v2918_v5, %v2869_v41 }
 0x57f   :  { %v3160_v60 = vpack.c.bf16 %v3146_v19, %v3145_v49 }
 0x580   :  { %v3076_v25 = vpop.f32.mrf.mxu1  ;;  %v2884_v23 = vpop.f32.mrf.mxu2 }
 0x581   :  { %3244 = vmatmul.bf16.gmra.mxu2 %v3160_v60  ;;  %3358 = vmatmul.bf16.gmra.mxu0 %v3160_v60 }
 0x582   :  { %v3113_v1 = vpop.f32.mrf.mxu3 }
 0x583   :  { %v3114_v61 = vadd.f32 %v3113_v1, %v3064_v0 }
 0x584   :  { %v2920_v63 = vpop.f32.mrf.mxu0 }
 0x585   :  { %v2921_v24 = vadd.f32 %v2920_v63, %v2871_v48  ;;  %v3147_v20 = vmax.f32 %v2919_v22, %v3114_v61 }
 0x588   :  { %v3079_v50 = vpop.f32.mrf.mxu1  ;;  %v2886_v0 = vpop.f32.mrf.mxu2 }
 0x58a   :  { %v3115_v2 = vpop.f32.mrf.mxu3 }
 0x58b   :  { %v3116_v34 = vadd.f32 %v3115_v2, %v3066_v8 }
 0x58c   :  { %v2923_v28 = vpop.f32.mrf.mxu0 }
 0x58d   :  { %v3148_v51 = vmax.f32 %v2921_v24, %v3116_v34  ;;  %v2924_v7 = vadd.f32 %v2923_v28, %v2874_v9 }
 0x58f   :  { %v3161_v13 = vpack.c.bf16 %v3148_v51, %v3147_v20 }
 0x590   :  { %v3081_v39 = vpop.f32.mrf.mxu1  ;;  %v2889_v8 = vpop.f32.mrf.mxu2 }
 0x591   :  { %3249 = vmatmul.bf16.gmra.mxu2 %v3161_v13  ;;  %3363 = vmatmul.bf16.gmra.mxu0 %v3161_v13 }
 0x592   :  { %v3118_v46 = vpop.f32.mrf.mxu3 }
 0x593   :  { %v3119_v43 = vadd.f32 %v3118_v46, %v3069_v33 }
 0x594   :  { %v2925_v12 = vpop.f32.mrf.mxu0 }
 0x595   :  { %v2926_v32 = vadd.f32 %v2925_v12, %v2876_v56  ;;  %v3149_v59 = vmax.f32 %v2924_v7, %v3119_v43 }
 0x598   :  { %v3084_v3 = vpop.f32.mrf.mxu1  ;;  %v2891_v49 = vpop.f32.mrf.mxu2 }
 0x59a   :  { %v3120_v10 = vpop.f32.mrf.mxu3 }
 0x59b   :  { %v3121_v31 = vadd.f32 %v3120_v10, %v3071_v26 }
 0x59c   :  { %v2928_v35 = vpop.f32.mrf.mxu0 }
 0x59d   :  { %v3150_v36 = vmax.f32 %v2926_v32, %v3121_v31  ;;  %v2929_v53 = vadd.f32 %v2928_v35, %v2879_v37 }
 0x59f   :  { %v3162_v58 = vpack.c.bf16 %v3150_v36, %v3149_v59 }
 0x5a0   :  { %v3086_v5 = vpop.f32.mrf.mxu1  ;;  %v2894_v56 = vpop.f32.mrf.mxu2 }
 0x5a1   :  { %3254 = vmatmul.bf16.gmra.mxu2 %v3162_v58  ;;  %3368 = vmatmul.bf16.gmra.mxu0 %v3162_v58 }
 0x5a2   :  { %v3123_v18 = vpop.f32.mrf.mxu3 }
 0x5a3   :  { %v3124_v16 = vadd.f32 %v3123_v18, %v3074_v52 }
 0x5a4   :  { %v2930_v15 = vpop.f32.mrf.mxu0 }
 0x5a5   :  { %v2931_v42 = vadd.f32 %v2930_v15, %v2881_v14  ;;  %v3151_v17 = vmax.f32 %v2929_v53, %v3124_v16 }
 0x5a8   :  { %v3089_v2 = vpop.f32.mrf.mxu1  ;;  %v2896_v13 = vpop.f32.mrf.mxu2 }
 0x5aa   :  { %v3125_v38 = vpop.f32.mrf.mxu3 }
 0x5ab   :  { %v3126_v6 = vadd.f32 %v3125_v38, %v3076_v25 }
 0x5ac   :  { %v2933_v40 = vpop.f32.mrf.mxu0 }
 0x5ad   :  { %v3152_v4 = vmax.f32 %v2931_v42, %v3126_v6  ;;  %v2934_v41 = vadd.f32 %v2933_v40, %v2884_v23 }
 0x5af   :  { %v3163_v47 = vpack.c.bf16 %v3152_v4, %v3151_v17 }
 0x5b0   :  { %v3091_v51 = vpop.f32.mrf.mxu1 }
 0x5b1   :  { %3259 = vmatmul.bf16.gmra.mxu2 %v3163_v47  ;;  %3373 = vmatmul.bf16.gmra.mxu0 %v3163_v47 }
 0x5b2   :  { %v3128_v55 = vpop.f32.mrf.mxu3 }
 0x5b3   :  { %v3129_v57 = vadd.f32 %v3128_v55, %v3079_v50 }
 0x5b4   :  { %v2935_v54 = vpop.f32.mrf.mxu0 }
 0x5b5   :  { %v2936_v11 = vadd.f32 %v2935_v54, %v2886_v0  ;;  %v3153_v62 = vmax.f32 %v2934_v41, %v3129_v57 }
 0x5ba   :  { %v3130_v45 = vpop.f32.mrf.mxu3 }
 0x5bb   :  { %v3131_v21 = vadd.f32 %v3130_v45, %v3081_v39 }
 0x5bc   :  { %v2938_v48 = vpop.f32.mrf.mxu0 }
 0x5bd   :  { %v3154_v30 = vmax.f32 %v2936_v11, %v3131_v21  ;;  %v2939_v19 = vadd.f32 %v2938_v48, %v2889_v8 }
 0x5bf   :  { %v3164_v27 = vpack.c.bf16 %v3154_v30, %v3153_v62 }
 0x5c1   :  { %3264 = vmatmul.bf16.gmra.mxu2 %v3164_v27  ;;  %3378 = vmatmul.bf16.gmra.mxu0 %v3164_v27 }
 0x5c2   :  { %v3133_v29 = vpop.f32.mrf.mxu3 }
 0x5c3   :  { %v3134_v60 = vadd.f32 %v3133_v29, %v3084_v3 }
 0x5c4   :  { %v2940_v44 = vpop.f32.mrf.mxu0 }
 0x5c5   :  { %v2941_v9 = vadd.f32 %v2940_v44, %v2891_v49  ;;  %v3155_v63 = vmax.f32 %v2939_v19, %v3134_v60 }
 0x5ca   :  { %v3135_v33 = vpop.f32.mrf.mxu3 }
 0x5cb   :  { %v3136_v1 = vadd.f32 %v3135_v33, %v3086_v5 }
 0x5cc   :  { %v2943_v61 = vpop.f32.mrf.mxu0 }
 0x5cd   :  { %v3156_v22 = vmax.f32 %v2941_v9, %v3136_v1  ;;  %v2944_v28 = vadd.f32 %v2943_v61, %v2894_v56 }
 0x5cf   :  { %v3165_v26 = vpack.c.bf16 %v3156_v22, %v3155_v63 }
 0x5d1   :  { %3269 = vmatmul.bf16.gmra.mxu2 %v3165_v26  ;;  %3383 = vmatmul.bf16.gmra.mxu0 %v3165_v26 }
 0x5d2   :  { %v3138_v24 = vpop.f32.mrf.mxu3 }
 0x5d3   :  { %v3139_v20 = vadd.f32 %v3138_v24, %v3089_v2 }
 0x5d4   :  { %v2945_v34 = vpop.f32.mrf.mxu0 }
 0x5d5   :  { %v2946_v52 = vadd.f32 %v2945_v34, %v2896_v13  ;;  %v3157_v37 = vmax.f32 %v2944_v28, %v3139_v20  ;;  %v7089_v13 = vld [vmem:[%s9780_s6 + $0x40] sm:$0xff] }
 0x5da   :  { %v3140_v46 = vpop.f32.mrf.mxu3 }
 0x5db   :  { %v3141_v12 = vadd.f32 %v3140_v46, %v3091_v51  ;;  %v7077_v51 = vld [vmem:[%s9780_s6] sm:$0xff]  ;;  %v7078_v46 = vld [vmem:[%s9780_s6 + $0x8] sm:$0xff] }
 0x5dd   :  { %v3158_v7 = vmax.f32 %v2946_v52, %v3141_v12  ;;  %v7090_v52 = vld [vmem:[%s9780_s6 + $0x48] sm:$0xff]  ;;  %v7079_v12 = vld [vmem:[%s9780_s6 + $0x10] sm:$0xff] }
 0x5df   :  { %v3166_v43 = vpack.c.bf16 %v3158_v7, %v3157_v37  ;;  %v7091_v37 = vld [vmem:[%s9780_s6 + $0x50] sm:$0xff]  ;;  %v7080_v7 = vld [vmem:[%s9780_s6 + $0x18] sm:$0xff] }
 0x5e1   :  { %3274 = vmatmul.bf16.gmra.mxu2 %v3166_v43  ;;  %3388 = vmatmul.bf16.gmra.mxu0 %v3166_v43  ;;  %v7092_v43 = vld [vmem:[%s9780_s6 + $0x58] sm:$0xff] }
 0x5ee   :  { %v9212_v10 = vpop.f32.mrf.mxu0 }
 0x5f4   :  { %v9214_v32 = vpop.f32.mrf.mxu2 }
 0x5f5   :  { %v3394_v31 = vmax.f32 %v9214_v32, %v9212_v10  ;;  %v7081_v10 = vld [vmem:[%s9780_s6 + $0x20] sm:$0xff] }
 0x5f6   :  { %v9218_v35 = vpop.f32.mrf.mxu0  ;;  %v7093_v32 = vld [vmem:[%s9780_s6 + $0x60] sm:$0xff] }
 0x5fc   :  { %v9220_v59 = vpop.f32.mrf.mxu2 }
 0x5fd   :  { %v3395_v34 = vmax.f32 %v9220_v59, %v9218_v35  ;;  %v7094_v35 = vld [vmem:[%s9780_s6 + $0x68] sm:$0xff]  ;;  %v7088_v59 = vld [vmem:[%s9781_s7 + $0x18] sm:$0xff] }
 0x5fe   :  { %v3359_v36 = vpop.f32.mrf.mxu0  ;;  %3828 = vmatpush.bf16.msrb.mxu0 %v7088_v59  ;;  %v7108_v59 = vld [vmem:[%s9780_s6 + $0xb8] sm:$0xff] }
 0x5ff   :  { %v3410_v20 = vpack.c.bf16 %v3395_v34, %v3394_v31  ;;  %v7082_v31 = vld [vmem:[%s9780_s6 + $0x28] sm:$0xff] }
 0x604   :  { %v3245_v25 = vpop.f32.mrf.mxu2 }
 0x605   :  { %v3396_v14 = vmax.f32 %v3245_v25, %v3359_v36  ;;  %v7083_v36 = vld [vmem:[%s9780_s6 + $0x30] sm:$0xff] }
 0x606   :  { %v3361_v58 = vpop.f32.mrf.mxu0  ;;  %v7095_v25 = vld [vmem:[%s9780_s6 + $0x70] sm:$0xff] }
 0x60c   :  { %v3247_v18 = vpop.f32.mrf.mxu2 }
 0x60d   :  { %v3397_v56 = vmax.f32 %v3247_v18, %v3361_v58  ;;  %v7100_v58 = vld [vmem:[%s9781_s7 + $0x38] sm:$0xff]  ;;  %v7086_v18 = vld [vmem:[%s9781_s7 + $0x8] sm:$0xff] }
 0x60e   :  { %v3364_v15 = vpop.f32.mrf.mxu0  ;;  %3731 = vmatpush.bf16.msrb.mxu2 %v7100_v58 }
 0x60f   :  { %v3411_v28 = vpack.c.bf16 %v3397_v56, %v3396_v14  ;;  %v7087_v14 = vld [vmem:[%s9781_s7 + $0x10] sm:$0xff] }
 0x610   :  { %3829 = vmatpush.bf16.msrb.mxu0 %v7087_v14 }
 0x614   :  { %v3250_v50 = vpop.f32.mrf.mxu2  ;;  %3830 = vmatpush.bf16.msrb.mxu0 %v7086_v18 }
 0x615   :  { %v3398_v23 = vmax.f32 %v3250_v50, %v3364_v15  ;;  %v7099_v15 = vld [vmem:[%s9781_s7 + $0x30] sm:$0xff]  ;;  %v7085_v50 = vld [vmem:[%s9781_s7] sm:$0xff] }
 0x616   :  { %v3366_v53 = vpop.f32.mrf.mxu0  ;;  %3732 = vmatpush.bf16.msrb.mxu2 %v7099_v15 }
 0x618   :  { %3831 = vmatpush.bf16.msrb.mxu0 %v7085_v50 }
 0x61c   :  { %v3252_v16 = vpop.f32.mrf.mxu2 }
 0x61d   :  { %v3399_v26 = vmax.f32 %v3252_v16, %v3366_v53  ;;  %v7097_v53 = vld [vmem:[%s9781_s7 + $0x20] sm:$0xff]  ;;  %v7084_v16 = vld [vmem:[%s9780_s6 + $0x38] sm:$0xff] }
 0x61e   :  { %v3369_v38 = vpop.f32.mrf.mxu0 }
 0x61f   :  { %v3412_v24 = vpack.c.bf16 %v3399_v26, %v3398_v23  ;;  %v7098_v23 = vld [vmem:[%s9781_s7 + $0x28] sm:$0xff] }
 0x620   :  { %3733 = vmatpush.bf16.msrb.mxu2 %v7098_v23 }
 0x624   :  { %v3255_v42 = vpop.f32.mrf.mxu2  ;;  %3734 = vmatpush.bf16.msrb.mxu2 %v7097_v53 }
 0x625   :  { %v3400_v6 = vmax.f32 %v3255_v42, %v3369_v38  ;;  %v7096_v38 = vld [vmem:[%s9780_s6 + $0x78] sm:$0xff]  ;;  %v7101_v42 = vld [vmem:[%s9780_s6 + $0x80] sm:$0xff] }
 0x626   :  { %v3371_v40 = vpop.f32.mrf.mxu0 }
 0x62c   :  { %v3257_v17 = vpop.f32.mrf.mxu2 }
 0x62d   :  { %v3401_v22 = vmax.f32 %v3257_v17, %v3371_v40 }
 0x62e   :  { %v3374_v4 = vpop.f32.mrf.mxu0 }
 0x62f   :  { %v3413_v2 = vpack.c.bf16 %v3401_v22, %v3400_v6 }
 0x634   :  { %v3260_v47 = vpop.f32.mrf.mxu2 }
 0x635   :  { %v3402_v39 = vmax.f32 %v3260_v47, %v3374_v4 }
 0x636   :  { %v3376_v55 = vpop.f32.mrf.mxu0 }
 0x63c   :  { %v3262_v0 = vpop.f32.mrf.mxu2 }
 0x63d   :  { %v3403_v1 = vmax.f32 %v3262_v0, %v3376_v55 }
 0x63e   :  { %v3379_v54 = vpop.f32.mrf.mxu0 }
 0x63f   :  { %v3414_v61 = vpack.c.bf16 %v3403_v1, %v3402_v39  ;;  %v7102_v39 = vld [vmem:[%s9780_s6 + $0x88] sm:$0xff] }
 0x644   :  { %v3265_v41 = vpop.f32.mrf.mxu2 }
 0x645   :  { %v3404_v9 = vmax.f32 %v3265_v41, %v3379_v54 }
 0x646   :  { %v3381_v57 = vpop.f32.mrf.mxu0 }
 0x64c   :  { %v3267_v45 = vpop.f32.mrf.mxu2 }
 0x64d   :  { %v3405_v60 = vmax.f32 %v3267_v45, %v3381_v57 }
 0x64e   :  { %v3384_v11 = vpop.f32.mrf.mxu0 }
 0x64f   :  { %v3415_v63 = vpack.c.bf16 %v3405_v60, %v3404_v9 }
 0x654   :  { %v3270_v21 = vpop.f32.mrf.mxu2 }
 0x655   :  { %v3406_v19 = vmax.f32 %v3270_v21, %v3384_v11  ;;  %v7103_v11 = vld [vmem:[%s9780_s6 + $0x90] sm:$0xff] }
 0x656   :  { %v3386_v3 = vpop.f32.mrf.mxu0 }
 0x65c   :  { %v3272_v8 = vpop.f32.mrf.mxu2 }
 0x65d   :  { %v3407_v5 = vmax.f32 %v3272_v8, %v3386_v3 }
 0x65e   :  { %v3389_v48 = vpop.f32.mrf.mxu0 }
 0x65f   :  { %v3416_v33 = vpack.c.bf16 %v3407_v5, %v3406_v19 }
 0x664   :  { %v3275_v62 = vpop.f32.mrf.mxu2 }
 0x665   :  { %v3408_v29 = vmax.f32 %v3275_v62, %v3389_v48 }
 0x666   :  { %v3391_v27 = vpop.f32.mrf.mxu0 }
 0x66c   :  { %v3277_v30 = vpop.f32.mrf.mxu2 }
 0x66d   :  { %v3409_v44 = vmax.f32 %v3277_v30, %v3391_v27  ;;  %v7104_v27 = vld [vmem:[%s9780_s6 + $0x98] sm:$0xff] }
 0x66f   :  { %v3417_v49 = vpack.c.bf16 %v3409_v44, %v3408_v29 }
 0x671   :  { %3482 = vmatpush.bf16.msra.mxu1 %v3417_v49  ;;  %3612 = vmatpush.bf16.msra.mxu3 %v3417_v49 }
 0x675   :  { %3483 = vmatpush.bf16.msra.mxu1 %v3416_v33  ;;  %3613 = vmatpush.bf16.msra.mxu3 %v3416_v33 }
 0x679   :  { %3484 = vmatpush.bf16.msra.mxu1 %v3415_v63  ;;  %3614 = vmatpush.bf16.msra.mxu3 %v3415_v63 }
 0x67d   :  { %3485 = vmatpush.bf16.msra.mxu1 %v3414_v61  ;;  %3615 = vmatpush.bf16.msra.mxu3 %v3414_v61 }
 0x681   :  { %3486 = vmatpush.bf16.msra.mxu1 %v3413_v2  ;;  %3616 = vmatpush.bf16.msra.mxu3 %v3413_v2 }
 0x685   :  { %3487 = vmatpush.bf16.msra.mxu1 %v3412_v24  ;;  %3617 = vmatpush.bf16.msra.mxu3 %v3412_v24 }
 0x689   :  { %3488 = vmatpush.bf16.msra.mxu1 %v3411_v28  ;;  %3618 = vmatpush.bf16.msra.mxu3 %v3411_v28 }
 0x68d   :  { %3489 = vmatpush.bf16.msra.mxu1 %v3410_v20  ;;  %3619 = vmatpush.bf16.msra.mxu3 %v3410_v20 }
 0x690   :  { %3490 = vmatmul.bf16.vlgmr.msra.gmra.mxu1 %v7077_v51  ;;  %3620 = vmatmul.bf16.vlgmr.msra.gmra.mxu3 %v7089_v13  ;;  %v7112_v51 = vld [vmem:[%s9781_s7 + $0x58] sm:$0xff] }
 0x691   :  { %3938 = vmatpush.bf16.msrb.mxu1 %v3417_v49  ;;  %4056 = vmatpush.bf16.msrb.mxu3 %v7112_v51 }
 0x695   :  { %3939 = vmatpush.bf16.msrb.mxu1 %v3416_v33  ;;  %v7105_v33 = vld [vmem:[%s9780_s6 + $0xa0] sm:$0xff] }
 0x699   :  { %3940 = vmatpush.bf16.msrb.mxu1 %v3415_v63 }
 0x69d   :  { %3941 = vmatpush.bf16.msrb.mxu1 %v3414_v61 }
 0x6a0   :  { %3495 = vmatmul.bf16.gmra.mxu1 %v7078_v46  ;;  %3625 = vmatmul.bf16.gmra.mxu3 %v7090_v52  ;;  %v7107_v46 = vld [vmem:[%s9780_s6 + $0xb0] sm:$0xff] }
 0x6a1   :  { %3942 = vmatpush.bf16.msrb.mxu1 %v3413_v2  ;;  %v7106_v2 = vld [vmem:[%s9780_s6 + $0xa8] sm:$0xff]  ;;  %v7111_v52 = vld [vmem:[%s9781_s7 + $0x50] sm:$0xff] }
 0x6a2   :  { %4057 = vmatpush.bf16.msrb.mxu3 %v7111_v52 }
 0x6a5   :  { %3943 = vmatpush.bf16.msrb.mxu1 %v3412_v24 }
 0x6a9   :  { %3944 = vmatpush.bf16.msrb.mxu1 %v3411_v28 }
 0x6ad   :  { %3945 = vmatpush.bf16.msrb.mxu1 %v3410_v20 }
 0x6b0   :  { %3500 = vmatmul.bf16.gmra.mxu1 %v7079_v12  ;;  %3630 = vmatmul.bf16.gmra.mxu3 %v7091_v37 }
 0x6c0   :  { %3505 = vmatmul.bf16.gmra.mxu1 %v7080_v7  ;;  %3635 = vmatmul.bf16.gmra.mxu3 %v7092_v43  ;;  %v7110_v7 = vld [vmem:[%s9781_s7 + $0x48] sm:$0xff] }
 0x6c1   :  { %4058 = vmatpush.bf16.msrb.mxu3 %v7110_v7 }
 0x6d0   :  { %3510 = vmatmul.bf16.gmra.mxu1 %v7081_v10  ;;  %3640 = vmatmul.bf16.gmra.mxu3 %v7093_v32  ;;  %v7109_v10 = vld [vmem:[%s9781_s7 + $0x40] sm:$0xff] }
 0x6d1   :  { %4059 = vmatpush.bf16.msrb.mxu3 %v7109_v10 }
 0x6e0   :  { %3515 = vmatmul.bf16.gmra.mxu1 %v7082_v31  ;;  %3645 = vmatmul.bf16.gmra.mxu3 %v7094_v35 }
 0x6f0   :  { %3520 = vmatmul.bf16.gmra.mxu1 %v7083_v36  ;;  %3650 = vmatmul.bf16.gmra.mxu3 %v7095_v25 }
 0x700   :  { %3525 = vmatmul.bf16.gmra.mxu1 %v7084_v16  ;;  %3655 = vmatmul.bf16.gmra.mxu3 %v7096_v38 }
 0x70d   :  { %v3491_v6 = vpop.f32.mrf.mxu1 }
 0x710   :  { %3946 = vmatmul.bf16.vlgmr.msrb.gmra.mxu1 %v7101_v42 }
 0x713   :  { %v3621_v40 = vpop.f32.mrf.mxu3 }
 0x715   :  { %v3493_v17 = vpop.f32.mrf.mxu1 }
 0x716   :  { %v3531_v4 = vpack.c.bf16 %v3493_v17, %v3491_v6 }
 0x718   :  { %6397 = vmatmul.msk.bf16.vlgmr.msrb.gmra.mxu0 %vm3702_vm3, %v3531_v4 }
 0x71b   :  { %v3623_v47 = vpop.f32.mrf.mxu3 }
 0x71c   :  { %v3661_v55 = vpack.c.bf16 %v3623_v47, %v3621_v40 }
 0x71d   :  { %v3496_v0 = vpop.f32.mrf.mxu1 }
 0x71e   :  { %6373 = vmatmul.msk.bf16.vlgmr.msrb.gmra.mxu2 %vm3702_vm3, %v3661_v55 }
 0x720   :  { %3951 = vmatmul.bf16.gmra.mxu1 %v7102_v39 }
 0x723   :  { %v3626_v54 = vpop.f32.mrf.mxu3 }
 0x725   :  { %v3498_v41 = vpop.f32.mrf.mxu1 }
 0x726   :  { %v3532_v57 = vpack.c.bf16 %v3498_v41, %v3496_v0 }
 0x728   :  { %6398 = vmatmul.msk.bf16.gmra.mxu0 %vm3702_vm3, %v3532_v57 }
 0x72b   :  { %v3628_v45 = vpop.f32.mrf.mxu3 }
 0x72c   :  { %v3662_v21 = vpack.c.bf16 %v3628_v45, %v3626_v54 }
 0x72d   :  { %v3501_v3 = vpop.f32.mrf.mxu1 }
 0x72e   :  { %6374 = vmatmul.msk.bf16.gmra.mxu2 %vm3702_vm3, %v3662_v21 }
 0x730   :  { %3956 = vmatmul.bf16.gmra.mxu1 %v7103_v11 }
 0x733   :  { %v3631_v8 = vpop.f32.mrf.mxu3 }
 0x735   :  { %v3503_v48 = vpop.f32.mrf.mxu1 }
 0x736   :  { %v3533_v62 = vpack.c.bf16 %v3503_v48, %v3501_v3 }
 0x738   :  { %6399 = vmatmul.msk.bf16.gmra.mxu0 %vm3702_vm3, %v3533_v62 }
 0x73b   :  { %v3633_v30 = vpop.f32.mrf.mxu3 }
 0x73c   :  { %v3663_v29 = vpack.c.bf16 %v3633_v30, %v3631_v8 }
 0x73d   :  { %v3506_v44 = vpop.f32.mrf.mxu1 }
 0x73e   :  { %6375 = vmatmul.msk.bf16.gmra.mxu2 %vm3702_vm3, %v3663_v29 }
 0x740   :  { %3961 = vmatmul.bf16.gmra.mxu1 %v7104_v27 }
 0x743   :  { %v3636_v5 = vpop.f32.mrf.mxu3 }
 0x745   :  { %v3508_v49 = vpop.f32.mrf.mxu1 }
 0x746   :  { %v3534_v19 = vpack.c.bf16 %v3508_v49, %v3506_v44 }
 0x748   :  { %6400 = vmatmul.msk.bf16.gmra.mxu0 %vm3702_vm3, %v3534_v19 }
 0x74b   :  { %v3638_v60 = vpop.f32.mrf.mxu3 }
 0x74c   :  { %v3664_v9 = vpack.c.bf16 %v3638_v60, %v3636_v5 }
 0x74d   :  { %v3511_v1 = vpop.f32.mrf.mxu1 }
 0x74e   :  { %6376 = vmatmul.msk.bf16.gmra.mxu2 %vm3702_vm3, %v3664_v9 }
 0x750   :  { %3966 = vmatmul.bf16.gmra.mxu1 %v7105_v33 }
 0x753   :  { %v3641_v63 = vpop.f32.mrf.mxu3 }
 0x755   :  { %v3513_v22 = vpop.f32.mrf.mxu1 }
 0x756   :  { %v3535_v61 = vpack.c.bf16 %v3513_v22, %v3511_v1 }
 0x758   :  { %6401 = vmatmul.msk.bf16.gmra.mxu0 %vm3702_vm3, %v3535_v61 }
 0x75b   :  { %v3643_v26 = vpop.f32.mrf.mxu3 }
 0x75c   :  { %v3665_v56 = vpack.c.bf16 %v3643_v26, %v3641_v63 }
 0x75d   :  { %v3516_v24 = vpop.f32.mrf.mxu1 }
 0x75e   :  { %6377 = vmatmul.msk.bf16.gmra.mxu2 %vm3702_vm3, %v3665_v56 }
 0x760   :  { %3971 = vmatmul.bf16.gmra.mxu1 %v7106_v2 }
 0x763   :  { %v3646_v34 = vpop.f32.mrf.mxu3 }
 0x765   :  { %v3518_v28 = vpop.f32.mrf.mxu1 }
 0x766   :  { %v3536_v20 = vpack.c.bf16 %v3518_v28, %v3516_v24 }
 0x768   :  { %6402 = vmatmul.msk.bf16.gmra.mxu0 %vm3702_vm3, %v3536_v20 }
 0x76b   :  { %v3648_v13 = vpop.f32.mrf.mxu3 }
 0x76c   :  { %v3666_v12 = vpack.c.bf16 %v3648_v13, %v3646_v34 }
 0x76d   :  { %v3521_v37 = vpop.f32.mrf.mxu1 }
 0x76e   :  { %6378 = vmatmul.msk.bf16.gmra.mxu2 %vm3702_vm3, %v3666_v12 }
 0x770   :  { %3976 = vmatmul.bf16.gmra.mxu1 %v7107_v46 }
 0x773   :  { %v3651_v43 = vpop.f32.mrf.mxu3 }
 0x775   :  { %v3523_v32 = vpop.f32.mrf.mxu1 }
 0x776   :  { %v3537_v31 = vpack.c.bf16 %v3523_v32, %v3521_v37 }
 0x778   :  { %6403 = vmatmul.msk.bf16.gmra.mxu0 %vm3702_vm3, %v3537_v31 }
 0x77b   :  { %v3653_v35 = vpop.f32.mrf.mxu3 }
 0x77c   :  { %v3667_v36 = vpack.c.bf16 %v3653_v35, %v3651_v43 }
 0x77d   :  { %v3526_v25 = vpop.f32.mrf.mxu1 }
 0x77e   :  { %6379 = vmatmul.msk.bf16.gmra.mxu2 %vm3702_vm3, %v3667_v36 }
 0x780   :  { %3981 = vmatmul.bf16.gmra.mxu1 %v7108_v59 }
 0x783   :  { %v3656_v14 = vpop.f32.mrf.mxu3 }
 0x785   :  { %v3528_v58 = vpop.f32.mrf.mxu1 }
 0x786   :  { %v3538_v18 = vpack.c.bf16 %v3528_v58, %v3526_v25  ;;  %v9386_v25 = vld [vmem:[%s9782_s8] ss:$0 sm:$0xff] }
 0x788   :  { %6404 = vmatmul.msk.bf16.gmra.mxu0 %vm3702_vm3, %v3538_v18 }
 0x78b   :  { %v3658_v15 = vpop.f32.mrf.mxu3 }
 0x78c   :  { %v3668_v50 = vpack.c.bf16 %v3658_v15, %v3656_v14 }
 0x78d   :  { %v3947_v23 = vpop.f32.mrf.mxu1 }
 0x78e   :  { %6380 = vmatmul.msk.bf16.gmra.mxu2 %vm3702_vm3, %v3668_v50 }
 0x795   :  { %v3949_v53 = vpop.f32.mrf.mxu1  ;;  %v3833_v16 = vpop.f32.mrf.mxu0 }
 0x796   :  { %v3987_v38 = vpack.c.bf16 %v3949_v53, %v3947_v23 }
 0x798   :  { %6477 = vmatmul.msk.bf16.vlgmr.msrb.gmra.mxu3 %vm3702_vm3, %v3987_v38 }
 0x79d   :  { %v3952_v42 = vpop.f32.mrf.mxu1  ;;  %v9352_v6 = vpop.f32.mrf.mxu0 }
 0x7a1   :  { %v3736_v40 = vpop.f32.mrf.mxu2 }
 0x7a2   :  { %v3834_v17 = vadd.f32 %v3833_v16, %v3736_v40 }
 0x7a5   :  { %v3954_v4 = vpop.f32.mrf.mxu1  ;;  %v3838_v47 = vpop.f32.mrf.mxu0 }
 0x7a6   :  { %v3988_v39 = vpack.c.bf16 %v3954_v4, %v3952_v42 }
 0x7a8   :  { %6478 = vmatmul.msk.bf16.gmra.mxu3 %vm3702_vm3, %v3988_v39 }
 0x7a9   :  { %v9355_v55 = vpop.f32.mrf.mxu2 }
 0x7ad   :  { %v3957_v0 = vpop.f32.mrf.mxu1  ;;  %v9357_v54 = vpop.f32.mrf.mxu0 }
 0x7b1   :  { %v3741_v41 = vpop.f32.mrf.mxu2 }
 0x7b2   :  { %v3839_v57 = vadd.f32 %v3838_v47, %v3741_v41 }
 0x7b5   :  { %v3959_v45 = vpop.f32.mrf.mxu1  ;;  %v3843_v3 = vpop.f32.mrf.mxu0 }
 0x7b6   :  { %v3989_v11 = vpack.c.bf16 %v3959_v45, %v3957_v0 }
 0x7b8   :  { %6479 = vmatmul.msk.bf16.gmra.mxu3 %vm3702_vm3, %v3989_v11 }
 0x7b9   :  { %v9360_v21 = vpop.f32.mrf.mxu2 }
 0x7bd   :  { %v3962_v8 = vpop.f32.mrf.mxu1  ;;  %v9362_v30 = vpop.f32.mrf.mxu0 }
 0x7c1   :  { %v3746_v48 = vpop.f32.mrf.mxu2 }
 0x7c2   :  { %v3844_v62 = vadd.f32 %v3843_v3, %v3746_v48 }
 0x7c5   :  { %v3964_v27 = vpop.f32.mrf.mxu1  ;;  %v3848_v49 = vpop.f32.mrf.mxu0 }
 0x7c6   :  { %v3990_v29 = vpack.c.bf16 %v3964_v27, %v3962_v8 }
 0x7c8   :  { %6480 = vmatmul.msk.bf16.gmra.mxu3 %vm3702_vm3, %v3990_v29 }
 0x7c9   :  { %v9365_v44 = vpop.f32.mrf.mxu2 }
 0x7cd   :  { %v3967_v5 = vpop.f32.mrf.mxu1  ;;  %v3850_v1 = vpop.f32.mrf.mxu0 }
 0x7d1   :  { %v3751_v19 = vpop.f32.mrf.mxu2 }
 0x7d2   :  { %v3849_v60 = vadd.f32 %v3848_v49, %v3751_v19 }
 0x7d5   :  { %v3969_v33 = vpop.f32.mrf.mxu1  ;;  %v3853_v26 = vpop.f32.mrf.mxu0 }
 0x7d6   :  { %v3991_v9 = vpack.c.bf16 %v3969_v33, %v3967_v5 }
 0x7d8   :  { %6481 = vmatmul.msk.bf16.gmra.mxu3 %vm3702_vm3, %v3991_v9 }
 0x7d9   :  { %v3753_v63 = vpop.f32.mrf.mxu2 }
 0x7da   :  { %v3851_v14 = vadd.f32 %v3850_v1, %v3753_v63 }
 0x7dd   :  { %v3972_v22 = vpop.f32.mrf.mxu1  ;;  %v3855_v23 = vpop.f32.mrf.mxu0 }
 0x7e1   :  { %v3756_v61 = vpop.f32.mrf.mxu2 }
 0x7e2   :  { %v3854_v2 = vadd.f32 %v3853_v26, %v3756_v61 }
 0x7e5   :  { %v3974_v56 = vpop.f32.mrf.mxu1  ;;  %v3858_v47 = vpop.f32.mrf.mxu0 }
 0x7e6   :  { %v3992_v24 = vpack.c.bf16 %v3974_v56, %v3972_v22 }
 0x7e8   :  { %6482 = vmatmul.msk.bf16.gmra.mxu3 %vm3702_vm3, %v3992_v24 }
 0x7e9   :  { %v3758_v58 = vpop.f32.mrf.mxu2 }
 0x7ed   :  { %v3977_v34 = vpop.f32.mrf.mxu1  ;;  %v3860_v41 = vpop.f32.mrf.mxu0 }
 0x7f1   :  { %v3761_v4 = vpop.f32.mrf.mxu2 }
 0x7f5   :  { %v3979_v28 = vpop.f32.mrf.mxu1  ;;  %v3863_v11 = vpop.f32.mrf.mxu0 }
 0x7f6   :  { %v3993_v20 = vpack.c.bf16 %v3979_v28, %v3977_v34  ;;  %v3859_v28 = vadd.f32 %v3858_v47, %v3761_v4 }
 0x7f8   :  { %6483 = vmatmul.msk.bf16.gmra.mxu3 %vm3702_vm3, %v3993_v20 }
 0x7f9   :  { %v3763_v0 = vpop.f32.mrf.mxu2 }
 0x7fd   :  { %v3982_v51 = vpop.f32.mrf.mxu1 }
 0x801   :  { %v3766_v45 = vpop.f32.mrf.mxu2 }
 0x802   :  { %v3864_v63 = vadd.f32 %v3863_v11, %v3766_v45 }
 0x805   :  { %v3984_v13 = vpop.f32.mrf.mxu1 }
 0x806   :  { %v3994_v46 = vpack.c.bf16 %v3984_v13, %v3982_v51 }
 0x808   :  { %6484 = vmatmul.msk.bf16.gmra.mxu3 %vm3702_vm3, %v3994_v46  ;;  %v3856_v46 = vadd.f32 %v3855_v23, %v3758_v58  ;;  %v3846_v58 = vadd.f32 %v9362_v30, %v9365_v44  ;;  %v3836_v44 = vadd.f32 %v9352_v6, %v9355_v55 }
 0x809   :  { %v3768_v8 = vpop.f32.mrf.mxu2 }
 0x811   :  { %v3771_v29 = vpop.f32.mrf.mxu2 }
 0x81b   :  { %v4061_v52 = vpop.f32.mrf.mxu3 }
 0x81c   :  { %v9371_v12 = vadd.f32 %v4061_v52, %v3834_v17 }
 0x823   :  { %v9373_v37 = vpop.f32.mrf.mxu3 }
 0x82b   :  { %v4066_v7 = vpop.f32.mrf.mxu3 }
 0x82c   :  { %v9375_v43 = vadd.f32 %v4066_v7, %v3839_v57 }
 0x833   :  { %v9377_v10 = vpop.f32.mrf.mxu3 }
 0x83b   :  { %v4071_v32 = vpop.f32.mrf.mxu3 }
 0x83c   :  { %v9379_v31 = vadd.f32 %v4071_v32, %v3844_v62  ;;  %v3865_v62 = vpop.f32.mrf.mxu0 }
 0x83d   :  { %v3866_v33 = vadd.f32 %v3865_v62, %v3768_v8 }
 0x843   :  { %v9381_v35 = vpop.f32.mrf.mxu3 }
 0x844   :  { %v3868_v5 = vpop.f32.mrf.mxu0  ;;  %v4106_v47 = vadd.f32 %v9381_v35, %v3846_v58  ;;  %v4102_v35 = vadd.f32 %v9373_v37, %v3836_v44 }
 0x845   :  { %v3869_v19 = vadd.f32 %v3868_v5, %v3771_v29  ;;  %v7117_v29 = vld [vmem:[%s9783_s9 + $0x20] sm:$0xff]  ;;  %v7136_v5 = vld [vmem:[%s9784_s10 + $0x78] sm:$0xff] }
 0x846   :  { %v4126_v11 = vadd.f32 %v9386_v25, %v4106_v47  ;;  %v4122_v6 = vadd.f32 %v9386_v25, %v4102_v35  ;;  %4454 = vmatpush.bf16.msra.mxu3 %v7136_v5 }
 0x848   :  { %v4138_v37 = vmax.f32 %v4122_v6, 0.0 }
 0x84b   :  { %v4076_v59 = vpop.f32.mrf.mxu3 }
 0x84c   :  { %v4107_v36 = vadd.f32 %v4076_v59, %v3849_v60  ;;  %v3773_v60 = vpop.f32.mrf.mxu2  ;;  %v3870_v1 = vpop.f32.mrf.mxu0 }
 0x84d   :  { %v3871_v22 = vadd.f32 %v3870_v1, %v3773_v60  ;;  %v7127_v60 = vld [vmem:[%s9784_s10 + $0x30] sm:$0xff]  ;;  %v7133_v1 = vld [vmem:[%s9784_s10 + $0x60] sm:$0xff] }
 0x84e   :  { %v4127_v15 = vadd.f32 %v9386_v25, %v4107_v36 }
 0x850   :  { %v4143_v16 = vmax.f32 %v4127_v15, 0.0 }
 0x853   :  { %v4078_v18 = vpop.f32.mrf.mxu3 }
 0x854   :  { %v4108_v50 = vadd.f32 %v4078_v18, %v3851_v14 }
 0x856   :  { %v4128_v53 = vadd.f32 %v9386_v25, %v4108_v50 }
 0x858   :  { %v4144_v38 = vmax.f32 %v4128_v53, 0.0 }
 0x85a   :  { %v9390_v42 = vpack.c.bf16 %v4144_v38, %v4143_v16 }
 0x85b   :  { %v4081_v40 = vpop.f32.mrf.mxu3 }
 0x85c   :  { %v4109_v17 = vadd.f32 %v4081_v40, %v3854_v2  ;;  %v3861_v2 = vadd.f32 %v3860_v41, %v3763_v0  ;;  %v3841_v41 = vadd.f32 %v9357_v54, %v9360_v21  ;;  %v4142_v21 = vmax.f32 %v4126_v11, 0.0 }
 0x85e   :  { %v4129_v23 = vadd.f32 %v9386_v25, %v4109_v17  ;;  %v4104_v45 = vadd.f32 %v9377_v10, %v3841_v41  ;;  %v4125_v17 = vadd.f32 %v9386_v25, %v9379_v31  ;;  %v4121_v31 = vadd.f32 %v9386_v25, %v9371_v12  ;;  %v7114_v12 = vld [vmem:[%s9783_s9 + $0x8] sm:$0xff] }
 0x860   :  { %v4124_v54 = vadd.f32 %v9386_v25, %v4104_v45  ;;  %v4141_v10 = vmax.f32 %v4125_v17, 0.0 }
 0x862   :  { %v4140_v55 = vmax.f32 %v4124_v54, 0.0  ;;  %v4155_v8 = vpack.c.bf16 %v4142_v21, %v4141_v10 }
 0x863   :  { %v4083_v39 = vpop.f32.mrf.mxu3 }
 0x864   :  { %v4110_v36 = vadd.f32 %v4083_v39, %v3856_v46  ;;  %v7121_v46 = vld [vmem:[%s9784_s10] sm:$0xff] }
 0x866   :  { %v4130_v16 = vadd.f32 %v9386_v25, %v4110_v36 }
 0x868   :  { %v4146_v39 = vmax.f32 %v4130_v16, 0.0 }
 0x86b   :  { %v4086_v57 = vpop.f32.mrf.mxu3 }
 0x86c   :  { %v4111_v52 = vadd.f32 %v4086_v57, %v3859_v28  ;;  %v4145_v57 = vmax.f32 %v4129_v23, 0.0  ;;  %v7123_v28 = vld [vmem:[%s9784_s10 + $0x10] sm:$0xff] }
 0x86e   :  { %v4131_v50 = vadd.f32 %v9386_v25, %v4111_v52  ;;  %v4157_v30 = vpack.c.bf16 %v4146_v39, %v4145_v57 }
 0x870   :  { %v4147_v4 = vmax.f32 %v4131_v50, 0.0 }
 0x873   :  { %v4088_v3 = vpop.f32.mrf.mxu3 }
 0x874   :  { %v4112_v20 = vadd.f32 %v4088_v3, %v3861_v2  ;;  %v4123_v3 = vadd.f32 %v9386_v25, %v9375_v43  ;;  %v7120_v2 = vld [vmem:[%s9783_s9 + $0x38] sm:$0xff] }
 0x876   :  { %v4132_v14 = vadd.f32 %v9386_v25, %v4112_v20  ;;  %v7130_v20 = vld [vmem:[%s9784_s10 + $0x48] sm:$0xff] }
 0x878   :  { %v4148_v38 = vmax.f32 %v4132_v14, 0.0 }
 0x87a   :  { %v4158_v0 = vpack.c.bf16 %v4148_v38, %v4147_v4 }
 0x87b   :  { %v4091_v48 = vpop.f32.mrf.mxu3 }
 0x87c   :  { %v4113_v56 = vadd.f32 %v4091_v48, %v3864_v63  ;;  %v4139_v48 = vmax.f32 %v4123_v3, 0.0  ;;  %v7115_v63 = vld [vmem:[%s9783_s9 + $0x10] sm:$0xff] }
 0x87e   :  { %v4133_v7 = vadd.f32 %v9386_v25, %v4113_v56  ;;  %v4154_v62 = vpack.c.bf16 %v4140_v55, %v4139_v48  ;;  %v7125_v56 = vld [vmem:[%s9784_s10 + $0x20] sm:$0xff] }
 0x880   :  { %v4149_v53 = vmax.f32 %v4133_v7, 0.0 }
 0x883   :  { %v4093_v27 = vpop.f32.mrf.mxu3 }
 0x884   :  { %v4114_v61 = vadd.f32 %v4093_v27, %v3866_v33  ;;  %v4137_v27 = vmax.f32 %v4121_v31, 0.0  ;;  %v7134_v33 = vld [vmem:[%s9784_s10 + $0x68] sm:$0xff] }
 0x886   :  { %v4134_v51 = vadd.f32 %v9386_v25, %v4114_v61  ;;  %v4153_v43 = vpack.c.bf16 %v4138_v37, %v4137_v27  ;;  %v7132_v61 = vld [vmem:[%s9784_s10 + $0x58] sm:$0xff] }
 0x888   :  { %v4150_v18 = vmax.f32 %v4134_v51, 0.0  ;;  %v7122_v51 = vld [vmem:[%s9784_s10 + $0x8] sm:$0xff] }
 0x88a   :  { %v4159_v40 = vpack.c.bf16 %v4150_v18, %v4149_v53 }
 0x88b   :  { %v4096_v49 = vpop.f32.mrf.mxu3 }
 0x88c   :  { %v4115_v9 = vadd.f32 %v4096_v49, %v3869_v19  ;;  %v7128_v49 = vld [vmem:[%s9784_s10 + $0x38] sm:$0xff]  ;;  %v7135_v19 = vld [vmem:[%s9784_s10 + $0x70] sm:$0xff] }
 0x88d   :  { %4360 = vmatpush.bf16.msra.mxu1 %v7128_v49  ;;  %4455 = vmatpush.bf16.msra.mxu3 %v7135_v19 }
 0x88e   :  { %v4135_v24 = vadd.f32 %v9386_v25, %v4115_v9  ;;  %v7126_v9 = vld [vmem:[%s9784_s10 + $0x28] sm:$0xff] }
 0x890   :  { %v4151_v32 = vmax.f32 %v4135_v24, 0.0  ;;  %v7124_v24 = vld [vmem:[%s9784_s10 + $0x18] sm:$0xff] }
 0x891   :  { %4361 = vmatpush.bf16.msra.mxu1 %v7127_v60  ;;  %4456 = vmatpush.bf16.msra.mxu3 %v7134_v33 }
 0x893   :  { %v4098_v26 = vpop.f32.mrf.mxu3 }
 0x894   :  { %v4116_v34 = vadd.f32 %v4098_v26, %v3871_v22  ;;  %v7119_v22 = vld [vmem:[%s9783_s9 + $0x30] sm:$0xff]  ;;  %v7116_v26 = vld [vmem:[%s9783_s9 + $0x18] sm:$0xff] }
 0x895   :  { %4362 = vmatpush.bf16.msra.mxu1 %v7126_v9  ;;  %4457 = vmatpush.bf16.msra.mxu3 %v7133_v1 }
 0x896   :  { %v4136_v13 = vadd.f32 %v9386_v25, %v4116_v34  ;;  %v7118_v25 = vld [vmem:[%s9783_s9 + $0x28] sm:$0xff]  ;;  %v7131_v34 = vld [vmem:[%s9784_s10 + $0x50] sm:$0xff] }
 0x898   :  { %v4152_v59 = vmax.f32 %v4136_v13, 0.0  ;;  %v7129_v13 = vld [vmem:[%s9784_s10 + $0x40] sm:$0xff] }
 0x899   :  { %4458 = vmatpush.bf16.msra.mxu3 %v7132_v61  ;;  %4363 = vmatpush.bf16.msra.mxu1 %v7125_v56  ;;  %v6651_v61 = vld [vmem:[%s9785_s12 + $0x70] sm:$0xf]  ;;  %v7154_v56 = vld [vmem:[%s9785_s12 + $0x74] sm:$0xf0] }
 0x89a   :  { %v4160_v15 = vpack.c.bf16 %v4152_v59, %v4151_v32 }
 0x89c   :  { %4193 = vmatpush.bf16.msra.mxu2 %v4160_v15  ;;  %4255 = vmatpush.bf16.msra.mxu0 %v4160_v15 }
 0x89d   :  { %4364 = vmatpush.bf16.msra.mxu1 %v7124_v24  ;;  %4459 = vmatpush.bf16.msra.mxu3 %v7131_v34  ;;  %v7144_v24 = vld [vmem:[%s9785_s12 + $0x34] sm:$0xf]  ;;  %v6687_v34 = vld [vmem:[%s9785_s12 + $0x38] sm:$0xf0] }
 0x8a0   :  { %4194 = vmatpush.bf16.msra.mxu2 %v4159_v40  ;;  %4256 = vmatpush.bf16.msra.mxu0 %v4159_v40 }
 0x8a1   :  { %4365 = vmatpush.bf16.msra.mxu1 %v7123_v28  ;;  %4460 = vmatpush.bf16.msra.mxu3 %v7130_v20  ;;  %v6652_v28 = vor.u32 %v7154_v56, %v6651_v61  ;;  %v6690_v20 = vor.u32 %v7144_v24, %v6687_v34  ;;  %v7162_v61 = vld [vmem:[%s9785_s12 + $0xb4] sm:$0xf]  ;;  %v7172_v24 = vld [vmem:[%s9785_s12 + $0xf4] sm:$0xf0] }
 0x8a4   :  { %4195 = vmatpush.bf16.msra.mxu2 %v4158_v0  ;;  %4257 = vmatpush.bf16.msra.mxu0 %v4158_v0 }
 0x8a5   :  { %4366 = vmatpush.bf16.msra.mxu1 %v7122_v51  ;;  %4461 = vmatpush.bf16.msra.mxu3 %v7129_v13  ;;  %v6643_v51 = vld [vmem:[%s9785_s12 + $0x60] sm:$0xf] }
 0x8a8   :  { %4196 = vmatpush.bf16.msra.mxu2 %v4157_v30  ;;  %4258 = vmatpush.bf16.msra.mxu0 %v4157_v30 }
 0x8a9   :  { %4367 = vmatpush.bf16.msra.mxu1 %v7121_v46  ;;  %v7152_v46 = vld [vmem:[%s9785_s12 + $0x64] sm:$0xf0] }
 0x8ac   :  { %4197 = vmatpush.bf16.msra.mxu2 %v9390_v42  ;;  %4259 = vmatpush.bf16.msra.mxu0 %v9390_v42  ;;  %v7113_v42 = vld [vmem:[%s9783_s9] sm:$0xff] }
 0x8b0   :  { %4198 = vmatpush.bf16.msra.mxu2 %v4155_v8  ;;  %4260 = vmatpush.bf16.msra.mxu0 %v4155_v8 }
 0x8b4   :  { %4199 = vmatpush.bf16.msra.mxu2 %v4154_v62  ;;  %4261 = vmatpush.bf16.msra.mxu0 %v4154_v62 }
 0x8b8   :  { %4200 = vmatpush.bf16.msra.mxu2 %v4153_v43  ;;  %4262 = vmatpush.bf16.msra.mxu0 %v4153_v43 }
 0x8bb   :  { %4201 = vmatmul.bf16.vlgmr.msra.gmra.mxu2 %v7113_v42  ;;  %4263 = vmatmul.bf16.vlgmr.msra.gmra.mxu0 %v7117_v29 }
 0x8cb   :  { %4206 = vmatmul.bf16.gmra.mxu2 %v7114_v12  ;;  %4268 = vmatmul.bf16.gmra.mxu0 %v7118_v25 }
 0x8db   :  { %4211 = vmatmul.bf16.gmra.mxu2 %v7115_v63  ;;  %4273 = vmatmul.bf16.gmra.mxu0 %v7119_v22 }
 0x8eb   :  { %4216 = vmatmul.bf16.gmra.mxu2 %v7116_v26  ;;  %4278 = vmatmul.bf16.gmra.mxu0 %v7120_v2 }
 0x938   :  { %v4264_v52 = vpop.f32.mrf.mxu0 }
 0x93e   :  { %v4202_v7 = vpop.f32.mrf.mxu2 }
 0x93f   :  { %v4284_v36 = vmax.f32 %v4202_v7, %v4264_v52  ;;  %v7142_v52 = vld [vmem:[%s9785_s12 + $0x24] sm:$0xf]  ;;  %v6679_v7 = vld [vmem:[%s9785_s12 + $0x28] sm:$0xf0] }
 0x940   :  { %v4266_v32 = vpop.f32.mrf.mxu0 }
 0x946   :  { %v4204_v59 = vpop.f32.mrf.mxu2 }
 0x947   :  { %v4285_v14 = vmax.f32 %v4204_v59, %v4266_v32  ;;  %v7146_v32 = vld [vmem:[%s9786_s11 + $0x8] sm:$0xff]  ;;  %v7137_v59 = vld [vmem:[%s9786_s11] sm:$0xff] }
 0x948   :  { %v4269_v18 = vpop.f32.mrf.mxu0 }
 0x949   :  { %v4292_v15 = vpack.c.bf16 %v4285_v14, %v4284_v36  ;;  %v6644_v36 = vor.u32 %v7152_v46, %v6643_v51  ;;  %v6682_v14 = vor.u32 %v7142_v52, %v6679_v7  ;;  %v7160_v51 = vld [vmem:[%s9785_s12 + $0xa4] sm:$0xf]  ;;  %v6728_v46 = vld [vmem:[%s9785_s12 + $0xa8] sm:$0xf0]  ;;  %v6775_v52 = vld [vmem:[%s9785_s12 + $0xe0] sm:$0xf] }
 0x94a   :  { %v7170_v7 = vld [vmem:[%s9785_s12 + $0xe4] sm:$0xf0] }
 0x94b   :  { %4462 = vmatmul.bf16.vlgmr.msra.gmra.mxu3 %v4292_v15  ;;  %4368 = vmatmul.bf16.vlgmr.msra.gmra.mxu1 %v4292_v15  ;;  %v7150_v15 = vld [vmem:[%s9785_s12 + $0x54] sm:$0xf0] }
 0x94e   :  { %v4207_v50 = vpop.f32.mrf.mxu2 }
 0x94f   :  { %v4286_v38 = vmax.f32 %v4207_v50, %v4269_v18  ;;  %v6635_v18 = vld [vmem:[%s9785_s12 + $0x50] sm:$0xf]  ;;  %v7140_v50 = vld [vmem:[%s9785_s12 + $0x14] sm:$0xf] }
 0x950   :  { %v4271_v53 = vpop.f32.mrf.mxu0 }
 0x956   :  { %v4209_v16 = vpop.f32.mrf.mxu2 }
 0x957   :  { %v4287_v40 = vmax.f32 %v4209_v16, %v4271_v53  ;;  %v6671_v53 = vld [vmem:[%s9785_s12 + $0x18] sm:$0xf0]  ;;  %v6636_v16 = vor.u32 %v7150_v15, %v6635_v18  ;;  %v7158_v15 = vld [vmem:[%s9785_s12 + $0x94] sm:$0xf] }
 0x958   :  { %v4274_v58 = vpop.f32.mrf.mxu0 }
 0x959   :  { %v4293_v23 = vpack.c.bf16 %v4287_v40, %v4286_v38  ;;  %v6674_v38 = vor.u32 %v7140_v50, %v6671_v53  ;;  %v6627_v40 = vld [vmem:[%s9785_s12 + $0x40] sm:$0xf]  ;;  %v6720_v50 = vld [vmem:[%s9785_s12 + $0x98] sm:$0xf0]  ;;  %v6767_v53 = vld [vmem:[%s9785_s12 + $0xd0] sm:$0xf] }
 0x95b   :  { %4467 = vmatmul.bf16.gmra.mxu3 %v4293_v23  ;;  %4373 = vmatmul.bf16.gmra.mxu1 %v4293_v23  ;;  %v7138_v23 = vld [vmem:[%s9785_s12 + $0x4] sm:$0xf] }
 0x95e   :  { %v4212_v4 = vpop.f32.mrf.mxu2 }
 0x95f   :  { %v4288_v0 = vmax.f32 %v4212_v4, %v4274_v58  ;;  %v7148_v58 = vld [vmem:[%s9785_s12 + $0x44] sm:$0xf0]  ;;  %v6663_v4 = vld [vmem:[%s9785_s12 + $0x8] sm:$0xf0] }
 0x960   :  { %v4276_v47 = vpop.f32.mrf.mxu0 }
 0x966   :  { %v4214_v39 = vpop.f32.mrf.mxu2 }
 0x967   :  { %v4289_v41 = vmax.f32 %v4214_v39, %v4276_v47  ;;  %v6628_v47 = vor.u32 %v7148_v58, %v6627_v40  ;;  %v6666_v39 = vor.u32 %v7138_v23, %v6663_v4  ;;  %v6710_v58 = vld [vmem:[%s9785_s12 + $0x80] sm:$0xf]  ;;  %v7157_v23 = vld [vmem:[%s9785_s12 + $0x84] sm:$0xf0]  ;;  %v7156_v4 = vld [vmem:[%s9785_s12 + $0x84] sm:$0xf] }
 0x968   :  { %v4279_v45 = vpop.f32.mrf.mxu0 }
 0x969   :  { %v4294_v57 = vpack.c.bf16 %v4289_v41, %v4288_v0  ;;  %v6685_v0 = vld [vmem:[%s9785_s12 + $0x30] sm:$0xf]  ;;  %v7145_v41 = vld [vmem:[%s9785_s12 + $0x34] sm:$0xf0] }
 0x96b   :  { %4472 = vmatmul.bf16.gmra.mxu3 %v4294_v57  ;;  %4378 = vmatmul.bf16.gmra.mxu1 %v4294_v57  ;;  %v6686_v57 = vor.u32 %v7145_v41, %v6685_v0  ;;  %v6759_v0 = vld [vmem:[%s9785_s12 + $0xc0] sm:$0xf]  ;;  %v7166_v41 = vld [vmem:[%s9785_s12 + $0xc4] sm:$0xf0] }
 0x96d   :  { %4681 = vmatpush.bf16.msrb.mxu3 %v6686_v57 }
 0x96e   :  { %v4217_v11 = vpop.f32.mrf.mxu2 }
 0x96f   :  { %v4290_v17 = vmax.f32 %v4217_v11, %v4279_v45  ;;  %v6677_v45 = vld [vmem:[%s9785_s12 + $0x20] sm:$0xf]  ;;  %v7143_v11 = vld [vmem:[%s9785_s12 + $0x24] sm:$0xf0] }
 0x970   :  { %v4281_v44 = vpop.f32.mrf.mxu0 }
 0x976   :  { %v4219_v30 = vpop.f32.mrf.mxu2 }
 0x977   :  { %v4291_v35 = vmax.f32 %v4219_v30, %v4281_v44  ;;  %v6678_v30 = vor.u32 %v7143_v11, %v6677_v45  ;;  %v7153_v44 = vld [vmem:[%s9785_s12 + $0x74] sm:$0xf]  ;;  %v6760_v45 = vor.u32 %v7166_v41, %v6759_v0 }
 0x978   :  { %v7171_v11 = vld [vmem:[%s9785_s12 + $0xf4] sm:$0xf] }
 0x979   :  { %v4295_v54 = vpack.c.bf16 %v4291_v35, %v4290_v17  ;;  %v6653_v17 = vld [vmem:[%s9785_s12 + $0x78] sm:$0xf0]  ;;  %4682 = vmatpush.bf16.msrb.mxu3 %v6678_v30 }
 0x97a   :  { %v6656_v35 = vor.u32 %v7153_v44, %v6653_v17  ;;  %v6785_v30 = vld [vmem:[%s9785_s12 + $0xf8] sm:$0xf0]  ;;  %v7169_v17 = vld [vmem:[%s9785_s12 + $0xe4] sm:$0xf] }
 0x97b   :  { %4477 = vmatmul.bf16.gmra.mxu3 %v4295_v54  ;;  %4383 = vmatmul.bf16.gmra.mxu1 %v4295_v54  ;;  %v6669_v54 = vld [vmem:[%s9785_s12 + $0x10] sm:$0xf]  ;;  %v6788_v44 = vor.u32 %v7171_v11, %v6785_v30 }
 0x97c   :  { %4624 = vmatpush.bf16.msrb.mxu1 %v6656_v35  ;;  %v6777_v35 = vld [vmem:[%s9785_s12 + $0xe8] sm:$0xf0] }
 0x9c8   :  { %v4369_v21 = vpop.f32.mrf.mxu1 }
 0x9ce   :  { %v4463_v3 = vpop.f32.mrf.mxu3 }
 0x9cf   :  { %v4483_v10 = vmax.f32 %v4369_v21, %v4463_v3  ;;  %v7141_v21 = vld [vmem:[%s9785_s12 + $0x14] sm:$0xf0] }
 0x9d0   :  { %v4371_v6 = vpop.f32.mrf.mxu1  ;;  %v6670_v3 = vor.u32 %v7141_v21, %v6669_v54  ;;  %v6780_v54 = vor.u32 %v7169_v17, %v6777_v35  ;;  %v7167_v21 = vld [vmem:[%s9785_s12 + $0xd4] sm:$0xf] }
 0x9d2   :  { %4683 = vmatpush.bf16.msrb.mxu3 %v6670_v3  ;;  %v6769_v3 = vld [vmem:[%s9785_s12 + $0xd8] sm:$0xf0] }
 0x9d6   :  { %v4465_v55 = vpop.f32.mrf.mxu3 }
 0x9d7   :  { %v4484_v26 = vmax.f32 %v4371_v6, %v4465_v55  ;;  %v6645_v6 = vld [vmem:[%s9785_s12 + $0x68] sm:$0xf0] }
 0x9d8   :  { %v4374_v8 = vpop.f32.mrf.mxu1 }
 0x9d9   :  { %v4491_v13 = vpack.c.bf16 %v4484_v26, %v4483_v10  ;;  %v7151_v10 = vld [vmem:[%s9785_s12 + $0x64] sm:$0xf]  ;;  %v6736_v26 = vld [vmem:[%s9785_s12 + $0xb8] sm:$0xf0] }
 0x9da   :  { %v6648_v55 = vor.u32 %v7151_v10, %v6645_v6  ;;  %v6739_v56 = vor.u32 %v7162_v61, %v6736_v26  ;;  %v7185_v61 = vld [vmem:[%s9788_s14 + $0x60] sm:$0xff]  ;;  %v7174_v26 = vld [vmem:[%s9788_s14 + $0x8] sm:$0xff] }
 0x9dc   :  { %4625 = vmatpush.bf16.msrb.mxu1 %v6648_v55  ;;  %v6772_v55 = vor.u32 %v7167_v21, %v6769_v3 }
 0x9de   :  { %v4468_v31 = vpop.f32.mrf.mxu3 }
 0x9df   :  { %v4485_v22 = vmax.f32 %v4374_v8, %v4468_v31  ;;  %v6661_v8 = vld [vmem:[%s9785_s12] sm:$0xf]  ;;  %v7139_v31 = vld [vmem:[%s9785_s12 + $0x4] sm:$0xf0] }
 0x9e0   :  { %v4376_v48 = vpop.f32.mrf.mxu1 }
 0x9e6   :  { %v4470_v37 = vpop.f32.mrf.mxu3 }
 0x9e7   :  { %v4486_v1 = vmax.f32 %v4376_v48, %v4470_v37  ;;  %v6662_v48 = vor.u32 %v7139_v31, %v6661_v8  ;;  %v7149_v37 = vld [vmem:[%s9785_s12 + $0x54] sm:$0xf]  ;;  %v7165_v8 = vld [vmem:[%s9785_s12 + $0xc4] sm:$0xf]  ;;  %v6761_v31 = vld [vmem:[%s9785_s12 + $0xc8] sm:$0xf0] }
 0x9e8   :  { %v4379_v62 = vpop.f32.mrf.mxu1 }
 0x9e9   :  { %v4492_v2 = vpack.c.bf16 %v4486_v1, %v4485_v22  ;;  %4684 = vmatpush.bf16.msrb.mxu3 %v6662_v48  ;;  %v6734_v1 = vld [vmem:[%s9785_s12 + $0xb0] sm:$0xf]  ;;  %v6764_v48 = vor.u32 %v7165_v8, %v6761_v31 }
 0x9ed   :  { %4801 = vmatpush.bf16.msra.mxu3 %v6739_v56  ;;  %v7173_v56 = vld [vmem:[%s9788_s14] sm:$0xff] }
 0x9ee   :  { %v4473_v27 = vpop.f32.mrf.mxu3 }
 0x9ef   :  { %v4487_v9 = vmax.f32 %v4379_v62, %v4473_v27  ;;  %v6637_v62 = vld [vmem:[%s9785_s12 + $0x58] sm:$0xf0] }
 0x9f0   :  { %v4381_v43 = vpop.f32.mrf.mxu1  ;;  %v6640_v27 = vor.u32 %v7149_v37, %v6637_v62 }
 0x9f2   :  { %4626 = vmatpush.bf16.msrb.mxu1 %v6640_v27 }
 0x9f6   :  { %v4475_v42 = vpop.f32.mrf.mxu3 }
 0x9f7   :  { %v4488_v60 = vmax.f32 %v4381_v43, %v4475_v42  ;;  %v7147_v43 = vld [vmem:[%s9785_s12 + $0x44] sm:$0xf]  ;;  %v6629_v42 = vld [vmem:[%s9785_s12 + $0x48] sm:$0xf0] }
 0x9f8   :  { %v4384_v29 = vpop.f32.mrf.mxu1 }
 0x9f9   :  { %v4493_v63 = vpack.c.bf16 %v4488_v60, %v4487_v9  ;;  %v7155_v9 = vld [vmem:[%s9786_s11 + $0x10] sm:$0xff] }
 0x9fe   :  { %v4478_v12 = vpop.f32.mrf.mxu3 }
 0x9ff   :  { %v4489_v49 = vmax.f32 %v4384_v29, %v4478_v12  ;;  %v6632_v29 = vor.u32 %v7147_v43, %v6629_v42 }
 0xa00   :  { %v4386_v25 = vpop.f32.mrf.mxu1 }
 0xa01   :  { %4627 = vmatpush.bf16.msrb.mxu1 %v6632_v29 }
 0xa06   :  { %v4480_v5 = vpop.f32.mrf.mxu3 }
 0xa07   :  { %v4490_v19 = vmax.f32 %v4386_v25, %v4480_v5 }
 0xa09   :  { %v4494_v33 = vpack.c.bf16 %v4490_v19, %v4489_v49 }
 0xa0b   :  { %4543 = vmatpush.bf16.msrb.mxu2 %v4494_v33  ;;  %4509 = vmatpush.bf16.msrb.mxu0 %v4494_v33 }
 0xa0f   :  { %4544 = vmatpush.bf16.msrb.mxu2 %v4493_v63  ;;  %4510 = vmatpush.bf16.msrb.mxu0 %v4493_v63 }
 0xa13   :  { %4545 = vmatpush.bf16.msrb.mxu2 %v4492_v2  ;;  %4511 = vmatpush.bf16.msrb.mxu0 %v4492_v2 }
 0xa17   :  { %4546 = vmatpush.bf16.msrb.mxu2 %v4491_v13  ;;  %4512 = vmatpush.bf16.msrb.mxu0 %v4491_v13 }
 0xa1a   :  { %6616 = vmatmul.msk.bf16.vlgmr.msrb.gmra.mxu2 %vm3702_vm3, %v7146_v32  ;;  %6609 = vmatmul.msk.bf16.vlgmr.msrb.gmra.mxu0 %vm3702_vm3, %v7137_v59  ;;  %v6718_v32 = vld [vmem:[%s9785_s12 + $0x90] sm:$0xf]  ;;  %v7159_v59 = vld [vmem:[%s9785_s12 + $0x94] sm:$0xf0] }
 0xa1b   :  { %4610 = vmatpush.bf16.msra.mxu0 %v6652_v28  ;;  %4695 = vmatpush.bf16.msra.mxu2 %v6690_v20  ;;  %v6726_v28 = vld [vmem:[%s9785_s12 + $0xa0] sm:$0xf]  ;;  %v7161_v20 = vld [vmem:[%s9785_s12 + $0xa4] sm:$0xf0]  ;;  %v6719_v18 = vor.u32 %v7159_v59, %v6718_v32 }
 0xa1f   :  { %4611 = vmatpush.bf16.msra.mxu0 %v6644_v36  ;;  %4696 = vmatpush.bf16.msra.mxu2 %v6682_v14  ;;  %v6731_v36 = vor.u32 %v7160_v51, %v6728_v46  ;;  %v6776_v14 = vor.u32 %v7170_v7, %v6775_v52  ;;  %v7182_v51 = vld [vmem:[%s9788_s14 + $0x48] sm:$0xff] }
 0xa21   :  { %4802 = vmatpush.bf16.msra.mxu3 %v6731_v36  ;;  %v4925_v36 = vld [vmem:[%s9789_s13] sm:$0x3] }
 0xa23   :  { %4612 = vmatpush.bf16.msra.mxu0 %v6636_v16  ;;  %4697 = vmatpush.bf16.msra.mxu2 %v6674_v38  ;;  %v6723_v16 = vor.u32 %v7158_v15, %v6720_v50  ;;  %v7168_v38 = vld [vmem:[%s9785_s12 + $0xd4] sm:$0xf0]  ;;  %v4927_v15 = vperm.slane %v4925_v36, 0 }
 0xa24   :  { %v6768_v40 = vor.u32 %v7168_v38, %v6767_v53 }
 0xa25   :  { %4803 = vmatpush.bf16.msra.mxu3 %v6723_v16 }
 0xa27   :  { %4613 = vmatpush.bf16.msra.mxu0 %v6628_v47  ;;  %4698 = vmatpush.bf16.msra.mxu2 %v6666_v39  ;;  %v6711_v47 = vor.u32 %v7157_v23, %v6710_v58  ;;  %v6712_v39 = vld [vmem:[%s9785_s12 + $0x88] sm:$0xf0] }
 0xa28   :  { %v6715_v57 = vor.u32 %v7156_v4, %v6712_v39 }
 0xa2a   :  { %4804 = vmatpush.bf16.msra.mxu3 %v6715_v57 }
 0xa2b   :  { %4720 = vmatpush.bf16.msrb.mxu0 %v4494_v33  ;;  %4830 = vmatpush.bf16.msrb.mxu2 %v4494_v33  ;;  %v7164_v33 = vld [vmem:[%s9786_s11 + $0x18] sm:$0xff] }
 0xa2f   :  { %4721 = vmatpush.bf16.msrb.mxu0 %v4493_v63  ;;  %4831 = vmatpush.bf16.msrb.mxu2 %v4493_v63  ;;  %v7163_v63 = vld [vmem:[%s9785_s12 + $0xb4] sm:$0xf0] }
 0xa30   :  { %v6735_v22 = vor.u32 %v7163_v63, %v6734_v1  ;;  %v7176_v1 = vld [vmem:[%s9788_s14 + $0x18] sm:$0xff]  ;;  %v7175_v63 = vld [vmem:[%s9788_s14 + $0x10] sm:$0xff] }
 0xa32   :  { %4787 = vmatpush.bf16.msra.mxu1 %v6735_v22  ;;  %v7186_v22 = vld [vmem:[%s9788_s14 + $0x68] sm:$0xff] }
 0xa33   :  { %4722 = vmatpush.bf16.msrb.mxu0 %v4492_v2  ;;  %4832 = vmatpush.bf16.msrb.mxu2 %v4492_v2  ;;  %v6783_v2 = vld [vmem:[%s9785_s12 + $0xf0] sm:$0xf] }
 0xa34   :  { %v6784_v34 = vor.u32 %v7172_v24, %v6783_v2  ;;  %v7184_v24 = vld [vmem:[%s9788_s14 + $0x58] sm:$0xff] }
 0xa37   :  { %4723 = vmatpush.bf16.msrb.mxu0 %v4491_v13  ;;  %4833 = vmatpush.bf16.msrb.mxu2 %v4491_v13  ;;  %v6727_v13 = vor.u32 %v7161_v20, %v6726_v28 }
 0xa39   :  { %4788 = vmatpush.bf16.msra.mxu1 %v6727_v13  ;;  %v7181_v13 = vld [vmem:[%s9788_s14 + $0x40] sm:$0xff] }
 0xa3d   :  { %4789 = vmatpush.bf16.msra.mxu1 %v6719_v18 }
 0xa41   :  { %4790 = vmatpush.bf16.msra.mxu1 %v6711_v47 }
 0xa97   :  { %v4514_v12 = vpop.f32.mrf.mxu0 }
 0xa9d   :  { %v4548_v25 = vpop.f32.mrf.mxu2 }
 0xa9f   :  { %v4516_v5 = vpop.f32.mrf.mxu0 }
 0xaa0   :  { %v4519_v49 = vpack.c.bf16 %v4516_v5, %v4514_v12  ;;  %v7180_v5 = vld [vmem:[%s9788_s14 + $0x38] sm:$0xff] }
 0xaa2   :  { %6692 = vmatmul.msk.bf16.vlgmr.msra.gmra.mxu2 %vm3702_vm3, %v4519_v49  ;;  %6691 = vmatmul.msk.bf16.vlgmr.msrb.gmra.mxu3 %vm3702_vm3, %v4519_v49  ;;  %v7179_v49 = vld [vmem:[%s9788_s14 + $0x30] sm:$0xff] }
 0xaa3   :  { %5073 = vmatpush.bf16.msrb.mxu3 %v7180_v5 }
 0xaa5   :  { %v4550_v19 = vpop.f32.mrf.mxu2 }
 0xaa6   :  { %v4553_v60 = vpack.c.bf16 %v4550_v19, %v4548_v25  ;;  %v7178_v19 = vld [vmem:[%s9788_s14 + $0x28] sm:$0xff] }
 0xaa7   :  { %5074 = vmatpush.bf16.msrb.mxu3 %v7179_v49 }
 0xaa8   :  { %6657 = vmatmul.msk.bf16.vlgmr.msra.gmra.mxu0 %vm3702_vm3, %v4553_v60  ;;  %6658 = vmatmul.msk.bf16.vlgmr.msrb.gmra.mxu1 %vm3702_vm3, %v4553_v60  ;;  %v7177_v60 = vld [vmem:[%s9788_s14 + $0x20] sm:$0xff] }
 0xaa9   :  { %4897 = vmatpush.bf16.msra.mxu0 %v6784_v34  ;;  %4911 = vmatpush.bf16.msrb.mxu1 %v6788_v44  ;;  %v7183_v34 = vld [vmem:[%s9788_s14 + $0x50] sm:$0xff]  ;;  %v4928_v44 = vperm.slane %v4925_v36, 1 }
 0xaab   :  { %5075 = vmatpush.bf16.msrb.mxu3 %v7178_v19 }
 0xaad   :  { %4898 = vmatpush.bf16.msra.mxu0 %v6776_v14  ;;  %4912 = vmatpush.bf16.msrb.mxu1 %v6780_v54 }
 0xaaf   :  { %5076 = vmatpush.bf16.msrb.mxu3 %v7177_v60 }
 0xab1   :  { %4899 = vmatpush.bf16.msra.mxu0 %v6768_v40  ;;  %4913 = vmatpush.bf16.msrb.mxu1 %v6772_v55 }
 0xab2   :  { %6748 = vmatmul.msk.bf16.vlgmr.msrb.gmra.mxu2 %vm3702_vm3, %v7164_v33  ;;  %v7188_v33 = vld [vmem:[%s9788_s14 + $0x78] sm:$0xff] }
 0xab3   :  { %5087 = vmatpush.bf16.msra.mxu2 %v7188_v33  ;;  %5077 = vmatpush.bf16.msrb.mxu3 %v7176_v1 }
 0xab5   :  { %4900 = vmatpush.bf16.msra.mxu0 %v6760_v45  ;;  %4914 = vmatpush.bf16.msrb.mxu1 %v6764_v48 }
 0xab7   :  { %5078 = vmatpush.bf16.msrb.mxu3 %v7175_v63 }
 0xab8   :  { %6699 = vmatmul.msk.bf16.vlgmr.msrb.gmra.mxu0 %vm3702_vm3, %v7155_v9  ;;  %v7187_v9 = vld [vmem:[%s9788_s14 + $0x70] sm:$0xff] }
 0xab9   :  { %5088 = vmatpush.bf16.msra.mxu2 %v7187_v9 }
 0xabb   :  { %5079 = vmatpush.bf16.msrb.mxu3 %v7174_v26 }
 0xabd   :  { %5089 = vmatpush.bf16.msra.mxu2 %v7186_v22 }
 0xabf   :  { %5080 = vmatpush.bf16.msrb.mxu3 %v7173_v56 }
 0xac1   :  { %5090 = vmatpush.bf16.msra.mxu2 %v7185_v61 }
 0xac5   :  { %5091 = vmatpush.bf16.msra.mxu2 %v7184_v24 }
 0xac9   :  { %5092 = vmatpush.bf16.msra.mxu2 %v7183_v34 }
 0xacd   :  { %5093 = vmatpush.bf16.msra.mxu2 %v7182_v51 }
 0xad1   :  { %5094 = vmatpush.bf16.msra.mxu2 %v7181_v13 }
 0xb25   :  { %v4615_v10 = vpop.f32.mrf.mxu0  ;;  %v9698_v6 = vpop.f32.mrf.mxu2 }
 0xb26   :  { %v4629_v2 = vpop.f32.mrf.mxu1  ;;  %v4686_v20 = vpop.f32.mrf.mxu3 }
 0xb27   :  { %v4687_v52 = vadd.f32 %v4686_v20, %v4615_v10  ;;  %v4701_v0 = vadd.f32 %v9698_v6, %v4629_v2  ;;  %v7191_v6 = vld [vmem:[%s9787_s15] ss:$0 sm:$0xff] }
 0xb2d   :  { %v4617_v37 = vpop.f32.mrf.mxu0  ;;  %v9706_v62 = vpop.f32.mrf.mxu2 }
 0xb2e   :  { %v4631_v28 = vpop.f32.mrf.mxu1  ;;  %v4688_v32 = vpop.f32.mrf.mxu3 }
 0xb2f   :  { %v4689_v14 = vadd.f32 %v4688_v32, %v4617_v37  ;;  %v4703_v11 = vadd.f32 %v9706_v62, %v4631_v28 }
 0xb35   :  { %v4725_v27 = vpop.f32.mrf.mxu0  ;;  %v4835_v43 = vpop.f32.mrf.mxu2 }
 0xb3d   :  { %v4727_v42 = vpop.f32.mrf.mxu0  ;;  %v4837_v29 = vpop.f32.mrf.mxu2 }
 0xb3e   :  { %v4730_v12 = vpack.c.bf16 %v4727_v42, %v4725_v27  ;;  %v4840_v25 = vpack.c.bf16 %v4837_v29, %v4835_v43 }
 0xb40   :  { %6740 = vmatmul.msk.bf16.vlgmr.msra.gmra.mxu1 %vm3702_vm3, %v4730_v12  ;;  %6741 = vmatmul.msk.bf16.vlgmr.msra.gmra.mxu3 %vm3702_vm3, %v4730_v12 }
 0xb41   :  { %6789 = vmatmul.msk.bf16.vlgmr.msra.gmra.mxu0 %vm3702_vm3, %v4840_v25 }
 0xb50   :  { %6790 = vmatmul.msk.bf16.vlgmr.msrb.gmra.mxu1 %vm3702_vm3, %v4840_v25 }
 0xbbd   :  { %v4792_v46 = vpop.f32.mrf.mxu1 }
 0xbbe   :  { %v4902_v7 = vpop.f32.mrf.mxu0  ;;  %v4811_v59 = vadd.f32 %v4792_v46, %v4687_v52 }
 0xbc0   :  { %v4921_v18 = vadd.f32 %v4902_v7, %v4811_v59 }
 0xbc2   :  { %v4931_v40 = vadd.f32 %v4927_v15, %v4921_v18 }
 0xbc3   :  { %v4806_v16 = vpop.f32.mrf.mxu3 }
 0xbc4   :  { %v4935_v4 = vmax.f32 %v4931_v40, 0.0  ;;  %v4812_v57 = vadd.f32 %v4806_v16, %v4701_v0 }
 0xbc5   :  { %v4794_v50 = vpop.f32.mrf.mxu1 }
 0xbc6   :  { %v4813_v53 = vadd.f32 %v4794_v50, %v4689_v14  ;;  %v4904_v38 = vpop.f32.mrf.mxu0 }
 0xbc8   :  { %v4923_v58 = vadd.f32 %v4904_v38, %v4813_v53 }
 0xbca   :  { %v4933_v23 = vadd.f32 %v4927_v15, %v4923_v58 }
 0xbcb   :  { %v4808_v45 = vpop.f32.mrf.mxu3 }
 0xbcc   :  { %v4937_v47 = vmax.f32 %v4933_v23, 0.0  ;;  %v4814_v17 = vadd.f32 %v4808_v45, %v4703_v11 }
 0xbcd   :  { %v4916_v39 = vpop.f32.mrf.mxu1 }
 0xbce   :  { %v4939_v41 = vpack.c.bf16 %v4937_v47, %v4935_v4  ;;  %v4922_v30 = vadd.f32 %v4916_v39, %v4812_v57 }
 0xbd0   :  { %5081 = vmatmul.bf16.vlgmr.msrb.gmra.mxu3 %v4939_v41  ;;  %v4932_v54 = vadd.f32 %v4928_v44, %v4922_v30 }
 0xbd2   :  { %v4936_v10 = vmax.f32 %v4932_v54, 0.0 }
 0xbd5   :  { %v4918_v35 = vpop.f32.mrf.mxu1 }
 0xbd6   :  { %v4924_v21 = vadd.f32 %v4918_v35, %v4814_v17 }
 0xbd8   :  { %v4934_v3 = vadd.f32 %v4928_v44, %v4924_v21 }
 0xbda   :  { %v4938_v55 = vmax.f32 %v4934_v3, 0.0 }
 0xbdc   :  { %v4940_v8 = vpack.c.bf16 %v4938_v55, %v4936_v10 }
 0xbde   :  { %5095 = vmatmul.bf16.vlgmr.msra.gmra.mxu2 %v4940_v8 }
 0xc53   :  { %v5082_v31 = vpop.f32.mrf.mxu3 }
 0xc54   :  { %v5083_v48 = vadd.f32 %v7191_v6, %v5082_v31 }
 0xc5b   :  { %v5084_v62 = vpop.f32.mrf.mxu3 }
 0xc5c   :  { %v5085_v43 = vadd.f32 %v7191_v6, %v5084_v62 }
 0xc61   :  { %v5096_v37 = vpop.f32.mrf.mxu2 }
 0xc62   :  { %v5097_v27 = vadd.f32 %v5096_v37, %v5083_v48 }
 0xc64   :  { %5101 = vst [vmem:[%s9790_s16] sm:$0xff] %v5097_v27 }
 0xc69   :  { %v5098_v42 = vpop.f32.mrf.mxu2 }
 0xc6a   :  { %v5099_v29 = vadd.f32 %v5098_v42, %v5085_v43 }
 0xc6c   :  { %5102 = vst [vmem:[%s9790_s16 + $0x8] sm:$0xff] %v5099_v29 }

</bundles_post_ra>
